<compile_context>
chip_gen: v6e
topology: v6e:2x2x1
jax: 0.10.0
libtpu: 0.0.40
codegen_flags: <defaults>
</compile_context>

<pallas_src>
import functools

import jax
import jax.numpy as jnp
import numpy as np
from jax.experimental import pallas as pl
from jax.experimental.pallas import tpu as pltpu

EPS = 1e-5                                   # PyTorch BatchNorm2d default eps
COMPUTE_DTYPE = jnp.float32                  # flip to jnp.bfloat16 to halve activation HBM bytes
_MATMUL_PREC = jax.lax.Precision.HIGHEST     # keep f32 MXU accuracy vs the f32 PyTorch reference


# --------------------------------- helpers -----------------------------------

def _round_up(v, m):
    return -(-v // m) * m


def _vmem_limit_bytes():
    """Per-generation VMEM budget: ~3/4 of physical, capped at 96 MiB (=> 48 MiB on v7x)."""
    try:
        cap = int(pltpu.get_tpu_info().vmem_capacity_bytes)
    except Exception:
        cap = 64 * 1024 * 1024               # conservative fallback (v7x-sized)
    return int(min(cap * 3 // 4, 96 * 1024 * 1024))


def _compiler_params():
    return pltpu.CompilerParams(
        dimension_semantics=("parallel",),   # batch-block axis split across TensorCores (megacore)
        vmem_limit_bytes=_vmem_limit_bytes(),
    )


def _pick_images_per_block(n, cin_p, co_p, L, act_itemsize):
    """Largest divisor of n whose conv working set fits the VMEM budget, keeping >=2 grid steps."""
    per_img = L * (2 * (cin_p + co_p) * act_itemsize        # double-buffered input + output blocks
                   + (9 * cin_p + 2 * co_p) * 4)            # stacked im2col slab + f32 temporaries
    budget = max(_vmem_limit_bytes() // 2, per_img)
    max_imgs = max(1, budget // per_img)
    best = 1
    for nb in range(1, n + 1):
        if n % nb != 0 or nb > max_imgs:
            continue
        if n >= 2 and n // nb < 2:                          # keep both v7x TensorCores fed
            continue
        best = nb
    return best


# ------------------------------- Pallas kernels -------------------------------

def _conv3x3_kernel(*refs, H, W, n_img, fuse_input_affine_relu):
    """3x3 conv (pad=1) + bias for n_img images, plus one lane-dense BN partial per block.

    Activation layout: (n_img, Cin_p, H*W), pixels lane-dense. The 9 taps are built with
    pltpu.roll + hoisted boundary masks, stacked to (9*Cin_p, H*W) and contracted in ONE MXU
    matmul against the pre-flattened (Co_p, 9*Cin_p) weights. Optionally applies the previous
    layer's folded BN affine + ReLU to the input (fusion: no extra HBM pass over y1).
    """
    if fuse_input_affine_relu:
        x_ref, w_ref, b_ref, s_ref, t_ref, y_ref, st_ref = refs
    else:
        x_ref, w_ref, b_ref, y_ref, st_ref = refs
        s_ref = t_ref = None

    L = H * W
    co_p = y_ref.shape[1]

    # Hoisted boundary masks (shape (1, L)); shared by every tap and every image in this block.
    pix = jax.lax.broadcasted_iota(jnp.int32, (1, L), 1)    # flat pixel index l = h*W + w
    col = pix % W
    m_top, m_bot = pix >= W, pix < (H - 1) * W
    m_left, m_right = col >= 1, col <= W - 2
    tap_off, tap_mask = [], []
    for ky in range(3):
        for dx in range(3):
            m = None
            if ky == 0:
                m = m_top
            elif ky == 2:
                m = m_bot
            if dx == 0:
                m = m_left if m is None else jnp.logical_and(m, m_left)
            elif dx == 2:
                m = m_right if m is None else jnp.logical_and(m, m_right)
            tap_off.append((ky - 1) * W + (dx - 1))
            tap_mask.append(m)

    w_flat = w_ref[...]                                     # (Co_p, 9*Cin_p), resident
    bias = b_ref[...]                                       # (Co_p, 1)

    sum_acc = jnp.zeros((co_p, 1), jnp.float32)
    sq_acc = jnp.zeros((co_p, 1), jnp.float32)
    for i in range(n_img):
        x = x_ref[i].astype(jnp.float32)                    # (Cin_p, L)
        if fuse_input_affine_relu:
            x = jnp.maximum(x * s_ref[...] + t_ref[...], 0.0)   # previous BN affine + ReLU (fused)
        slabs = []
        for off, m in zip(tap_off, tap_mask):
            s = x if off == 0 else pltpu.roll(x, shift=(-off) % L, axis=1)  # s[:, l] = x[:, l+off]
            if m is not None:
                s = jnp.where(m, s, 0.0)                    # zero the halo (and any roll wrap-around)
            slabs.append(s)
        stacked = jnp.concatenate(slabs, axis=0)            # (9*Cin_p, L) im2col slab
        y = jnp.dot(w_flat, stacked, preferred_element_type=jnp.float32,
                    precision=_MATMUL_PREC) + bias          # ONE MXU matmul, K = 9*Cin_p
        y_ref[i] = y.astype(y_ref.dtype)
        sum_acc = sum_acc + jnp.sum(y, axis=1, keepdims=True)
        sq_acc = sq_acc + jnp.sum(y * y, axis=1, keepdims=True)

    # Lane-dense BN partial: one (Co_p, 128) tile per block; col 0 = sum, col 1 = sum of squares.
    lane = jax.lax.broadcasted_iota(jnp.int32, (co_p, 128), 1)
    st_ref[0] = jnp.where(lane == 0, sum_acc, 0.0) + jnp.where(lane == 1, sq_acc, 0.0)


def _bn_relu_maxpool_kernel(y_ref, s_ref, t_ref, p_ref, o_ref, *, W, n_img):
    """Fused BN affine + ReLU + MaxPool2d(2,2); pool-phase extraction done fully in-kernel.

    Two lane rolls (XLU) form the 2x2 window maxima; the stride-2 anchors (even row, even col)
    are compacted to a dense (Co_p, H/2*W/2) tile via a one-hot selection matmul (MXU). Lanes
    contaminated by roll wrap-around only land on odd rows/cols, which are never selected.
    """
    L = y_ref.shape[2]
    sel = p_ref[...]                                        # (L, Q) one-hot selector, resident
    scale = s_ref[...]
    shift = t_ref[...]
    for i in range(n_img):
        a = jnp.maximum(y_ref[i].astype(jnp.float32) * scale + shift, 0.0)  # BN affine + ReLU
        h = jnp.maximum(a, pltpu.roll(a, shift=L - 1, axis=1))   # h[l] = max(a[l], a[l+1])
        v = jnp.maximum(h, pltpu.roll(h, shift=L - W, axis=1))   # v[l] = 2x2 window max anchored at l
        o_ref[i] = jnp.dot(v, sel, preferred_element_type=jnp.float32,
                           precision=_MATMUL_PREC).astype(o_ref.dtype)


# ----------------------------- pallas_call wrappers ---------------------------

def _conv3x3_bn_stats(x, w_flat, bias, *, H, W, n_img, out_dtype,
                      input_scale=None, input_shift=None):
    """x: (N, Cin_p, H*W); w_flat: (Co_p, 9*Cin_p); bias: (Co_p, 1) -> (y, per-block stats)."""
    N, cin_p, L = x.shape
    co_p = w_flat.shape[0]
    n_blocks = N // n_img
    fuse = input_scale is not None
    kernel = functools.partial(_conv3x3_kernel, H=H, W=W, n_img=n_img,
                               fuse_input_affine_relu=fuse)

    in_specs = [
        pl.BlockSpec((n_img, cin_p, L), lambda n: (n, 0, 0)),   # nb images per grid step
        pl.BlockSpec((co_p, 9 * cin_p), lambda n: (0, 0)),      # weights: constant map (resident)
        pl.BlockSpec((co_p, 1), lambda n: (0, 0)),              # bias: resident
    ]
    args = [x, w_flat, bias]
    if fuse:
        in_specs += [pl.BlockSpec((cin_p, 1), lambda n: (0, 0))] * 2
        args += [input_scale, input_shift]

    act_bytes = jnp.dtype(out_dtype).itemsize
    cost = pl.CostEstimate(
        flops=2 * 9 * N * co_p * cin_p * L,
        transcendentals=0,
        bytes_accessed=(x.size * x.dtype.itemsize + w_flat.size * 4
                        + N * co_p * L * act_bytes + n_blocks * co_p * 128 * 4),
    )

    y, stats = pl.pallas_call(
        kernel,
        grid=(n_blocks,),
        in_specs=in_specs,
        out_specs=[pl.BlockSpec((n_img, co_p, L), lambda n: (n, 0, 0)),
                   pl.BlockSpec((1, co_p, 128), lambda n: (n, 0, 0))],
        out_shape=[jax.ShapeDtypeStruct((N, co_p, L), out_dtype),
                   jax.ShapeDtypeStruct((n_blocks, co_p, 128), jnp.float32)],
        compiler_params=_compiler_params(),
        cost_estimate=cost,
    )(*args)
    return y, stats


def _bn_relu_maxpool(y, scale, shift, pool_sel, *, W, n_img, out_dtype):
    N, co_p, L = y.shape
    Q = pool_sel.shape[1]
    n_blocks = N // n_img
    cost = pl.CostEstimate(
        flops=2 * N * co_p * L * Q + 6 * N * co_p * L,
        transcendentals=0,
        bytes_accessed=(y.size * y.dtype.itemsize + pool_sel.size * 4
                        + N * co_p * Q * jnp.dtype(out_dtype).itemsize),
    )
    return pl.pallas_call(
        functools.partial(_bn_relu_maxpool_kernel, W=W, n_img=n_img),
        grid=(n_blocks,),
        in_specs=[pl.BlockSpec((n_img, co_p, L), lambda n: (n, 0, 0)),
                  pl.BlockSpec((co_p, 1), lambda n: (0, 0)),
                  pl.BlockSpec((co_p, 1), lambda n: (0, 0)),
                  pl.BlockSpec((L, Q), lambda n: (0, 0))],        # one-hot selector: resident
        out_specs=pl.BlockSpec((n_img, co_p, Q), lambda n: (n, 0, 0)),
        out_shape=jax.ShapeDtypeStruct((N, co_p, Q), out_dtype),
        compiler_params=_compiler_params(),
        cost_estimate=cost,
    )(y, scale, shift, pool_sel)


# ------------------------------- forward pass ---------------------------------

def _bn_scale_shift(stats, gamma, beta, count):
    """Fold BatchNorm (batch stats, biased variance) into per-channel (scale, shift)."""
    total_sum = jnp.sum(stats[:, :, 0], axis=0)              # (Co_p,)
    total_sq = jnp.sum(stats[:, :, 1], axis=0)
    mean = total_sum / count                                  # count = true N*H*W
    var = jnp.maximum(total_sq / count - mean * mean, 0.0)    # clamp E[y^2]-E[y]^2 cancellation
    scale = gamma * jax.lax.rsqrt(var + EPS)
    shift = beta - mean * scale
    return (scale.reshape(-1, 1).astype(jnp.float32),
            shift.reshape(-1, 1).astype(jnp.float32))


def conv_block_downsample_forward(x_nchw, params):
    (w1, b1, g1, be1, w2, b2, g2, be2) = params
    N, Cin, H, W = x_nchw.shape
    Co = w1.shape[0]
    L = H * W
    count = float(N * L)

    # Channel padding to a sublane multiple (8 for f32, 16 for packed bf16 -> no layout churn on v5e).
    align = 8 * (2 if jnp.dtype(COMPUTE_DTYPE).itemsize == 2 else 1)
    cin_p = _round_up(Cin, align)
    co_p = _round_up(Co, align)

    # Activations live as (N, C_pad, H*W): channels on sublanes, pixels lane-dense.
    x = x_nchw.reshape(N, Cin, L).astype(COMPUTE_DTYPE)
    if cin_p != Cin:
        x = jnp.pad(x, ((0, 0), (0, cin_p - Cin), (0, 0)))

    # PyTorch OIHW -> (Co_p, 9*Cin_p), tap-major / input-channel-minor (matches the kernel's slab).
    def flat_w(w_oihw, in_pad, out_pad):
        co, ci = w_oihw.shape[:2]
        w = jnp.transpose(w_oihw, (0, 2, 3, 1))                       # (Co, ky, dx, Cin)
        w = jnp.pad(w, ((0, out_pad - co), (0, 0), (0, 0), (0, in_pad - ci)))
        return w.reshape(out_pad, 9 * in_pad).astype(jnp.float32)

    def pad1d(v, val=0.0):
        return jnp.pad(v.astype(jnp.float32), (0, co_p - Co), constant_values=val)

    w1_f, w2_f = flat_w(w1, cin_p, co_p), flat_w(w2, co_p, co_p)
    b1_c, b2_c = pad1d(b1).reshape(co_p, 1), pad1d(b2).reshape(co_p, 1)
    g1_p, g2_p = pad1d(g1, 1.0), pad1d(g2, 1.0)
    be1_p, be2_p = pad1d(be1), pad1d(be2)

    nb = _pick_images_per_block(N, cin_p, co_p, L, jnp.dtype(COMPUTE_DTYPE).itemsize)

    # conv1 + bias, with fused lane-dense per-block BN statistics.
    y1, st1 = _conv3x3_bn_stats(x, w1_f, b1_c, H=H, W=W, n_img=nb, out_dtype=COMPUTE_DTYPE)
    scale1, shift1 = _bn_scale_shift(st1, g1_p, be1_p, count)

    # conv2 + bias; BN1 affine + ReLU1 are fused into its prologue (no extra HBM pass over y1).
    y2, st2 = _conv3x3_bn_stats(y1, w2_f, b2_c, H=H, W=W, n_img=nb, out_dtype=COMPUTE_DTYPE,
                                input_scale=scale1, input_shift=shift1)
    scale2, shift2 = _bn_scale_shift(st2, g2_p, be2_p, count)

    # One-hot selector that compacts the (even row, even col) pool anchors: sel[l, q] = (l == anchor(q)).
    Hq, Wq = H // 2, W // 2
    q = jnp.arange(Hq * Wq)
    anchor = (q // Wq) * (2 * W) + (q % Wq) * 2
    pool_sel = (jnp.arange(L)[:, None] == anchor[None, :]).astype(jnp.float32)   # (L, Q)

    # BN2 affine + ReLU2 + MaxPool2d(2,2), all in one kernel.
    out = _bn_relu_maxpool(y2, scale2, shift2, pool_sel, W=W, n_img=nb, out_dtype=jnp.float32)
    return out[:, :Co, :].reshape(N, Co, Hq, Wq)              # NCHW, matching PyTorch


# ----------------------------- pure-JAX reference -----------------------------

def reference_forward(x_nchw, params):
    (w1, b1, g1, be1, w2, b2, g2, be2) = params

    def conv_bn_relu(z, w, b, g, be):
        y = jax.lax.conv_general_dilated(
            z, w, window_strides=(1, 1), padding='SAME',
            dimension_numbers=('NCHW', 'OIHW', 'NCHW'),
            precision=jax.lax.Precision.HIGHEST) + b.reshape(1, -1, 1, 1)
        mean = jnp.mean(y, axis=(0, 2, 3), keepdims=True)
        var = jnp.mean((y - mean) ** 2, axis=(0, 2, 3), keepdims=True)
        y = (y - mean) * jax.lax.rsqrt(var + EPS) * g.reshape(1, -1, 1, 1) + be.reshape(1, -1, 1, 1)
        return jnp.maximum(y, 0.0)

    y = conv_bn_relu(x_nchw.astype(jnp.float32), w1, b1, g1, be1)
    y = conv_bn_relu(y, w2, b2, g2, be2)
    n, c, h, w = y.shape
    return y.reshape(n, c, h // 2, 2, w // 2, 2).max(axis=(3, 5))


# ----------------------------------- main -------------------------------------

if __name__ == "__main__":
    key = jax.random.PRNGKey(0)
    keys = jax.random.split(key, 9)
    N, Cin, H, W = 4, 4, 16, 16       # N=4 exercises multi-image blocks (nb=2) on a 2-step grid
    Co = 8

    x = jax.random.normal(keys[0], (N, Cin, H, W), jnp.float32)

    # Deterministic synthetic parameters (shapes per the nn module __init__).
    w1 = 0.1 * jax.random.normal(keys[1], (Co, Cin, 3, 3), jnp.float32)   # Conv2d #1 (OIHW)
    b1 = 0.1 * jax.random.normal(keys[2], (Co,), jnp.float32)
    g1 = 1.0 + 0.1 * jax.random.normal(keys[3], (Co,), jnp.float32)       # BatchNorm2d #1
    be1 = 0.1 * jax.random.normal(keys[4], (Co,), jnp.float32)
    w2 = 0.1 * jax.random.normal(keys[5], (Co, Co, 3, 3), jnp.float32)    # Conv2d #2
    b2 = 0.1 * jax.random.normal(keys[6], (Co,), jnp.float32)
    g2 = 1.0 + 0.1 * jax.random.normal(keys[7], (Co,), jnp.float32)       # BatchNorm2d #2
    be2 = 0.1 * jax.random.normal(keys[8], (Co,), jnp.float32)
    params = (w1, b1, g1, be1, w2, b2, g2, be2)

    out = jax.jit(conv_block_downsample_forward)(x, params)
    out = jax.block_until_ready(out)
    assert out.shape == (N, Co, H // 2, W // 2)

    ref = reference_forward(x, params)
    np.testing.assert_allclose(np.asarray(out), np.asarray(ref), rtol=5e-4, atol=5e-4)

    print("KERNEL_OK")
</pallas_src>

<mosaic_0001>
module attributes {stable_mosaic.version = 11 : i64} {
  func.func @_conv3x3_kernel(%arg0: i32, %arg1: memref<2x8x256xf32, #tpu.memory_space<vmem>>, %arg2: memref<8x72xf32, #tpu.memory_space<vmem>>, %arg3: memref<8x1xf32, #tpu.memory_space<vmem>>, %arg4: memref<2x8x256xf32, #tpu.memory_space<vmem>>, %arg5: memref<1x8x128xf32, #tpu.memory_space<vmem>>) attributes {dimension_semantics = [#tpu.dimension_semantics<parallel>], iteration_bounds = array<i64: 2>, scalar_prefetch = 0 : i64, scratch_operands = 0 : i64, tpu.core_type = #tpu.core_type<tc>, window_params = [{transform_indices = @transform_0, window_bounds = array<i64: 2, 8, 256>}, {pipeline_mode = #tpu.pipeline_mode<synchronous>, transform_indices = @transform_1, window_bounds = array<i64: 8, 72>}, {pipeline_mode = #tpu.pipeline_mode<synchronous>, transform_indices = @transform_2, window_bounds = array<i64: 8, 1>}, {transform_indices = @transform_3, window_bounds = array<i64: 2, 8, 256>}, {transform_indices = @transform_4, window_bounds = array<i64: 1, 8, 128>}]} {
    %0 = tpu.iota {dimensions = array<i32: 1>} : vector<1x256xi32>
    %c16_i32 = arith.constant 16 : i32
    %c0_i32 = arith.constant 0 : i32
    %1 = arith.cmpi eq, %c16_i32, %c0_i32 : i32
    %c1_i32 = arith.constant 1 : i32
    %2 = arith.select %1, %c1_i32, %c16_i32 : i32
    %3 = vector.broadcast %2 : i32 to vector<1x256xi32>
    %4 = arith.remsi %0, %3 : vector<1x256xi32>
    %c0_i32_0 = arith.constant 0 : i32
    %5 = vector.broadcast %c0_i32_0 : i32 to vector<1x256xi32>
    %6 = arith.cmpi ne, %4, %5 : vector<1x256xi32>
    %c0_i32_1 = arith.constant 0 : i32
    %7 = vector.broadcast %c0_i32_1 : i32 to vector<1x256xi32>
    %8 = arith.cmpi slt, %4, %7 : vector<1x256xi32>
    %c0_i32_2 = arith.constant 0 : i32
    %9 = arith.cmpi slt, %2, %c0_i32_2 : i32
    %10 = vector.broadcast %9 : i1 to vector<1x256xi1>
    %11 = vector.broadcast %10 : vector<1x256xi1> to vector<1x256xi1>
    %12 = arith.xori %8, %11 : vector<1x256xi1>
    %13 = arith.andi %12, %6 : vector<1x256xi1>
    %14 = vector.broadcast %2 : i32 to vector<1x256xi32>
    %15 = arith.addi %4, %14 : vector<1x256xi32>
    %16 = arith.select %13, %15, %4 : vector<1x256xi1>, vector<1x256xi32>
    %c16_i32_3 = arith.constant 16 : i32
    %17 = vector.broadcast %c16_i32_3 : i32 to vector<1x256xi32>
    %18 = arith.cmpi sge, %0, %17 : vector<1x256xi32>
    %c240_i32 = arith.constant 240 : i32
    %19 = vector.broadcast %c240_i32 : i32 to vector<1x256xi32>
    %20 = arith.cmpi slt, %0, %19 : vector<1x256xi32>
    %c1_i32_4 = arith.constant 1 : i32
    %21 = vector.broadcast %c1_i32_4 : i32 to vector<1x256xi32>
    %22 = arith.cmpi sge, %16, %21 : vector<1x256xi32>
    %c14_i32 = arith.constant 14 : i32
    %23 = vector.broadcast %c14_i32 : i32 to vector<1x256xi32>
    %24 = arith.cmpi sle, %16, %23 : vector<1x256xi32>
    %25 = arith.andi %18, %22 : vector<1x256xi1>
    %26 = arith.andi %18, %24 : vector<1x256xi1>
    %27 = arith.andi %20, %22 : vector<1x256xi1>
    %28 = arith.andi %20, %24 : vector<1x256xi1>
    %c0 = arith.constant 0 : index
    %c0_5 = arith.constant 0 : index
    %29 = vector.load %arg2[%c0, %c0_5] : memref<8x72xf32, #tpu.memory_space<vmem>>, vector<8x72xf32>
    %c0_6 = arith.constant 0 : index
    %c0_7 = arith.constant 0 : index
    %30 = vector.load %arg3[%c0_6, %c0_7] : memref<8x1xf32, #tpu.memory_space<vmem>>, vector<8x1xf32>
    %cst = arith.constant 0.000000e+00 : f32
    %31 = vector.broadcast %cst : f32 to vector<8x1xf32>
    %cst_8 = arith.constant 0.000000e+00 : f32
    %32 = vector.broadcast %cst_8 : f32 to vector<8x1xf32>
    %c0_9 = arith.constant 0 : index
    %c0_10 = arith.constant 0 : index
    %c0_11 = arith.constant 0 : index
    %33 = vector.load %arg1[%c0_9, %c0_10, %c0_11] : memref<2x8x256xf32, #tpu.memory_space<vmem>>, vector<1x8x256xf32>
    %34 = vector.shape_cast %33 : vector<1x8x256xf32> to vector<8x256xf32>
    %c17_i32 = arith.constant 17 : i32
    %35 = tpu.dynamic_rotate %34 by %c17_i32 dim 1 : vector<8x256xf32>, i32 -> vector<8x256xf32>
    %cst_12 = arith.constant 0.000000e+00 : f32
    %36 = vector.shape_cast %25 : vector<1x256xi1> to vector<1x256xi1>
    %37 = vector.broadcast %36 : vector<1x256xi1> to vector<8x256xi1>
    %38 = vector.broadcast %cst_12 : f32 to vector<8x256xf32>
    %39 = arith.select %37, %35, %38 : vector<8x256xi1>, vector<8x256xf32>
    %c16_i32_13 = arith.constant 16 : i32
    %40 = tpu.dynamic_rotate %34 by %c16_i32_13 dim 1 : vector<8x256xf32>, i32 -> vector<8x256xf32>
    %cst_14 = arith.constant 0.000000e+00 : f32
    %41 = vector.shape_cast %18 : vector<1x256xi1> to vector<1x256xi1>
    %42 = vector.broadcast %41 : vector<1x256xi1> to vector<8x256xi1>
    %43 = vector.broadcast %cst_14 : f32 to vector<8x256xf32>
    %44 = arith.select %42, %40, %43 : vector<8x256xi1>, vector<8x256xf32>
    %c15_i32 = arith.constant 15 : i32
    %45 = tpu.dynamic_rotate %34 by %c15_i32 dim 1 : vector<8x256xf32>, i32 -> vector<8x256xf32>
    %cst_15 = arith.constant 0.000000e+00 : f32
    %46 = vector.shape_cast %26 : vector<1x256xi1> to vector<1x256xi1>
    %47 = vector.broadcast %46 : vector<1x256xi1> to vector<8x256xi1>
    %48 = vector.broadcast %cst_15 : f32 to vector<8x256xf32>
    %49 = arith.select %47, %45, %48 : vector<8x256xi1>, vector<8x256xf32>
    %c1_i32_16 = arith.constant 1 : i32
    %50 = tpu.dynamic_rotate %34 by %c1_i32_16 dim 1 : vector<8x256xf32>, i32 -> vector<8x256xf32>
    %cst_17 = arith.constant 0.000000e+00 : f32
    %51 = vector.shape_cast %22 : vector<1x256xi1> to vector<1x256xi1>
    %52 = vector.broadcast %51 : vector<1x256xi1> to vector<8x256xi1>
    %53 = vector.broadcast %cst_17 : f32 to vector<8x256xf32>
    %54 = arith.select %52, %50, %53 : vector<8x256xi1>, vector<8x256xf32>
    %c255_i32 = arith.constant 255 : i32
    %55 = tpu.dynamic_rotate %34 by %c255_i32 dim 1 : vector<8x256xf32>, i32 -> vector<8x256xf32>
    %cst_18 = arith.constant 0.000000e+00 : f32
    %56 = vector.shape_cast %24 : vector<1x256xi1> to vector<1x256xi1>
    %57 = vector.broadcast %56 : vector<1x256xi1> to vector<8x256xi1>
    %58 = vector.broadcast %cst_18 : f32 to vector<8x256xf32>
    %59 = arith.select %57, %55, %58 : vector<8x256xi1>, vector<8x256xf32>
    %c241_i32 = arith.constant 241 : i32
    %60 = tpu.dynamic_rotate %34 by %c241_i32 dim 1 : vector<8x256xf32>, i32 -> vector<8x256xf32>
    %cst_19 = arith.constant 0.000000e+00 : f32
    %61 = vector.shape_cast %27 : vector<1x256xi1> to vector<1x256xi1>
    %62 = vector.broadcast %61 : vector<1x256xi1> to vector<8x256xi1>
    %63 = vector.broadcast %cst_19 : f32 to vector<8x256xf32>
    %64 = arith.select %62, %60, %63 : vector<8x256xi1>, vector<8x256xf32>
    %c240_i32_20 = arith.constant 240 : i32
    %65 = tpu.dynamic_rotate %34 by %c240_i32_20 dim 1 : vector<8x256xf32>, i32 -> vector<8x256xf32>
    %cst_21 = arith.constant 0.000000e+00 : f32
    %66 = vector.shape_cast %20 : vector<1x256xi1> to vector<1x256xi1>
    %67 = vector.broadcast %66 : vector<1x256xi1> to vector<8x256xi1>
    %68 = vector.broadcast %cst_21 : f32 to vector<8x256xf32>
    %69 = arith.select %67, %65, %68 : vector<8x256xi1>, vector<8x256xf32>
    %c239_i32 = arith.constant 239 : i32
    %70 = tpu.dynamic_rotate %34 by %c239_i32 dim 1 : vector<8x256xf32>, i32 -> vector<8x256xf32>
    %cst_22 = arith.constant 0.000000e+00 : f32
    %71 = vector.shape_cast %28 : vector<1x256xi1> to vector<1x256xi1>
    %72 = vector.broadcast %71 : vector<1x256xi1> to vector<8x256xi1>
    %73 = vector.broadcast %cst_22 : f32 to vector<8x256xf32>
    %74 = arith.select %72, %70, %73 : vector<8x256xi1>, vector<8x256xf32>
    %75 = tpu.concatenate %39, %44, %49, %54, %34, %59, %64, %69, %74 in 0 : vector<8x256xf32>, vector<8x256xf32>, vector<8x256xf32>, vector<8x256xf32>, vector<8x256xf32>, vector<8x256xf32>, vector<8x256xf32>, vector<8x256xf32>, vector<8x256xf32> -> vector<72x256xf32>
    %cst_23 = arith.constant dense<0.000000e+00> : vector<8x256xf32>
    %76 = tpu.matmul %29, %75, %cst_23 {dimension_numbers = #tpu.dot_dimension_numbers<[1], [0], [0], [1], [0, 0, 1, 1], [], []>, precision = #tpu.contract_precision<fp32>} : vector<8x72xf32>, vector<72x256xf32>, vector<8x256xf32> -> vector<8x256xf32>
    %77 = vector.broadcast %30 : vector<8x1xf32> to vector<8x256xf32>
    %78 = arith.addf %76, %77 : vector<8x256xf32>
    %c0_24 = arith.constant 0 : index
    %c0_25 = arith.constant 0 : index
    %c0_26 = arith.constant 0 : index
    %79 = vector.load %arg4[%c0_24, %c0_25, %c0_26] : memref<2x8x256xf32, #tpu.memory_space<vmem>>, vector<1x8x256xf32>
    %80 = vector.shape_cast %79 : vector<1x8x256xf32> to vector<8x256xf32>
    %81 = vector.shape_cast %78 : vector<8x256xf32> to vector<1x8x256xf32>
    tpu.vector_store %arg4[%c0_24, %c0_25, %c0_26], %81 {strides = array<i32>} : memref<2x8x256xf32, #tpu.memory_space<vmem>>, vector<1x8x256xf32>,
    %cst_27 = arith.constant dense<0.000000e+00> : vector<8xf32>
    %82 = vector.multi_reduction <add>, %78, %cst_27 [1] : vector<8x256xf32> to vector<8xf32>
    %83 = vector.shape_cast %82 : vector<8xf32> to vector<8x1xf32>
    %84 = arith.addf %31, %83 : vector<8x1xf32>
    %85 = arith.mulf %78, %78 : vector<8x256xf32>
    %cst_28 = arith.constant dense<0.000000e+00> : vector<8xf32>
    %86 = vector.multi_reduction <add>, %85, %cst_28 [1] : vector<8x256xf32> to vector<8xf32>
    %87 = vector.shape_cast %86 : vector<8xf32> to vector<8x1xf32>
    %88 = arith.addf %32, %87 : vector<8x1xf32>
    %c1 = arith.constant 1 : index
    %c0_29 = arith.constant 0 : index
    %c0_30 = arith.constant 0 : index
    %89 = vector.load %arg1[%c1, %c0_29, %c0_30] : memref<2x8x256xf32, #tpu.memory_space<vmem>>, vector<1x8x256xf32>
    %90 = vector.shape_cast %89 : vector<1x8x256xf32> to vector<8x256xf32>
    %c17_i32_31 = arith.constant 17 : i32
    %91 = tpu.dynamic_rotate %90 by %c17_i32_31 dim 1 : vector<8x256xf32>, i32 -> vector<8x256xf32>
    %cst_32 = arith.constant 0.000000e+00 : f32
    %92 = vector.shape_cast %25 : vector<1x256xi1> to vector<1x256xi1>
    %93 = vector.broadcast %92 : vector<1x256xi1> to vector<8x256xi1>
    %94 = vector.broadcast %cst_32 : f32 to vector<8x256xf32>
    %95 = arith.select %93, %91, %94 : vector<8x256xi1>, vector<8x256xf32>
    %c16_i32_33 = arith.constant 16 : i32
    %96 = tpu.dynamic_rotate %90 by %c16_i32_33 dim 1 : vector<8x256xf32>, i32 -> vector<8x256xf32>
    %cst_34 = arith.constant 0.000000e+00 : f32
    %97 = vector.shape_cast %18 : vector<1x256xi1> to vector<1x256xi1>
    %98 = vector.broadcast %97 : vector<1x256xi1> to vector<8x256xi1>
    %99 = vector.broadcast %cst_34 : f32 to vector<8x256xf32>
    %100 = arith.select %98, %96, %99 : vector<8x256xi1>, vector<8x256xf32>
    %c15_i32_35 = arith.constant 15 : i32
    %101 = tpu.dynamic_rotate %90 by %c15_i32_35 dim 1 : vector<8x256xf32>, i32 -> vector<8x256xf32>
    %cst_36 = arith.constant 0.000000e+00 : f32
    %102 = vector.shape_cast %26 : vector<1x256xi1> to vector<1x256xi1>
    %103 = vector.broadcast %102 : vector<1x256xi1> to vector<8x256xi1>
    %104 = vector.broadcast %cst_36 : f32 to vector<8x256xf32>
    %105 = arith.select %103, %101, %104 : vector<8x256xi1>, vector<8x256xf32>
    %c1_i32_37 = arith.constant 1 : i32
    %106 = tpu.dynamic_rotate %90 by %c1_i32_37 dim 1 : vector<8x256xf32>, i32 -> vector<8x256xf32>
    %cst_38 = arith.constant 0.000000e+00 : f32
    %107 = vector.shape_cast %22 : vector<1x256xi1> to vector<1x256xi1>
    %108 = vector.broadcast %107 : vector<1x256xi1> to vector<8x256xi1>
    %109 = vector.broadcast %cst_38 : f32 to vector<8x256xf32>
    %110 = arith.select %108, %106, %109 : vector<8x256xi1>, vector<8x256xf32>
    %c255_i32_39 = arith.constant 255 : i32
    %111 = tpu.dynamic_rotate %90 by %c255_i32_39 dim 1 : vector<8x256xf32>, i32 -> vector<8x256xf32>
    %cst_40 = arith.constant 0.000000e+00 : f32
    %112 = vector.shape_cast %24 : vector<1x256xi1> to vector<1x256xi1>
    %113 = vector.broadcast %112 : vector<1x256xi1> to vector<8x256xi1>
    %114 = vector.broadcast %cst_40 : f32 to vector<8x256xf32>
    %115 = arith.select %113, %111, %114 : vector<8x256xi1>, vector<8x256xf32>
    %c241_i32_41 = arith.constant 241 : i32
    %116 = tpu.dynamic_rotate %90 by %c241_i32_41 dim 1 : vector<8x256xf32>, i32 -> vector<8x256xf32>
    %cst_42 = arith.constant 0.000000e+00 : f32
    %117 = vector.shape_cast %27 : vector<1x256xi1> to vector<1x256xi1>
    %118 = vector.broadcast %117 : vector<1x256xi1> to vector<8x256xi1>
    %119 = vector.broadcast %cst_42 : f32 to vector<8x256xf32>
    %120 = arith.select %118, %116, %119 : vector<8x256xi1>, vector<8x256xf32>
    %c240_i32_43 = arith.constant 240 : i32
    %121 = tpu.dynamic_rotate %90 by %c240_i32_43 dim 1 : vector<8x256xf32>, i32 -> vector<8x256xf32>
    %cst_44 = arith.constant 0.000000e+00 : f32
    %122 = vector.shape_cast %20 : vector<1x256xi1> to vector<1x256xi1>
    %123 = vector.broadcast %122 : vector<1x256xi1> to vector<8x256xi1>
    %124 = vector.broadcast %cst_44 : f32 to vector<8x256xf32>
    %125 = arith.select %123, %121, %124 : vector<8x256xi1>, vector<8x256xf32>
    %c239_i32_45 = arith.constant 239 : i32
    %126 = tpu.dynamic_rotate %90 by %c239_i32_45 dim 1 : vector<8x256xf32>, i32 -> vector<8x256xf32>
    %cst_46 = arith.constant 0.000000e+00 : f32
    %127 = vector.shape_cast %28 : vector<1x256xi1> to vector<1x256xi1>
    %128 = vector.broadcast %127 : vector<1x256xi1> to vector<8x256xi1>
    %129 = vector.broadcast %cst_46 : f32 to vector<8x256xf32>
    %130 = arith.select %128, %126, %129 : vector<8x256xi1>, vector<8x256xf32>
    %131 = tpu.concatenate %95, %100, %105, %110, %90, %115, %120, %125, %130 in 0 : vector<8x256xf32>, vector<8x256xf32>, vector<8x256xf32>, vector<8x256xf32>, vector<8x256xf32>, vector<8x256xf32>, vector<8x256xf32>, vector<8x256xf32>, vector<8x256xf32> -> vector<72x256xf32>
    %cst_47 = arith.constant dense<0.000000e+00> : vector<8x256xf32>
    %132 = tpu.matmul %29, %131, %cst_47 {dimension_numbers = #tpu.dot_dimension_numbers<[1], [0], [0], [1], [0, 0, 1, 1], [], []>, precision = #tpu.contract_precision<fp32>} : vector<8x72xf32>, vector<72x256xf32>, vector<8x256xf32> -> vector<8x256xf32>
    %133 = vector.broadcast %30 : vector<8x1xf32> to vector<8x256xf32>
    %134 = arith.addf %132, %133 : vector<8x256xf32>
    %c1_48 = arith.constant 1 : index
    %c0_49 = arith.constant 0 : index
    %c0_50 = arith.constant 0 : index
    %135 = vector.load %arg4[%c1_48, %c0_49, %c0_50] : memref<2x8x256xf32, #tpu.memory_space<vmem>>, vector<1x8x256xf32>
    %136 = vector.shape_cast %135 : vector<1x8x256xf32> to vector<8x256xf32>
    %137 = vector.shape_cast %134 : vector<8x256xf32> to vector<1x8x256xf32>
    tpu.vector_store %arg4[%c1_48, %c0_49, %c0_50], %137 {strides = array<i32>} : memref<2x8x256xf32, #tpu.memory_space<vmem>>, vector<1x8x256xf32>,
    %cst_51 = arith.constant dense<0.000000e+00> : vector<8xf32>
    %138 = vector.multi_reduction <add>, %134, %cst_51 [1] : vector<8x256xf32> to vector<8xf32>
    %139 = vector.shape_cast %138 : vector<8xf32> to vector<8x1xf32>
    %140 = arith.addf %84, %139 : vector<8x1xf32>
    %141 = arith.mulf %134, %134 : vector<8x256xf32>
    %cst_52 = arith.constant dense<0.000000e+00> : vector<8xf32>
    %142 = vector.multi_reduction <add>, %141, %cst_52 [1] : vector<8x256xf32> to vector<8xf32>
    %143 = vector.shape_cast %142 : vector<8xf32> to vector<8x1xf32>
    %144 = arith.addf %88, %143 : vector<8x1xf32>
    %145 = tpu.iota {dimensions = array<i32: 1>} : vector<8x128xi32>
    %c0_i32_53 = arith.constant 0 : i32
    %146 = vector.broadcast %c0_i32_53 : i32 to vector<8x128xi32>
    %147 = arith.cmpi eq, %145, %146 : vector<8x128xi32>
    %cst_54 = arith.constant 0.000000e+00 : f32
    %148 = vector.shape_cast %140 : vector<8x1xf32> to vector<8x1xf32>
    %149 = vector.broadcast %148 : vector<8x1xf32> to vector<8x128xf32>
    %150 = vector.broadcast %cst_54 : f32 to vector<8x128xf32>
    %151 = arith.select %147, %149, %150 : vector<8x128xi1>, vector<8x128xf32>
    %c1_i32_55 = arith.constant 1 : i32
    %152 = vector.broadcast %c1_i32_55 : i32 to vector<8x128xi32>
    %153 = arith.cmpi eq, %145, %152 : vector<8x128xi32>
    %cst_56 = arith.constant 0.000000e+00 : f32
    %154 = vector.shape_cast %144 : vector<8x1xf32> to vector<8x1xf32>
    %155 = vector.broadcast %154 : vector<8x1xf32> to vector<8x128xf32>
    %156 = vector.broadcast %cst_56 : f32 to vector<8x128xf32>
    %157 = arith.select %153, %155, %156 : vector<8x128xi1>, vector<8x128xf32>
    %158 = arith.addf %151, %157 : vector<8x128xf32>
    %c0_57 = arith.constant 0 : index
    %c0_58 = arith.constant 0 : index
    %c0_59 = arith.constant 0 : index
    %159 = vector.load %arg5[%c0_57, %c0_58, %c0_59] : memref<1x8x128xf32, #tpu.memory_space<vmem>>, vector<1x8x128xf32>
    %160 = vector.shape_cast %159 : vector<1x8x128xf32> to vector<8x128xf32>
    %161 = vector.shape_cast %158 : vector<8x128xf32> to vector<1x8x128xf32>
    tpu.vector_store %arg5[%c0_57, %c0_58, %c0_59], %161 {strides = array<i32>} : memref<1x8x128xf32, #tpu.memory_space<vmem>>, vector<1x8x128xf32>,
    return
  }
  func.func @transform_0(%arg0: i32) -> (i32, i32, i32) {
    %c0_i32 = arith.constant 0 : i32
    %c0_i32_0 = arith.constant 0 : i32
    %c0_i32_1 = arith.constant 0 : i32
    return %arg0, %c0_i32, %c0_i32_0 : i32, i32, i32
  }
  func.func @transform_1(%arg0: i32) -> (i32, i32) {
    %c0_i32 = arith.constant 0 : i32
    %c0_i32_0 = arith.constant 0 : i32
    %c0_i32_1 = arith.constant 0 : i32
    return %c0_i32, %c0_i32_0 : i32, i32
  }
  func.func @transform_2(%arg0: i32) -> (i32, i32) {
    %c0_i32 = arith.constant 0 : i32
    %c0_i32_0 = arith.constant 0 : i32
    %c0_i32_1 = arith.constant 0 : i32
    return %c0_i32, %c0_i32_0 : i32, i32
  }
  func.func @transform_3(%arg0: i32) -> (i32, i32, i32) {
    %c0_i32 = arith.constant 0 : i32
    %c0_i32_0 = arith.constant 0 : i32
    %c0_i32_1 = arith.constant 0 : i32
    return %arg0, %c0_i32, %c0_i32_0 : i32, i32, i32
  }
  func.func @transform_4(%arg0: i32) -> (i32, i32, i32) {
    %c0_i32 = arith.constant 0 : i32
    %c0_i32_0 = arith.constant 0 : i32
    %c0_i32_1 = arith.constant 0 : i32
    return %arg0, %c0_i32, %c0_i32_0 : i32, i32, i32
  }
}

module attributes {stable_mosaic.version = 11 : i64} {
  func.func @_bn_relu_maxpool_kernel(%arg0: i32, %arg1: memref<2x8x256xf32, #tpu.memory_space<vmem>>, %arg2: memref<8x1xf32, #tpu.memory_space<vmem>>, %arg3: memref<8x1xf32, #tpu.memory_space<vmem>>, %arg4: memref<256x64xf32, #tpu.memory_space<vmem>>, %arg5: memref<2x8x64xf32, #tpu.memory_space<vmem>>) attributes {dimension_semantics = [#tpu.dimension_semantics<parallel>], iteration_bounds = array<i64: 2>, scalar_prefetch = 0 : i64, scratch_operands = 0 : i64, tpu.core_type = #tpu.core_type<tc>, window_params = [{transform_indices = @transform_0, window_bounds = array<i64: 2, 8, 256>}, {pipeline_mode = #tpu.pipeline_mode<synchronous>, transform_indices = @transform_1, window_bounds = array<i64: 8, 1>}, {pipeline_mode = #tpu.pipeline_mode<synchronous>, transform_indices = @transform_2, window_bounds = array<i64: 8, 1>}, {pipeline_mode = #tpu.pipeline_mode<synchronous>, transform_indices = @transform_3, window_bounds = array<i64: 256, 64>}, {transform_indices = @transform_4, window_bounds = array<i64: 2, 8, 64>}]} {
    %c0 = arith.constant 0 : index
    %c0_0 = arith.constant 0 : index
    %0 = vector.load %arg4[%c0, %c0_0] : memref<256x64xf32, #tpu.memory_space<vmem>>, vector<256x64xf32>
    %c0_1 = arith.constant 0 : index
    %c0_2 = arith.constant 0 : index
    %1 = vector.load %arg2[%c0_1, %c0_2] : memref<8x1xf32, #tpu.memory_space<vmem>>, vector<8x1xf32>
    %c0_3 = arith.constant 0 : index
    %c0_4 = arith.constant 0 : index
    %2 = vector.load %arg3[%c0_3, %c0_4] : memref<8x1xf32, #tpu.memory_space<vmem>>, vector<8x1xf32>
    %c0_5 = arith.constant 0 : index
    %c0_6 = arith.constant 0 : index
    %c0_7 = arith.constant 0 : index
    %3 = vector.load %arg1[%c0_5, %c0_6, %c0_7] : memref<2x8x256xf32, #tpu.memory_space<vmem>>, vector<1x8x256xf32>
    %4 = vector.shape_cast %3 : vector<1x8x256xf32> to vector<8x256xf32>
    %5 = vector.broadcast %1 : vector<8x1xf32> to vector<8x256xf32>
    %6 = arith.mulf %4, %5 : vector<8x256xf32>
    %7 = vector.broadcast %2 : vector<8x1xf32> to vector<8x256xf32>
    %8 = arith.addf %6, %7 : vector<8x256xf32>
    %cst = arith.constant 0.000000e+00 : f32
    %9 = vector.broadcast %cst : f32 to vector<8x256xf32>
    %10 = arith.maximumf %8, %9 : vector<8x256xf32>
    %c255_i32 = arith.constant 255 : i32
    %11 = tpu.dynamic_rotate %10 by %c255_i32 dim 1 : vector<8x256xf32>, i32 -> vector<8x256xf32>
    %12 = arith.maximumf %10, %11 : vector<8x256xf32>
    %c240_i32 = arith.constant 240 : i32
    %13 = tpu.dynamic_rotate %12 by %c240_i32 dim 1 : vector<8x256xf32>, i32 -> vector<8x256xf32>
    %14 = arith.maximumf %12, %13 : vector<8x256xf32>
    %cst_8 = arith.constant dense<0.000000e+00> : vector<8x64xf32>
    %15 = tpu.matmul %14, %0, %cst_8 {dimension_numbers = #tpu.dot_dimension_numbers<[1], [0], [0], [1], [0, 0, 1, 1], [], []>, precision = #tpu.contract_precision<fp32>} : vector<8x256xf32>, vector<256x64xf32>, vector<8x64xf32> -> vector<8x64xf32>
    %c0_9 = arith.constant 0 : index
    %c0_10 = arith.constant 0 : index
    %c0_11 = arith.constant 0 : index
    %16 = vector.load %arg5[%c0_9, %c0_10, %c0_11] : memref<2x8x64xf32, #tpu.memory_space<vmem>>, vector<1x8x64xf32>
    %17 = vector.shape_cast %16 : vector<1x8x64xf32> to vector<8x64xf32>
    %18 = vector.shape_cast %15 : vector<8x64xf32> to vector<1x8x64xf32>
    tpu.vector_store %arg5[%c0_9, %c0_10, %c0_11], %18 {strides = array<i32>} : memref<2x8x64xf32, #tpu.memory_space<vmem>>, vector<1x8x64xf32>,
    %c1 = arith.constant 1 : index
    %c0_12 = arith.constant 0 : index
    %c0_13 = arith.constant 0 : index
    %19 = vector.load %arg1[%c1, %c0_12, %c0_13] : memref<2x8x256xf32, #tpu.memory_space<vmem>>, vector<1x8x256xf32>
    %20 = vector.shape_cast %19 : vector<1x8x256xf32> to vector<8x256xf32>
    %21 = vector.broadcast %1 : vector<8x1xf32> to vector<8x256xf32>
    %22 = arith.mulf %20, %21 : vector<8x256xf32>
    %23 = vector.broadcast %2 : vector<8x1xf32> to vector<8x256xf32>
    %24 = arith.addf %22, %23 : vector<8x256xf32>
    %cst_14 = arith.constant 0.000000e+00 : f32
    %25 = vector.broadcast %cst_14 : f32 to vector<8x256xf32>
    %26 = arith.maximumf %24, %25 : vector<8x256xf32>
    %c255_i32_15 = arith.constant 255 : i32
    %27 = tpu.dynamic_rotate %26 by %c255_i32_15 dim 1 : vector<8x256xf32>, i32 -> vector<8x256xf32>
    %28 = arith.maximumf %26, %27 : vector<8x256xf32>
    %c240_i32_16 = arith.constant 240 : i32
    %29 = tpu.dynamic_rotate %28 by %c240_i32_16 dim 1 : vector<8x256xf32>, i32 -> vector<8x256xf32>
    %30 = arith.maximumf %28, %29 : vector<8x256xf32>
    %cst_17 = arith.constant dense<0.000000e+00> : vector<8x64xf32>
    %31 = tpu.matmul %30, %0, %cst_17 {dimension_numbers = #tpu.dot_dimension_numbers<[1], [0], [0], [1], [0, 0, 1, 1], [], []>, precision = #tpu.contract_precision<fp32>} : vector<8x256xf32>, vector<256x64xf32>, vector<8x64xf32> -> vector<8x64xf32>
    %c1_18 = arith.constant 1 : index
    %c0_19 = arith.constant 0 : index
    %c0_20 = arith.constant 0 : index
    %32 = vector.load %arg5[%c1_18, %c0_19, %c0_20] : memref<2x8x64xf32, #tpu.memory_space<vmem>>, vector<1x8x64xf32>
    %33 = vector.shape_cast %32 : vector<1x8x64xf32> to vector<8x64xf32>
    %34 = vector.shape_cast %31 : vector<8x64xf32> to vector<1x8x64xf32>
    tpu.vector_store %arg5[%c1_18, %c0_19, %c0_20], %34 {strides = array<i32>} : memref<2x8x64xf32, #tpu.memory_space<vmem>>, vector<1x8x64xf32>,
    return
  }
  func.func @transform_0(%arg0: i32) -> (i32, i32, i32) {
    %c0_i32 = arith.constant 0 : i32
    %c0_i32_0 = arith.constant 0 : i32
    %c0_i32_1 = arith.constant 0 : i32
    return %arg0, %c0_i32, %c0_i32_0 : i32, i32, i32
  }
  func.func @transform_1(%arg0: i32) -> (i32, i32) {
    %c0_i32 = arith.constant 0 : i32
    %c0_i32_0 = arith.constant 0 : i32
    %c0_i32_1 = arith.constant 0 : i32
    return %c0_i32, %c0_i32_0 : i32, i32
  }
  func.func @transform_2(%arg0: i32) -> (i32, i32) {
    %c0_i32 = arith.constant 0 : i32
    %c0_i32_0 = arith.constant 0 : i32
    %c0_i32_1 = arith.constant 0 : i32
    return %c0_i32, %c0_i32_0 : i32, i32
  }
  func.func @transform_3(%arg0: i32) -> (i32, i32) {
    %c0_i32 = arith.constant 0 : i32
    %c0_i32_0 = arith.constant 0 : i32
    %c0_i32_1 = arith.constant 0 : i32
    return %c0_i32, %c0_i32_0 : i32, i32
  }
  func.func @transform_4(%arg0: i32) -> (i32, i32, i32) {
    %c0_i32 = arith.constant 0 : i32
    %c0_i32_0 = arith.constant 0 : i32
    %c0_i32_1 = arith.constant 0 : i32
    return %arg0, %c0_i32, %c0_i32_0 : i32, i32, i32
  }
}

module attributes {stable_mosaic.version = 11 : i64} {
  func.func @_conv3x3_kernel(%arg0: i32, %arg1: memref<2x8x256xf32, #tpu.memory_space<vmem>>, %arg2: memref<8x72xf32, #tpu.memory_space<vmem>>, %arg3: memref<8x1xf32, #tpu.memory_space<vmem>>, %arg4: memref<8x1xf32, #tpu.memory_space<vmem>>, %arg5: memref<8x1xf32, #tpu.memory_space<vmem>>, %arg6: memref<2x8x256xf32, #tpu.memory_space<vmem>>, %arg7: memref<1x8x128xf32, #tpu.memory_space<vmem>>) attributes {dimension_semantics = [#tpu.dimension_semantics<parallel>], iteration_bounds = array<i64: 2>, scalar_prefetch = 0 : i64, scratch_operands = 0 : i64, tpu.core_type = #tpu.core_type<tc>, window_params = [{transform_indices = @transform_0, window_bounds = array<i64: 2, 8, 256>}, {pipeline_mode = #tpu.pipeline_mode<synchronous>, transform_indices = @transform_1, window_bounds = array<i64: 8, 72>}, {pipeline_mode = #tpu.pipeline_mode<synchronous>, transform_indices = @transform_2, window_bounds = array<i64: 8, 1>}, {pipeline_mode = #tpu.pipeline_mode<synchronous>, transform_indices = @transform_3, window_bounds = array<i64: 8, 1>}, {pipeline_mode = #tpu.pipeline_mode<synchronous>, transform_indices = @transform_4, window_bounds = array<i64: 8, 1>}, {transform_indices = @transform_5, window_bounds = array<i64: 2, 8, 256>}, {transform_indices = @transform_6, window_bounds = array<i64: 1, 8, 128>}]} {
    %0 = tpu.iota {dimensions = array<i32: 1>} : vector<1x256xi32>
    %c16_i32 = arith.constant 16 : i32
    %c0_i32 = arith.constant 0 : i32
    %1 = arith.cmpi eq, %c16_i32, %c0_i32 : i32
    %c1_i32 = arith.constant 1 : i32
    %2 = arith.select %1, %c1_i32, %c16_i32 : i32
    %3 = vector.broadcast %2 : i32 to vector<1x256xi32>
    %4 = arith.remsi %0, %3 : vector<1x256xi32>
    %c0_i32_0 = arith.constant 0 : i32
    %5 = vector.broadcast %c0_i32_0 : i32 to vector<1x256xi32>
    %6 = arith.cmpi ne, %4, %5 : vector<1x256xi32>
    %c0_i32_1 = arith.constant 0 : i32
    %7 = vector.broadcast %c0_i32_1 : i32 to vector<1x256xi32>
    %8 = arith.cmpi slt, %4, %7 : vector<1x256xi32>
    %c0_i32_2 = arith.constant 0 : i32
    %9 = arith.cmpi slt, %2, %c0_i32_2 : i32
    %10 = vector.broadcast %9 : i1 to vector<1x256xi1>
    %11 = vector.broadcast %10 : vector<1x256xi1> to vector<1x256xi1>
    %12 = arith.xori %8, %11 : vector<1x256xi1>
    %13 = arith.andi %12, %6 : vector<1x256xi1>
    %14 = vector.broadcast %2 : i32 to vector<1x256xi32>
    %15 = arith.addi %4, %14 : vector<1x256xi32>
    %16 = arith.select %13, %15, %4 : vector<1x256xi1>, vector<1x256xi32>
    %c16_i32_3 = arith.constant 16 : i32
    %17 = vector.broadcast %c16_i32_3 : i32 to vector<1x256xi32>
    %18 = arith.cmpi sge, %0, %17 : vector<1x256xi32>
    %c240_i32 = arith.constant 240 : i32
    %19 = vector.broadcast %c240_i32 : i32 to vector<1x256xi32>
    %20 = arith.cmpi slt, %0, %19 : vector<1x256xi32>
    %c1_i32_4 = arith.constant 1 : i32
    %21 = vector.broadcast %c1_i32_4 : i32 to vector<1x256xi32>
    %22 = arith.cmpi sge, %16, %21 : vector<1x256xi32>
    %c14_i32 = arith.constant 14 : i32
    %23 = vector.broadcast %c14_i32 : i32 to vector<1x256xi32>
    %24 = arith.cmpi sle, %16, %23 : vector<1x256xi32>
    %25 = arith.andi %18, %22 : vector<1x256xi1>
    %26 = arith.andi %18, %24 : vector<1x256xi1>
    %27 = arith.andi %20, %22 : vector<1x256xi1>
    %28 = arith.andi %20, %24 : vector<1x256xi1>
    %c0 = arith.constant 0 : index
    %c0_5 = arith.constant 0 : index
    %29 = vector.load %arg2[%c0, %c0_5] : memref<8x72xf32, #tpu.memory_space<vmem>>, vector<8x72xf32>
    %c0_6 = arith.constant 0 : index
    %c0_7 = arith.constant 0 : index
    %30 = vector.load %arg3[%c0_6, %c0_7] : memref<8x1xf32, #tpu.memory_space<vmem>>, vector<8x1xf32>
    %cst = arith.constant 0.000000e+00 : f32
    %31 = vector.broadcast %cst : f32 to vector<8x1xf32>
    %cst_8 = arith.constant 0.000000e+00 : f32
    %32 = vector.broadcast %cst_8 : f32 to vector<8x1xf32>
    %c0_9 = arith.constant 0 : index
    %c0_10 = arith.constant 0 : index
    %c0_11 = arith.constant 0 : index
    %33 = vector.load %arg1[%c0_9, %c0_10, %c0_11] : memref<2x8x256xf32, #tpu.memory_space<vmem>>, vector<1x8x256xf32>
    %34 = vector.shape_cast %33 : vector<1x8x256xf32> to vector<8x256xf32>
    %c0_12 = arith.constant 0 : index
    %c0_13 = arith.constant 0 : index
    %35 = vector.load %arg4[%c0_12, %c0_13] : memref<8x1xf32, #tpu.memory_space<vmem>>, vector<8x1xf32>
    %36 = vector.broadcast %35 : vector<8x1xf32> to vector<8x256xf32>
    %37 = arith.mulf %34, %36 : vector<8x256xf32>
    %c0_14 = arith.constant 0 : index
    %c0_15 = arith.constant 0 : index
    %38 = vector.load %arg5[%c0_14, %c0_15] : memref<8x1xf32, #tpu.memory_space<vmem>>, vector<8x1xf32>
    %39 = vector.broadcast %38 : vector<8x1xf32> to vector<8x256xf32>
    %40 = arith.addf %37, %39 : vector<8x256xf32>
    %cst_16 = arith.constant 0.000000e+00 : f32
    %41 = vector.broadcast %cst_16 : f32 to vector<8x256xf32>
    %42 = arith.maximumf %40, %41 : vector<8x256xf32>
    %c17_i32 = arith.constant 17 : i32
    %43 = tpu.dynamic_rotate %42 by %c17_i32 dim 1 : vector<8x256xf32>, i32 -> vector<8x256xf32>
    %cst_17 = arith.constant 0.000000e+00 : f32
    %44 = vector.shape_cast %25 : vector<1x256xi1> to vector<1x256xi1>
    %45 = vector.broadcast %44 : vector<1x256xi1> to vector<8x256xi1>
    %46 = vector.broadcast %cst_17 : f32 to vector<8x256xf32>
    %47 = arith.select %45, %43, %46 : vector<8x256xi1>, vector<8x256xf32>
    %c16_i32_18 = arith.constant 16 : i32
    %48 = tpu.dynamic_rotate %42 by %c16_i32_18 dim 1 : vector<8x256xf32>, i32 -> vector<8x256xf32>
    %cst_19 = arith.constant 0.000000e+00 : f32
    %49 = vector.shape_cast %18 : vector<1x256xi1> to vector<1x256xi1>
    %50 = vector.broadcast %49 : vector<1x256xi1> to vector<8x256xi1>
    %51 = vector.broadcast %cst_19 : f32 to vector<8x256xf32>
    %52 = arith.select %50, %48, %51 : vector<8x256xi1>, vector<8x256xf32>
    %c15_i32 = arith.constant 15 : i32
    %53 = tpu.dynamic_rotate %42 by %c15_i32 dim 1 : vector<8x256xf32>, i32 -> vector<8x256xf32>
    %cst_20 = arith.constant 0.000000e+00 : f32
    %54 = vector.shape_cast %26 : vector<1x256xi1> to vector<1x256xi1>
    %55 = vector.broadcast %54 : vector<1x256xi1> to vector<8x256xi1>
    %56 = vector.broadcast %cst_20 : f32 to vector<8x256xf32>
    %57 = arith.select %55, %53, %56 : vector<8x256xi1>, vector<8x256xf32>
    %c1_i32_21 = arith.constant 1 : i32
    %58 = tpu.dynamic_rotate %42 by %c1_i32_21 dim 1 : vector<8x256xf32>, i32 -> vector<8x256xf32>
    %cst_22 = arith.constant 0.000000e+00 : f32
    %59 = vector.shape_cast %22 : vector<1x256xi1> to vector<1x256xi1>
    %60 = vector.broadcast %59 : vector<1x256xi1> to vector<8x256xi1>
    %61 = vector.broadcast %cst_22 : f32 to vector<8x256xf32>
    %62 = arith.select %60, %58, %61 : vector<8x256xi1>, vector<8x256xf32>
    %c255_i32 = arith.constant 255 : i32
    %63 = tpu.dynamic_rotate %42 by %c255_i32 dim 1 : vector<8x256xf32>, i32 -> vector<8x256xf32>
    %cst_23 = arith.constant 0.000000e+00 : f32
    %64 = vector.shape_cast %24 : vector<1x256xi1> to vector<1x256xi1>
    %65 = vector.broadcast %64 : vector<1x256xi1> to vector<8x256xi1>
    %66 = vector.broadcast %cst_23 : f32 to vector<8x256xf32>
    %67 = arith.select %65, %63, %66 : vector<8x256xi1>, vector<8x256xf32>
    %c241_i32 = arith.constant 241 : i32
    %68 = tpu.dynamic_rotate %42 by %c241_i32 dim 1 : vector<8x256xf32>, i32 -> vector<8x256xf32>
    %cst_24 = arith.constant 0.000000e+00 : f32
    %69 = vector.shape_cast %27 : vector<1x256xi1> to vector<1x256xi1>
    %70 = vector.broadcast %69 : vector<1x256xi1> to vector<8x256xi1>
    %71 = vector.broadcast %cst_24 : f32 to vector<8x256xf32>
    %72 = arith.select %70, %68, %71 : vector<8x256xi1>, vector<8x256xf32>
    %c240_i32_25 = arith.constant 240 : i32
    %73 = tpu.dynamic_rotate %42 by %c240_i32_25 dim 1 : vector<8x256xf32>, i32 -> vector<8x256xf32>
    %cst_26 = arith.constant 0.000000e+00 : f32
    %74 = vector.shape_cast %20 : vector<1x256xi1> to vector<1x256xi1>
    %75 = vector.broadcast %74 : vector<1x256xi1> to vector<8x256xi1>
    %76 = vector.broadcast %cst_26 : f32 to vector<8x256xf32>
    %77 = arith.select %75, %73, %76 : vector<8x256xi1>, vector<8x256xf32>
    %c239_i32 = arith.constant 239 : i32
    %78 = tpu.dynamic_rotate %42 by %c239_i32 dim 1 : vector<8x256xf32>, i32 -> vector<8x256xf32>
    %cst_27 = arith.constant 0.000000e+00 : f32
    %79 = vector.shape_cast %28 : vector<1x256xi1> to vector<1x256xi1>
    %80 = vector.broadcast %79 : vector<1x256xi1> to vector<8x256xi1>
    %81 = vector.broadcast %cst_27 : f32 to vector<8x256xf32>
    %82 = arith.select %80, %78, %81 : vector<8x256xi1>, vector<8x256xf32>
    %83 = tpu.concatenate %47, %52, %57, %62, %42, %67, %72, %77, %82 in 0 : vector<8x256xf32>, vector<8x256xf32>, vector<8x256xf32>, vector<8x256xf32>, vector<8x256xf32>, vector<8x256xf32>, vector<8x256xf32>, vector<8x256xf32>, vector<8x256xf32> -> vector<72x256xf32>
    %cst_28 = arith.constant dense<0.000000e+00> : vector<8x256xf32>
    %84 = tpu.matmul %29, %83, %cst_28 {dimension_numbers = #tpu.dot_dimension_numbers<[1], [0], [0], [1], [0, 0, 1, 1], [], []>, precision = #tpu.contract_precision<fp32>} : vector<8x72xf32>, vector<72x256xf32>, vector<8x256xf32> -> vector<8x256xf32>
    %85 = vector.broadcast %30 : vector<8x1xf32> to vector<8x256xf32>
    %86 = arith.addf %84, %85 : vector<8x256xf32>
    %c0_29 = arith.constant 0 : index
    %c0_30 = arith.constant 0 : index
    %c0_31 = arith.constant 0 : index
    %87 = vector.load %arg6[%c0_29, %c0_30, %c0_31] : memref<2x8x256xf32, #tpu.memory_space<vmem>>, vector<1x8x256xf32>
    %88 = vector.shape_cast %87 : vector<1x8x256xf32> to vector<8x256xf32>
    %89 = vector.shape_cast %86 : vector<8x256xf32> to vector<1x8x256xf32>
    tpu.vector_store %arg6[%c0_29, %c0_30, %c0_31], %89 {strides = array<i32>} : memref<2x8x256xf32, #tpu.memory_space<vmem>>, vector<1x8x256xf32>,
    %cst_32 = arith.constant dense<0.000000e+00> : vector<8xf32>
    %90 = vector.multi_reduction <add>, %86, %cst_32 [1] : vector<8x256xf32> to vector<8xf32>
    %91 = vector.shape_cast %90 : vector<8xf32> to vector<8x1xf32>
    %92 = arith.addf %31, %91 : vector<8x1xf32>
    %93 = arith.mulf %86, %86 : vector<8x256xf32>
    %cst_33 = arith.constant dense<0.000000e+00> : vector<8xf32>
    %94 = vector.multi_reduction <add>, %93, %cst_33 [1] : vector<8x256xf32> to vector<8xf32>
    %95 = vector.shape_cast %94 : vector<8xf32> to vector<8x1xf32>
    %96 = arith.addf %32, %95 : vector<8x1xf32>
    %c1 = arith.constant 1 : index
    %c0_34 = arith.constant 0 : index
    %c0_35 = arith.constant 0 : index
    %97 = vector.load %arg1[%c1, %c0_34, %c0_35] : memref<2x8x256xf32, #tpu.memory_space<vmem>>, vector<1x8x256xf32>
    %98 = vector.shape_cast %97 : vector<1x8x256xf32> to vector<8x256xf32>
    %c0_36 = arith.constant 0 : index
    %c0_37 = arith.constant 0 : index
    %99 = vector.load %arg4[%c0_36, %c0_37] : memref<8x1xf32, #tpu.memory_space<vmem>>, vector<8x1xf32>
    %100 = vector.broadcast %99 : vector<8x1xf32> to vector<8x256xf32>
    %101 = arith.mulf %98, %100 : vector<8x256xf32>
    %c0_38 = arith.constant 0 : index
    %c0_39 = arith.constant 0 : index
    %102 = vector.load %arg5[%c0_38, %c0_39] : memref<8x1xf32, #tpu.memory_space<vmem>>, vector<8x1xf32>
    %103 = vector.broadcast %102 : vector<8x1xf32> to vector<8x256xf32>
    %104 = arith.addf %101, %103 : vector<8x256xf32>
    %cst_40 = arith.constant 0.000000e+00 : f32
    %105 = vector.broadcast %cst_40 : f32 to vector<8x256xf32>
    %106 = arith.maximumf %104, %105 : vector<8x256xf32>
    %c17_i32_41 = arith.constant 17 : i32
    %107 = tpu.dynamic_rotate %106 by %c17_i32_41 dim 1 : vector<8x256xf32>, i32 -> vector<8x256xf32>
    %cst_42 = arith.constant 0.000000e+00 : f32
    %108 = vector.shape_cast %25 : vector<1x256xi1> to vector<1x256xi1>
    %109 = vector.broadcast %108 : vector<1x256xi1> to vector<8x256xi1>
    %110 = vector.broadcast %cst_42 : f32 to vector<8x256xf32>
    %111 = arith.select %109, %107, %110 : vector<8x256xi1>, vector<8x256xf32>
    %c16_i32_43 = arith.constant 16 : i32
    %112 = tpu.dynamic_rotate %106 by %c16_i32_43 dim 1 : vector<8x256xf32>, i32 -> vector<8x256xf32>
    %cst_44 = arith.constant 0.000000e+00 : f32
    %113 = vector.shape_cast %18 : vector<1x256xi1> to vector<1x256xi1>
    %114 = vector.broadcast %113 : vector<1x256xi1> to vector<8x256xi1>
    %115 = vector.broadcast %cst_44 : f32 to vector<8x256xf32>
    %116 = arith.select %114, %112, %115 : vector<8x256xi1>, vector<8x256xf32>
    %c15_i32_45 = arith.constant 15 : i32
    %117 = tpu.dynamic_rotate %106 by %c15_i32_45 dim 1 : vector<8x256xf32>, i32 -> vector<8x256xf32>
    %cst_46 = arith.constant 0.000000e+00 : f32
    %118 = vector.shape_cast %26 : vector<1x256xi1> to vector<1x256xi1>
    %119 = vector.broadcast %118 : vector<1x256xi1> to vector<8x256xi1>
    %120 = vector.broadcast %cst_46 : f32 to vector<8x256xf32>
    %121 = arith.select %119, %117, %120 : vector<8x256xi1>, vector<8x256xf32>
    %c1_i32_47 = arith.constant 1 : i32
    %122 = tpu.dynamic_rotate %106 by %c1_i32_47 dim 1 : vector<8x256xf32>, i32 -> vector<8x256xf32>
    %cst_48 = arith.constant 0.000000e+00 : f32
    %123 = vector.shape_cast %22 : vector<1x256xi1> to vector<1x256xi1>
    %124 = vector.broadcast %123 : vector<1x256xi1> to vector<8x256xi1>
    %125 = vector.broadcast %cst_48 : f32 to vector<8x256xf32>
    %126 = arith.select %124, %122, %125 : vector<8x256xi1>, vector<8x256xf32>
    %c255_i32_49 = arith.constant 255 : i32
    %127 = tpu.dynamic_rotate %106 by %c255_i32_49 dim 1 : vector<8x256xf32>, i32 -> vector<8x256xf32>
    %cst_50 = arith.constant 0.000000e+00 : f32
    %128 = vector.shape_cast %24 : vector<1x256xi1> to vector<1x256xi1>
    %129 = vector.broadcast %128 : vector<1x256xi1> to vector<8x256xi1>
    %130 = vector.broadcast %cst_50 : f32 to vector<8x256xf32>
    %131 = arith.select %129, %127, %130 : vector<8x256xi1>, vector<8x256xf32>
    %c241_i32_51 = arith.constant 241 : i32
    %132 = tpu.dynamic_rotate %106 by %c241_i32_51 dim 1 : vector<8x256xf32>, i32 -> vector<8x256xf32>
    %cst_52 = arith.constant 0.000000e+00 : f32
    %133 = vector.shape_cast %27 : vector<1x256xi1> to vector<1x256xi1>
    %134 = vector.broadcast %133 : vector<1x256xi1> to vector<8x256xi1>
    %135 = vector.broadcast %cst_52 : f32 to vector<8x256xf32>
    %136 = arith.select %134, %132, %135 : vector<8x256xi1>, vector<8x256xf32>
    %c240_i32_53 = arith.constant 240 : i32
    %137 = tpu.dynamic_rotate %106 by %c240_i32_53 dim 1 : vector<8x256xf32>, i32 -> vector<8x256xf32>
    %cst_54 = arith.constant 0.000000e+00 : f32
    %138 = vector.shape_cast %20 : vector<1x256xi1> to vector<1x256xi1>
    %139 = vector.broadcast %138 : vector<1x256xi1> to vector<8x256xi1>
    %140 = vector.broadcast %cst_54 : f32 to vector<8x256xf32>
    %141 = arith.select %139, %137, %140 : vector<8x256xi1>, vector<8x256xf32>
    %c239_i32_55 = arith.constant 239 : i32
    %142 = tpu.dynamic_rotate %106 by %c239_i32_55 dim 1 : vector<8x256xf32>, i32 -> vector<8x256xf32>
    %cst_56 = arith.constant 0.000000e+00 : f32
    %143 = vector.shape_cast %28 : vector<1x256xi1> to vector<1x256xi1>
    %144 = vector.broadcast %143 : vector<1x256xi1> to vector<8x256xi1>
    %145 = vector.broadcast %cst_56 : f32 to vector<8x256xf32>
    %146 = arith.select %144, %142, %145 : vector<8x256xi1>, vector<8x256xf32>
    %147 = tpu.concatenate %111, %116, %121, %126, %106, %131, %136, %141, %146 in 0 : vector<8x256xf32>, vector<8x256xf32>, vector<8x256xf32>, vector<8x256xf32>, vector<8x256xf32>, vector<8x256xf32>, vector<8x256xf32>, vector<8x256xf32>, vector<8x256xf32> -> vector<72x256xf32>
    %cst_57 = arith.constant dense<0.000000e+00> : vector<8x256xf32>
    %148 = tpu.matmul %29, %147, %cst_57 {dimension_numbers = #tpu.dot_dimension_numbers<[1], [0], [0], [1], [0, 0, 1, 1], [], []>, precision = #tpu.contract_precision<fp32>} : vector<8x72xf32>, vector<72x256xf32>, vector<8x256xf32> -> vector<8x256xf32>
    %149 = vector.broadcast %30 : vector<8x1xf32> to vector<8x256xf32>
    %150 = arith.addf %148, %149 : vector<8x256xf32>
    %c1_58 = arith.constant 1 : index
    %c0_59 = arith.constant 0 : index
    %c0_60 = arith.constant 0 : index
    %151 = vector.load %arg6[%c1_58, %c0_59, %c0_60] : memref<2x8x256xf32, #tpu.memory_space<vmem>>, vector<1x8x256xf32>
    %152 = vector.shape_cast %151 : vector<1x8x256xf32> to vector<8x256xf32>
    %153 = vector.shape_cast %150 : vector<8x256xf32> to vector<1x8x256xf32>
    tpu.vector_store %arg6[%c1_58, %c0_59, %c0_60], %153 {strides = array<i32>} : memref<2x8x256xf32, #tpu.memory_space<vmem>>, vector<1x8x256xf32>,
    %cst_61 = arith.constant dense<0.000000e+00> : vector<8xf32>
    %154 = vector.multi_reduction <add>, %150, %cst_61 [1] : vector<8x256xf32> to vector<8xf32>
    %155 = vector.shape_cast %154 : vector<8xf32> to vector<8x1xf32>
    %156 = arith.addf %92, %155 : vector<8x1xf32>
    %157 = arith.mulf %150, %150 : vector<8x256xf32>
    %cst_62 = arith.constant dense<0.000000e+00> : vector<8xf32>
    %158 = vector.multi_reduction <add>, %157, %cst_62 [1] : vector<8x256xf32> to vector<8xf32>
    %159 = vector.shape_cast %158 : vector<8xf32> to vector<8x1xf32>
    %160 = arith.addf %96, %159 : vector<8x1xf32>
    %161 = tpu.iota {dimensions = array<i32: 1>} : vector<8x128xi32>
    %c0_i32_63 = arith.constant 0 : i32
    %162 = vector.broadcast %c0_i32_63 : i32 to vector<8x128xi32>
    %163 = arith.cmpi eq, %161, %162 : vector<8x128xi32>
    %cst_64 = arith.constant 0.000000e+00 : f32
    %164 = vector.shape_cast %156 : vector<8x1xf32> to vector<8x1xf32>
    %165 = vector.broadcast %164 : vector<8x1xf32> to vector<8x128xf32>
    %166 = vector.broadcast %cst_64 : f32 to vector<8x128xf32>
    %167 = arith.select %163, %165, %166 : vector<8x128xi1>, vector<8x128xf32>
    %c1_i32_65 = arith.constant 1 : i32
    %168 = vector.broadcast %c1_i32_65 : i32 to vector<8x128xi32>
    %169 = arith.cmpi eq, %161, %168 : vector<8x128xi32>
    %cst_66 = arith.constant 0.000000e+00 : f32
    %170 = vector.shape_cast %160 : vector<8x1xf32> to vector<8x1xf32>
    %171 = vector.broadcast %170 : vector<8x1xf32> to vector<8x128xf32>
    %172 = vector.broadcast %cst_66 : f32 to vector<8x128xf32>
    %173 = arith.select %169, %171, %172 : vector<8x128xi1>, vector<8x128xf32>
    %174 = arith.addf %167, %173 : vector<8x128xf32>
    %c0_67 = arith.constant 0 : index
    %c0_68 = arith.constant 0 : index
    %c0_69 = arith.constant 0 : index
    %175 = vector.load %arg7[%c0_67, %c0_68, %c0_69] : memref<1x8x128xf32, #tpu.memory_space<vmem>>, vector<1x8x128xf32>
    %176 = vector.shape_cast %175 : vector<1x8x128xf32> to vector<8x128xf32>
    %177 = vector.shape_cast %174 : vector<8x128xf32> to vector<1x8x128xf32>
    tpu.vector_store %arg7[%c0_67, %c0_68, %c0_69], %177 {strides = array<i32>} : memref<1x8x128xf32, #tpu.memory_space<vmem>>, vector<1x8x128xf32>,
    return
  }
  func.func @transform_0(%arg0: i32) -> (i32, i32, i32) {
    %c0_i32 = arith.constant 0 : i32
    %c0_i32_0 = arith.constant 0 : i32
    %c0_i32_1 = arith.constant 0 : i32
    return %arg0, %c0_i32, %c0_i32_0 : i32, i32, i32
  }
  func.func @transform_1(%arg0: i32) -> (i32, i32) {
    %c0_i32 = arith.constant 0 : i32
    %c0_i32_0 = arith.constant 0 : i32
    %c0_i32_1 = arith.constant 0 : i32
    return %c0_i32, %c0_i32_0 : i32, i32
  }
  func.func @transform_2(%arg0: i32) -> (i32, i32) {
    %c0_i32 = arith.constant 0 : i32
    %c0_i32_0 = arith.constant 0 : i32
    %c0_i32_1 = arith.constant 0 : i32
    return %c0_i32, %c0_i32_0 : i32, i32
  }
  func.func @transform_3(%arg0: i32) -> (i32, i32) {
    %c0_i32 = arith.constant 0 : i32
    %c0_i32_0 = arith.constant 0 : i32
    %c0_i32_1 = arith.constant 0 : i32
    return %c0_i32, %c0_i32_0 : i32, i32
  }
  func.func @transform_4(%arg0: i32) -> (i32, i32) {
    %c0_i32 = arith.constant 0 : i32
    %c0_i32_0 = arith.constant 0 : i32
    %c0_i32_1 = arith.constant 0 : i32
    return %c0_i32, %c0_i32_0 : i32, i32
  }
  func.func @transform_5(%arg0: i32) -> (i32, i32, i32) {
    %c0_i32 = arith.constant 0 : i32
    %c0_i32_0 = arith.constant 0 : i32
    %c0_i32_1 = arith.constant 0 : i32
    return %arg0, %c0_i32, %c0_i32_0 : i32, i32, i32
  }
  func.func @transform_6(%arg0: i32) -> (i32, i32, i32) {
    %c0_i32 = arith.constant 0 : i32
    %c0_i32_0 = arith.constant 0 : i32
    %c0_i32_1 = arith.constant 0 : i32
    return %arg0, %c0_i32, %c0_i32_0 : i32, i32, i32
  }
}

</mosaic_0001>

<bundles_post_ra>
// kernel: conv_block_downsample_forward.5
= control target key start
LH: loop header
LB: loop body
LE: loop exit
PB: predicated region body
PF: predicated region fallthrough
CT: control target
= control target key end

     0   :  { %s2569_s15 = smov 0   ;;  %s3566_s0 = inlined_call_operand.vmem [shape: f32[4,8,256], index: 0, kind: input, shape index: {}]   ;;  %s3567_s1 = inlined_call_operand.vmem [shape: f32[8,1], index: 1, kind: input, shape index: {}]   ;;  %s3568_s2 = inlined_call_operand.vmem [shape: f32[8,1], index: 2, kind: input, shape index: {}]   ;;  %s3569_s3 = inlined_call_operand.vmem [shape: f32[256,64], index: 3, kind: input, shape index: {}]   ;;  %s3570_s4 = inlined_call_operand.vmem [shape: f32[4,8,64], index: 4, kind: output, shape index: {}]  }
   0x1 LB: > { %s2085_s16 = sadd.s32 4294967295, %s2539_s15   ;;  %p2089_p0 = scmp.ge.s32.totalorder %s2539_s15, 1  ;;  %s2539_s15 = sphi %s2569_s15, %s14_s15  }
   0x2   : > { %p164_p1 = scmp.lt.s32.totalorder %s2539_s15, 3 }
   0x4   : > { %p165_p2 = pnand %p2089_p0, %p164_p1 }
   0x6   : > { %168 = sbr.rel (%p165_p2) target bundleno = 787 (0x313), region = 36 }
   0xb   : > { %v236_v0 = vld [vmem:[%s3567_s1] sm:$0xff]  ;;  %v2541_v1 = vmov 0   ;;  %s2090_s21 = sshll.u32 %s2085_s16, 1  ;;  %v235_v16 = vld [vmem:[%s3569_s3 + $0xf8] sm:$0xff]  ;;  %v234_v21 = vld [vmem:[%s3569_s3 + $0xf0] sm:$0xff]  ;;  %s2542_s10 = smov 127  }
   0xc   : > { %2532 = vset.pattern.permute.xlu0 %v2541_v1  ;;  %v237_v2 = vld [vmem:[%s3568_s2] sm:$0xff]  ;;  %p192_p3 = scmp.lt.s32.totalorder %s2090_s21, 3  ;;  %v219_v17 = vld [vmem:[%s3569_s3 + $0x78] sm:$0xff]  ;;  %v2609_v19 = vand.u32 4294901760, %v235_v16  ;;  %v218_v22 = vld [vmem:[%s3569_s3 + $0x70] sm:$0xff]  ;;  %v2625_v24 = vand.u32 4294901760, %v234_v21 }
   0xd   : > { %242 = vperm.xlu0 %2532, %v236_v0   ;;  %v2611_v20 = vand.u32 4294901760, %v219_v17  ;;  %v233_v23 = vld [vmem:[%s3569_s3 + $0xe8] sm:$0xff]  ;;  %v2627_v25 = vand.u32 4294901760, %v218_v22  ;;  %v232_v28 = vld [vmem:[%s3569_s3 + $0xe0] sm:$0xff]  ;;  %v231_v54 = vld [vmem:[%s3569_s3 + $0xd8] sm:$0xff]  ;;  %s2543_s20 = smov 112  }
   0xe   : > { %s3925_s21 = smov (!%p192_p3, %s2090_s21), 3  ;;  %v2629_v26 = vand.u32 4294901760, %v233_v23  ;;  %v217_v27 = vld [vmem:[%s3569_s3 + $0x68] sm:$0xff]  ;;  %v216_v29 = vld [vmem:[%s3569_s3 + $0x60] sm:$0xff]  ;;  %v2641_v30 = vsub.f32 %v235_v16, %v2609_v19  ;;  %v2648_v33 = vand.u32 4294901760, %v232_v28  ;;  %2101 = vmatprep.subr.mxu0 %v2609_v19  ;;  %v2652_v34 = vsub.f32 %v234_v21, %v2625_v24  ;;  %v215_v55 = vld [vmem:[%s3569_s3 + $0x58] sm:$0xff] }
   0xf   : > { %s2100_s22 = sshll.u32 %s3925_s21, 4  ;;  %v2644_v31 = vsub.f32 %v219_v17, %v2611_v20  ;;  %v2646_v32 = vand.u32 4294901760, %v217_v27  ;;  %v2655_v35 = vsub.f32 %v218_v22, %v2627_v25  ;;  %v2660_v37 = vand.u32 4294901760, %v216_v29  ;;  %2102 = vmatpush3.msra.mxu0 %v2611_v20  ;;  %v230_v60 = vld [vmem:[%s3569_s3 + $0xd0] sm:$0xff]  ;;  %v229_v62 = vld [vmem:[%s3569_s3 + $0xc8] sm:$0xff] }
  0x10   : > { %s196_s25 = scalar_lea.vmem %s3566_s0, %s2100_s22  ;;  %3709 = vst [vmem:[#allocation2_spill] sm:$0xff] %v2641_v30  ;;  %v2658_v36 = vsub.f32 %v233_v23, %v2629_v26  ;;  %v2664_v38 = vand.u32 4294901760, %v2641_v30  ;;  %v2673_v41 = vsub.f32 %v232_v28, %v2648_v33  ;;  %2103 = vmatprep.subr.mxu0 %v2625_v24  ;;  %v2680_v42 = vand.u32 4294901760, %v2652_v34  ;;  %v214_v61 = vld [vmem:[%s3569_s3 + $0x50] sm:$0xff] }
  0x11   : > { %249 = vperm.xlu0 %2532, %v237_v2   ;;  %v2095_v3 = vld [vmem:[%s196_s25 + $0x10] sm:$0xff]  ;;  %v2096_v4 = vld [vmem:[%s196_s25 + $0x18] sm:$0xff]  ;;  %v239_v6 = vld [vmem:[%s196_s25 + $0x8] sm:$0xff]  ;;  %v2667_v39 = vand.u32 4294901760, %v2644_v31  ;;  %v2670_v40 = vsub.f32 %v217_v27, %v2646_v32  ;;  %v2683_v43 = vand.u32 4294901760, %v2655_v35  ;;  %v2689_v45 = vsub.f32 %v216_v29, %v2660_v37  ;;  %2104 = vmatpush3.msra.mxu0 %v2627_v25 }
  0x12   : > { %v238_v7 = vld [vmem:[%s196_s25] sm:$0xff]  ;;  %3710 = vst [vmem:[#allocation3_spill] sm:$0xff] %v2664_v38  ;;  %3712 = vst [vmem:[#allocation5_spill] sm:$0xff] %v2680_v42  ;;  %v2686_v44 = vand.u32 4294901760, %v2658_v36  ;;  %v504_v46 = vsub.f32 %v2641_v30, %v2664_v38  ;;  %v2700_v49 = vand.u32 4294901760, %v2673_v41  ;;  %2105 = vmatprep.subr.mxu0 %v2629_v26  ;;  %v511_v50 = vsub.f32 %v2652_v34, %v2680_v42 }
  0x13   : > { %3711 = vst [vmem:[#allocation4_spill] sm:$0xff] %v2667_v39  ;;  %3713 = vst [vmem:[#allocation6_spill] sm:$0xff] %v2683_v43  ;;  %v392_v47 = vsub.f32 %v2644_v31, %v2667_v39  ;;  %v2697_v48 = vand.u32 4294901760, %v2670_v40  ;;  %v399_v51 = vsub.f32 %v2655_v35, %v2683_v43  ;;  %v2710_v53 = vand.u32 4294901760, %v2689_v45  ;;  %2106 = vmatpush3.msra.mxu0 %v2646_v32 }
  0x14   : > { %3714 = vst [vmem:[#allocation7_spill] sm:$0xff] %v2686_v44  ;;  %3716 = vst [vmem:[#allocation9_spill] sm:$0xff] %v2700_v49  ;;  %v518_v52 = vsub.f32 %v2658_v36, %v2686_v44  ;;  %v2719_v56 = vand.u32 4294901760, %v504_v46  ;;  %v525_v59 = vsub.f32 %v2673_v41, %v2700_v49  ;;  %2107 = vmatprep.subr.mxu0 %v2648_v33  ;;  %v2737_v63 = vand.u32 4294901760, %v511_v50 }
  0x15   : > { %3715 = vst [vmem:[#allocation8_spill] sm:$0xff] %v2697_v48  ;;  %3717 = vst [vmem:[#allocation10_spill] sm:$0xff] %v2710_v53  ;;  %v2721_v57 = vand.u32 4294901760, %v392_v47  ;;  %v406_v58 = vsub.f32 %v2670_v40, %v2697_v48  ;;  %v2739_v0 = vand.u32 4294901760, %v399_v51  ;;  %v413_v2 = vsub.f32 %v2689_v45, %v2710_v53  ;;  %2108 = vmatpush3.msra.mxu0 %v2660_v37 }
  0x16   : > { %3718 = vst [vmem:[#allocation11_spill] sm:$0xff] %v2719_v56  ;;  %3720 = vst [vmem:[#allocation13_spill] sm:$0xff] %v2737_v63  ;;  %v2741_v1 = vand.u32 4294901760, %v518_v52  ;;  %2136 = vmatprep.subr.mxu1 %v2719_v56  ;;  %v2767_v17 = vand.u32 4294901760, %v230_v60  ;;  %v2769_v21 = vand.u32 4294901760, %v214_v61  ;;  %v2771_v22 = vand.u32 4294901760, %v229_v62 }
  0x17   : > { %3719 = vst [vmem:[#allocation12_spill] sm:$0xff] %v2721_v57  ;;  %3721 = vst [vmem:[#allocation14_spill] sm:$0xff] %v2739_v0  ;;  %2137 = vmatpush3.msra.mxu1 %v2721_v57  ;;  %v2765_v16 = vand.u32 4294901760, %v413_v2  ;;  %vm1138_vm2 = vcmask 523264  }
  0x18   : > { %3722 = vst [vmem:[#allocation15_spill] sm:$0xff] %v2741_v1  ;;  %2138 = vmatprep.subr.mxu1 %v2737_v63  ;;  %v2787_v46 = vsub.f32 %v230_v60, %v2767_v17  ;;  %v2790_v47 = vsub.f32 %v214_v61, %v2769_v21  ;;  %v2793_v50 = vsub.f32 %v229_v62, %v2771_v22 }
  0x19   : > { %3725 = vst [vmem:[#allocation18_spill] sm:$0xff] %v2765_v16  ;;  %2139 = vmatpush3.msra.mxu1 %v2739_v0 }
  0x1a   : > { %2140 = vmatprep.subr.mxu1 %v2741_v1  ;;  %v2817_v60 = vand.u32 4294901760, %v2790_v47  ;;  %v2820_v61 = vand.u32 4294901760, %v2793_v50  ;;  %v227_v1 = vld [vmem:[%s3569_s3 + $0xb8] sm:$0xff] }
  0x1c   : > { %3729 = vst [vmem:[#allocation22_spill] sm:$0xff] %v2817_v60  ;;  %3730 = vst [vmem:[#allocation23_spill] sm:$0xff] %v2820_v61 }
  0x88   : > { %v243_v5 = vpop.permute.xlu0 %242 }
  0x89   : > { %v2589_v8 = vmul.f32 %v2095_v3, %v243_v5  ;;  %v2591_v9 = vmul.f32 %v2096_v4, %v243_v5  ;;  %v246_v10 = vmul.f32 %v243_v5, %v239_v6  ;;  %v245_v11 = vmul.f32 %v243_v5, %v238_v7  ;;  %v213_v3 = vld [vmem:[%s3569_s3 + $0x48] sm:$0xff]  ;;  %v228_v4 = vld [vmem:[%s3569_s3 + $0xc0] sm:$0xff] }
  0x8a   : > { %v2753_v5 = vand.u32 4294901760, %v406_v58  ;;  %v2755_v6 = vand.u32 4294901760, %v525_v59  ;;  %v2757_v7 = vand.u32 4294901760, %v231_v54  ;;  %v2780_v28 = vand.u32 4294901760, %v213_v3 }
  0x8b   : > { %v2782_v29 = vand.u32 4294901760, %v228_v4  ;;  %v2814_v59 = vand.u32 4294901760, %v2787_v46 }
  0x8c   : > { %v2593_v12 = vpop.permute.xlu0 %249  ;;  %3723 = vst [vmem:[#allocation16_spill] sm:$0xff] %v2753_v5  ;;  %3724 = vst [vmem:[#allocation17_spill] sm:$0xff] %v2755_v6  ;;  %v2775_v23 = vsub.f32 %v231_v54, %v2757_v7  ;;  %2109 = vmatprep.subr.mxu0 %v2757_v7  ;;  %2141 = vmatpush3.msra.mxu1 %v2753_v5 }
  0x8d   : > { %v2596_v13 = vadd.f32 %v2593_v12, %v245_v11  ;;  %v2599_v14 = vadd.f32 %v2593_v12, %v246_v10  ;;  %v2759_v10 = vand.u32 4294901760, %v215_v55  ;;  %v212_v11 = vld [vmem:[%s3569_s3 + $0x40] sm:$0xff]  ;;  %v2809_v58 = vsub.f32 %v228_v4, %v2782_v29  ;;  %3728 = vst [vmem:[#allocation21_spill] sm:$0xff] %v2814_v59  ;;  %2142 = vmatprep.subr.mxu1 %v2755_v6 }
  0x8e   : > { %v2795_v51 = vand.u32 4294901760, %v212_v11  ;;  %v2800_v52 = vand.u32 4294901760, %v2775_v23  ;;  %2143 = vmatpush3.msra.mxu1 %v2765_v16  ;;  %v546_v6 = vsub.f32 %v2793_v50, %v2820_v61  ;;  %v211_v16 = vld [vmem:[%s3569_s3 + $0x38] sm:$0xff]  ;;  %v226_v61 = vld [vmem:[%s3569_s3 + $0xb0] sm:$0xff] }
  0x8f   : > { %v3572_v15 = vmax.f32 %v2596_v13, 0.0  ;;  %v3571_v18 = vmax.f32 %v2599_v14, 0.0  ;;  %v2778_v27 = vsub.f32 %v215_v55, %v2759_v10  ;;  %2110 = vmatpush3.msra.mxu0 %v2759_v10  ;;  %v2806_v55 = vsub.f32 %v213_v3, %v2780_v28 }
  0x90   : > { %3726 = vst [vmem:[#allocation19_spill] sm:$0xff] %v2800_v52  ;;  %2111 = vmatprep.subr.mxu0 %v2767_v17  ;;  %v2823_v62 = vsub.f32 %v212_v11, %v2795_v51  ;;  %v532_v2 = vsub.f32 %v2775_v23, %v2800_v52  ;;  %v539_v11 = vsub.f32 %v2787_v46, %v2814_v59  ;;  %v2877_v59 = vand.u32 4294901760, %v546_v6  ;;  %v224_v52 = vld [vmem:[%s3569_s3 + $0xa0] sm:$0xff] }
  0x91   : > { %256 = vrot.lane.b32.xlu1 %v3572_v15, %s2542_s10  ;;  %v2803_v54 = vand.u32 4294901760, %v2778_v27  ;;  %2112 = vmatpush3.msra.mxu0 %v2769_v21  ;;  %v2832_v4 = vand.u32 4294901760, %v2806_v55  ;;  %v427_v15 = vsub.f32 %v2790_v47, %v2817_v60  ;;  %v210_v60 = vld [vmem:[%s3569_s3 + $0x30] sm:$0xff]  ;;  %v2893_v6 = vand.u32 4294901760, %v227_v1 }
  0x92   : > { %3731 = vst [vmem:[#allocation24_spill] sm:$0xff] %v2823_v62  ;;  %2113 = vmatprep.subr.mxu0 %v2771_v22  ;;  %v2846_v5 = vand.u32 4294901760, %v2823_v62  ;;  %v2855_v0 = vand.u32 4294901760, %v532_v2  ;;  %v225_v2 = vld [vmem:[%s3569_s3 + $0xa8] sm:$0xff]  ;;  %3739 = vst [vmem:[#allocation32_spill] sm:$0xff] %v2877_v59  ;;  %v2895_v53 = vand.u32 4294901760, %v211_v16 }
  0x93   : > { %3727 = vst [vmem:[#allocation20_spill] sm:$0xff] %v2803_v54  ;;  %v420_v3 = vsub.f32 %v2778_v27, %v2803_v54  ;;  %3732 = vst [vmem:[#allocation25_spill] sm:$0xff] %v2832_v4  ;;  %2114 = vmatpush3.msra.mxu0 %v2780_v28  ;;  %v434_v57 = vsub.f32 %v2806_v55, %v2832_v4  ;;  %v2875_v4 = vand.u32 4294901760, %v427_v15  ;;  %v209_v54 = vld [vmem:[%s3569_s3 + $0x28] sm:$0xff]  ;;  %v2903_v48 = vand.u32 4294901760, %v226_v61 }
  0x94   : > { %3734 = vst [vmem:[#allocation27_spill] sm:$0xff] %v2846_v5  ;;  %3735 = vst [vmem:[#allocation28_spill] sm:$0xff] %v2855_v0  ;;  %2115 = vmatprep.subr.mxu0 %v2782_v29  ;;  %2144 = vmatprep.subr.mxu1 %v2855_v0  ;;  %v2905_v44 = vand.u32 4294901760, %v210_v60  ;;  %v2914_v0 = vsub.f32 %v211_v16, %v2895_v53  ;;  %v2916_v43 = vand.u32 4294901760, %v209_v54  ;;  %v2918_v42 = vand.u32 4294901760, %v224_v52 }
  0x95   : > { %258 = vrot.lane.b32.xlu1 %v3571_v18, %s2542_s10  ;;  %v2835_v18 = vand.u32 4294901760, %v2809_v58  ;;  %v2857_v63 = vand.u32 4294901760, %v420_v3  ;;  %v2873_v3 = vand.u32 4294901760, %v539_v11  ;;  %3738 = vst [vmem:[#allocation31_spill] sm:$0xff] %v2875_v4  ;;  %2116 = vmatpush3.msra.mxu0 %v2795_v51  ;;  %v2889_v11 = vand.u32 4294901760, %v434_v57 }
  0x96   : > { %v2907_v57 = vand.u32 4294901760, %v225_v2  ;;  %3744 = vst [vmem:[#allocation37_spill] sm:$0xff] %v2914_v0  ;;  %2117 = vmatprep.subr.mxu0 %v2893_v6 }
  0x97   : > { %3733 = vst [vmem:[#allocation26_spill] sm:$0xff] %v2835_v18  ;;  %3736 = vst [vmem:[#allocation29_spill] sm:$0xff] %v2857_v63  ;;  %v553_v56 = vsub.f32 %v2809_v58, %v2835_v18  ;;  %v441_v18 = vsub.f32 %v2823_v62, %v2846_v5  ;;  %v208_v5 = vld [vmem:[%s3569_s3 + $0x20] sm:$0xff]  ;;  %2145 = vmatpush3.msra.mxu1 %v2857_v63  ;;  %v2926_v63 = vsub.f32 %v210_v60, %v2905_v44 }
  0x98   : > { %3737 = vst [vmem:[#allocation30_spill] sm:$0xff] %v2873_v3  ;;  %3740 = vst [vmem:[#allocation33_spill] sm:$0xff] %v2889_v11  ;;  %2146 = vmatprep.subr.mxu1 %v2873_v3  ;;  %v2931_v3 = vand.u32 4294901760, %v208_v5  ;;  %2118 = vmatpush3.msra.mxu0 %v2895_v53  ;;  %v2945_v60 = vsub.f32 %v224_v52, %v2918_v42 }
  0x99   : > { %v2891_v15 = vand.u32 4294901760, %v553_v56  ;;  %v2901_v49 = vand.u32 4294901760, %v441_v18  ;;  %v2911_v56 = vsub.f32 %v227_v1, %v2893_v6  ;;  %2147 = vmatpush3.msra.mxu1 %v2875_v4  ;;  %v2923_v18 = vsub.f32 %v226_v61, %v2903_v48  ;;  %3746 = vst [vmem:[#allocation39_spill] sm:$0xff] %v2926_v63  ;;  %2119 = vmatprep.subr.mxu0 %v2903_v48 }
  0x9a   : > { %v2929_v1 = vsub.f32 %v225_v2, %v2907_v57  ;;  %2148 = vmatprep.subr.mxu1 %v2877_v59  ;;  %v2939_v4 = vand.u32 4294901760, %v2914_v0  ;;  %v2942_v61 = vsub.f32 %v209_v54, %v2916_v43  ;;  %3751 = vst [vmem:[#allocation44_spill] sm:$0xff] %v2945_v60  ;;  %v2953_v59 = vand.u32 4294901760, %v2926_v63  ;;  %2120 = vmatpush3.msra.mxu0 %v2905_v44 }
  0x9b   : > { %3741 = vst [vmem:[#allocation34_spill] sm:$0xff] %v2891_v15  ;;  %3742 = vst [vmem:[#allocation35_spill] sm:$0xff] %v2901_v49  ;;  %v2936_v16 = vand.u32 4294901760, %v2911_v56  ;;  %2149 = vmatpush3.msra.mxu1 %v2889_v11  ;;  %v2950_v2 = vand.u32 4294901760, %v2923_v18  ;;  %v2959_v38 = vsub.f32 %v208_v5, %v2931_v3  ;;  %v2971_v62 = vand.u32 4294901760, %v2945_v60  ;;  %2121 = vmatprep.subr.mxu0 %v2907_v57 }
  0x9c   : > { %3743 = vst [vmem:[#allocation36_spill] sm:$0xff] %v2911_v56  ;;  %3745 = vst [vmem:[#allocation38_spill] sm:$0xff] %v2923_v18  ;;  %v2956_v39 = vand.u32 4294901760, %v2929_v1  ;;  %2150 = vmatprep.subr.mxu1 %v2891_v15  ;;  %v448_v54 = vsub.f32 %v2914_v0, %v2939_v4  ;;  %v2968_v11 = vand.u32 4294901760, %v2942_v61  ;;  %v455_v15 = vsub.f32 %v2926_v63, %v2953_v59  ;;  %v223_v0 = vld [vmem:[%s3569_s3 + $0x98] sm:$0xff] }
  0x9d   : > { %3747 = vst [vmem:[#allocation40_spill] sm:$0xff] %v2929_v1  ;;  %3748 = vst [vmem:[#allocation41_spill] sm:$0xff] %v2936_v16  ;;  %v560_v52 = vsub.f32 %v2911_v56, %v2936_v16  ;;  %2151 = vmatpush3.msra.mxu1 %v2901_v49  ;;  %v567_v5 = vsub.f32 %v2923_v18, %v2950_v2  ;;  %v207_v49 = vld [vmem:[%s3569_s3 + $0x18] sm:$0xff]  ;;  %2122 = vmatpush3.msra.mxu0 %v2916_v43 }
  0x9e   : > { %3749 = vst [vmem:[#allocation42_spill] sm:$0xff] %v2939_v4  ;;  %3750 = vst [vmem:[#allocation43_spill] sm:$0xff] %v2942_v61  ;;  %v574_v16 = vsub.f32 %v2929_v1, %v2956_v39  ;;  %v2982_v4 = vand.u32 4294901760, %v2959_v38  ;;  %v2993_v18 = vand.u32 4294901760, %v448_v54  ;;  %v222_v1 = vld [vmem:[%s3569_s3 + $0x90] sm:$0xff]  ;;  %2123 = vmatprep.subr.mxu0 %v2918_v42  ;;  %v3005_v56 = vand.u32 4294901760, %v455_v15 }
  0x9f   : > { %3752 = vst [vmem:[#allocation45_spill] sm:$0xff] %v2950_v2  ;;  %3753 = vst [vmem:[#allocation46_spill] sm:$0xff] %v2953_v59  ;;  %v2991_v2 = vand.u32 4294901760, %v560_v52  ;;  %v581_v59 = vsub.f32 %v2945_v60, %v2971_v62  ;;  %v3003_v63 = vand.u32 4294901760, %v567_v5  ;;  %2124 = vmatpush3.msra.mxu0 %v2931_v3  ;;  %v3020_v5 = vand.u32 4294901760, %v222_v1 }
  0xa0   : > { %3754 = vst [vmem:[#allocation47_spill] sm:$0xff] %v2956_v39  ;;  %3755 = vst [vmem:[#allocation48_spill] sm:$0xff] %v2959_v38  ;;  %v462_v39 = vsub.f32 %v2942_v61, %v2968_v11  ;;  %v469_v52 = vsub.f32 %v2959_v38, %v2982_v4  ;;  %v3011_v54 = vand.u32 4294901760, %v574_v16 }
  0xa1   : > { %3756 = vst [vmem:[#allocation49_spill] sm:$0xff] %v2968_v11  ;;  %3757 = vst [vmem:[#allocation50_spill] sm:$0xff] %v2971_v62  ;;  %2152 = vmatprep.subr.mxu1 %v2991_v2  ;;  %v3013_v62 = vand.u32 4294901760, %v223_v0  ;;  %v3015_v11 = vand.u32 4294901760, %v207_v49  ;;  %v3023_v15 = vand.u32 4294901760, %v581_v59 }
  0xa2   : > { %3758 = vst [vmem:[#allocation51_spill] sm:$0xff] %v2982_v4  ;;  %3759 = vst [vmem:[#allocation52_spill] sm:$0xff] %v2991_v2  ;;  %2153 = vmatpush3.msra.mxu1 %v2993_v18  ;;  %v3018_v60 = vand.u32 4294901760, %v462_v39  ;;  %v3033_v2 = vand.u32 4294901760, %v469_v52  ;;  %v3036_v39 = vsub.f32 %v222_v1, %v3020_v5 }
  0xa3   : > { %3760 = vst [vmem:[#allocation53_spill] sm:$0xff] %v2993_v18  ;;  %3761 = vst [vmem:[#allocation54_spill] sm:$0xff] %v3003_v63  ;;  %2154 = vmatprep.subr.mxu1 %v3003_v63  ;;  %v3026_v4 = vsub.f32 %v223_v0, %v3013_v62  ;;  %v3029_v16 = vsub.f32 %v207_v49, %v3015_v11  ;;  %2125 = vmatprep.subr.mxu0 %v3013_v62 }
  0xa4   : > { %3762 = vst [vmem:[#allocation55_spill] sm:$0xff] %v3005_v56  ;;  %3763 = vst [vmem:[#allocation56_spill] sm:$0xff] %v3011_v54  ;;  %2155 = vmatpush3.msra.mxu1 %v3005_v56  ;;  %2126 = vmatpush3.msra.mxu0 %v3015_v11  ;;  %v3049_v49 = vand.u32 4294901760, %v3036_v39 }
  0xa5   : > { %3764 = vst [vmem:[#allocation57_spill] sm:$0xff] %v3018_v60  ;;  %3765 = vst [vmem:[#allocation58_spill] sm:$0xff] %v3023_v15  ;;  %2156 = vmatprep.subr.mxu1 %v3011_v54  ;;  %v3041_v59 = vand.u32 4294901760, %v3026_v4  ;;  %v3044_v0 = vand.u32 4294901760, %v3029_v16  ;;  %2127 = vmatprep.subr.mxu0 %v3020_v5 }
  0xa6   : > { %3766 = vst [vmem:[#allocation59_spill] sm:$0xff] %v3026_v4  ;;  %3767 = vst [vmem:[#allocation60_spill] sm:$0xff] %v3029_v16  ;;  %2157 = vmatpush3.msra.mxu1 %v3018_v60  ;;  %v595_v54 = vsub.f32 %v3036_v39, %v3049_v49 }
  0xa7   : > { %3768 = vst [vmem:[#allocation61_spill] sm:$0xff] %v3033_v2  ;;  %3769 = vst [vmem:[#allocation62_spill] sm:$0xff] %v3036_v39  ;;  %2158 = vmatprep.subr.mxu1 %v3023_v15  ;;  %v588_v1 = vsub.f32 %v3026_v4, %v3041_v59  ;;  %v476_v52 = vsub.f32 %v3029_v16, %v3044_v0  ;;  %v206_v15 = vld [vmem:[%s3569_s3 + $0x10] sm:$0xff] }
  0xa8   : > { %3770 = vst [vmem:[#allocation63_spill] sm:$0xff] %v3041_v59  ;;  %3771 = vst [vmem:[#allocation64_spill] sm:$0xff] %v3044_v0  ;;  %2159 = vmatpush3.msra.mxu1 %v3033_v2  ;;  %v3063_v60 = vand.u32 4294901760, %v595_v54  ;;  %v3071_v2 = vand.u32 4294901760, %v206_v15  ;;  %v205_v54 = vld [vmem:[%s3569_s3 + $0x8] sm:$0xff]  ;;  %v204_v0 = vld [vmem:[%s3569_s3] sm:$0xff] }
  0xa9   : > { %3772 = vst [vmem:[#allocation65_spill] sm:$0xff] %v3049_v49  ;;  %v3059_v56 = vand.u32 4294901760, %v588_v1  ;;  %v3061_v63 = vand.u32 4294901760, %v476_v52  ;;  %v221_v1 = vld [vmem:[%s3569_s3 + $0x88] sm:$0xff]  ;;  %v3105_v39 = vand.u32 4294901760, %v204_v0 }
  0xaa   : > { %3775 = vst [vmem:[#allocation68_spill] sm:$0xff] %v3063_v60  ;;  %v3076_v52 = vand.u32 4294901760, %v221_v1  ;;  %2128 = vmatpush3.msra.mxu0 %v3071_v2 }
  0xab   : > { %3773 = vst [vmem:[#allocation66_spill] sm:$0xff] %v3059_v56  ;;  %3774 = vst [vmem:[#allocation67_spill] sm:$0xff] %v3061_v63  ;;  %2160 = vmatprep.subr.mxu1 %v3059_v56  ;;  %v220_v56 = vld [vmem:[%s3569_s3 + $0x80] sm:$0xff] }
  0xac   : > { %2161 = vmatpush3.msra.mxu1 %v3061_v63  ;;  %v3082_v63 = vsub.f32 %v206_v15, %v3071_v2  ;;  %v3091_v18 = vsub.f32 %v221_v1, %v3076_v52  ;;  %v3093_v49 = vand.u32 4294901760, %v220_v56  ;;  %2129 = vmatprep.subr.mxu0 %v3076_v52  ;;  %3782 = vst [vmem:[#allocation75_spill] sm:$0xff] %v3105_v39 }
  0xad   : > { %2162 = vmatprep.subr.mxu1 %v3063_v60  ;;  %v3084_v60 = vand.u32 4294901760, %v205_v54 }
  0xae   : > { %3776 = vst [vmem:[#allocation69_spill] sm:$0xff] %v3082_v63  ;;  %3778 = vst [vmem:[#allocation71_spill] sm:$0xff] %v3091_v18  ;;  %v3100_v15 = vand.u32 4294901760, %v3082_v63  ;;  %v3109_v1 = vand.u32 4294901760, %v3091_v18  ;;  %v3112_v16 = vsub.f32 %v220_v56, %v3093_v49 }
  0xaf   : > { %3777 = vst [vmem:[#allocation70_spill] sm:$0xff] %v3084_v60  ;;  %3779 = vst [vmem:[#allocation72_spill] sm:$0xff] %v3093_v49  ;;  %v3103_v59 = vsub.f32 %v205_v54, %v3084_v60  ;;  %2130 = vmatpush3.msra.mxu0 %v3084_v60  ;;  %v3121_v54 = vsub.f32 %v204_v0, %v3105_v39  ;;  %v260_v0 = vlaneseq }
  0xb0   : > { %3780 = vst [vmem:[#allocation73_spill] sm:$0xff] %v3100_v15  ;;  %3783 = vst [vmem:[#allocation76_spill] sm:$0xff] %v3109_v1  ;;  %2131 = vmatprep.subr.mxu0 %v3093_v49  ;;  %v483_v4 = vsub.f32 %v3082_v63, %v3100_v15  ;;  %v602_v60 = vsub.f32 %v3091_v18, %v3109_v1  ;;  %v3127_v61 = vand.u32 4294901760, %v3112_v16 }
  0xb1   : > { %3781 = vst [vmem:[#allocation74_spill] sm:$0xff] %v3103_v59  ;;  %3784 = vst [vmem:[#allocation77_spill] sm:$0xff] %v3112_v16  ;;  %v3118_v38 = vand.u32 4294901760, %v3103_v59  ;;  %2132 = vmatpush3.msra.mxu0 %v3105_v39  ;;  %v3135_v63 = vand.u32 4294901760, %v3121_v54 }
  0xb2   : > { %3786 = vst [vmem:[#allocation79_spill] sm:$0xff] %v3121_v54  ;;  %3787 = vst [vmem:[#allocation80_spill] sm:$0xff] %v3127_v61  ;;  %2171 = vmatprep.subr.mxu0 %v2641_v30  ;;  %v3130_v56 = vand.u32 4294901760, %v483_v4  ;;  %v3137_v49 = vand.u32 4294901760, %v602_v60  ;;  %v609_v39 = vsub.f32 %v3112_v16, %v3127_v61  ;;  %v3152_v60 = vand.u32 127, %v260_v0 }
  0xb3   : > { %3785 = vst [vmem:[#allocation78_spill] sm:$0xff] %v3118_v38  ;;  %v490_v15 = vsub.f32 %v3103_v59, %v3118_v38  ;;  %3789 = vst [vmem:[#allocation82_spill] sm:$0xff] %v3135_v63  ;;  %v497_v4 = vsub.f32 %v3121_v54, %v3135_v63  ;;  %v1145_v63 = vadd.f32 %v2589_v8, %v2593_v12 }
  0xb4   : > { %3788 = vst [vmem:[#allocation81_spill] sm:$0xff] %v3130_v56  ;;  %3790 = vst [vmem:[#allocation83_spill] sm:$0xff] %v3137_v49  ;;  %2163 = vmatpush3.msra.mxu1 %v3130_v56  ;;  %v3147_v30 = vand.u32 4294901760, %v609_v39  ;;  %vm262_vm0 = vcmp.lt.s32.totalorder %v3152_v60, 127  ;;  %vm271_vm1 = vcmp.lt.s32.totalorder %v3152_v60, 112 }
  0xb5   : > { %v3142_v1 = vand.u32 4294901760, %v490_v15  ;;  %2164 = vmatprep.subr.mxu1 %v3137_v49  ;;  %v3150_v38 = vand.u32 4294901760, %v497_v4  ;;  %v3794_v4 = vmax.f32 %v2596_v13, 0.0  ;;  %v3795_v49 = vmax.f32 %v2599_v14, 0.0 }
  0xb6   : > { %3792 = vst [vmem:[#allocation85_spill] sm:$0xff] %v3147_v30  ;;  %v1147_v54 = vmax.f32 %v1145_v63, 0.0 }
  0xb7   : > { %3791 = vst [vmem:[#allocation84_spill] sm:$0xff] %v3142_v1  ;;  %2165 = vmatpush3.msra.mxu1 %v3142_v1  ;;  %3793 = vst [vmem:[#allocation86_spill] sm:$0xff] %v3150_v38 }
  0xb8   : > { %2166 = vmatprep.subr.mxu1 %v3147_v30 }
  0xb9   : > { %2167 = vmatpush3.msra.mxu1 %v3150_v38  ;;  %v1146_v38 = vadd.f32 %v2591_v9, %v2593_v12 }
  0xba   : > { %2206 = vmatprep.subr.mxu1 %v2609_v19 }
  0xbb   : > { %v1148_v61 = vmax.f32 %v1146_v38, 0.0 }
 0x103   : > { %v257_v56 = vpop.permute.xlu1 %256 }
 0x107   : > { %v259_v15 = vpop.permute.xlu1 %258 }
 0x108   : > { %v263_v39 = vsel %vm262_vm0, %v257_v56, %v259_v15  ;;  %v264_v1 = vsel %vm262_vm0, %v259_v15, %v257_v56 }
 0x109   : > { %v265_v0 = vmax.f32 %v3794_v4, %v263_v39  ;;  %v266_v30 = vmax.f32 %v3795_v49, %v264_v1 }
 0x10b   : > { %269 = vrot.lane.b32.xlu1 %v266_v30, %s2543_s20  ;;  %267 = vrot.lane.b32.xlu0 %v265_v0, %s2543_s20 }
 0x10f   : > { %1151 = vrot.lane.b32.xlu1 %v1148_v61, %s2542_s10  ;;  %1149 = vrot.lane.b32.xlu0 %v1147_v54, %s2542_s10  ;;  %s2094_s10 = sshll.u32 %s3925_s21, 3 }
 0x110   : > { %s202_s24 = scalar_lea.vmem %s3570_s4, %s2094_s10 }
 0x17d   : > { %v270_v13 = vpop.permute.xlu1 %269  ;;  %v268_v14 = vpop.permute.xlu0 %267 }
 0x17e   : > { %v272_v9 = vsel %vm271_vm1, %v268_v14, %v270_v13  ;;  %v273_v8 = vsel %vm271_vm1, %v270_v13, %v268_v14 }
 0x17f   : > { %v274_v12 = vmax.f32 %v265_v0, %v272_v9  ;;  %v275_v49 = vmax.f32 %v266_v30, %v273_v8 }
 0x181   : > { %v3179_v1 = vand.u32 4294901760, %v275_v49  ;;  %v3181_v38 = vand.u32 4294901760, %v274_v12  ;;  %v1152_v63 = vpop.permute.xlu1 %1151  ;;  %v1150_v56 = vpop.permute.xlu0 %1149 }
 0x182   : > { %v1153_v15 = vsel %vm262_vm0, %v1150_v56, %v1152_v63  ;;  %v1154_v39 = vsel %vm262_vm0, %v1152_v63, %v1150_v56  ;;  %v3798_v63 = vld [vmem:[#allocation37_spill] sm:$0xff]  ;;  %v3799_v56 = vld [vmem:[#allocation38_spill] sm:$0xff] }
 0x183   : > { %v373_v4 = vsub.f32 %v275_v49, %v3179_v1  ;;  %v3189_v16 = vsub.f32 %v274_v12, %v3181_v38  ;;  %v3191_v13 = vmax.f32 %v1147_v54, %v1153_v15  ;;  %v3193_v30 = vmax.f32 %v1148_v61, %v1154_v39  ;;  %613 = vmatprep.mubr.f32.mxu1 %v3179_v1  ;;  %v3796_v12 = vld [vmem:[#allocation24_spill] sm:$0xff]  ;;  %v3800_v15 = vld [vmem:[#allocation39_spill] sm:$0xff] }
 0x184   : > { %615 = vmatmul.mubr.f32.vlgmr.msra.gmra.mxu1 %v3181_v38  ;;  %v3797_v49 = vld [vmem:[#allocation36_spill] sm:$0xff] }
 0x185   : > { %2207 = vmatpush3.msra.mxu1 %v2611_v20  ;;  %1159 = vrot.lane.b32.xlu1 %v3193_v30, %s2543_s20  ;;  %v374_v0 = vand.u32 4294901760, %v373_v4  ;;  %v3706_v14 = vand.u32 4294901760, %v3189_v16  ;;  %v3801_v39 = vld [vmem:[#allocation40_spill] sm:$0xff] }
 0x186   : > { %2208 = vmatprep.subr.mxu1 %v2625_v24  ;;  %1157 = vrot.lane.b32.xlu0 %v3191_v13, %s2543_s20 }
 0x187   : > { %2209 = vmatpush3.msra.mxu1 %v2627_v25  ;;  %857 = vmatprep.mubr.f32.mxu1 %v374_v0  ;;  %v375_v61 = vsub.f32 %v373_v4, %v374_v0  ;;  %v381_v54 = vsub.f32 %v3189_v16, %v3706_v14  ;;  %v3803_v0 = vld [vmem:[#allocation70_spill] sm:$0xff]  ;;  %v3808_v14 = vld [vmem:[#allocation59_spill] sm:$0xff] }
 0x188   : > { %2210 = vmatprep.subr.mxu1 %v2629_v26 }
 0x189   : > { %2211 = vmatpush3.msra.mxu1 %v2646_v32  ;;  %v376_v9 = vand.u32 4294901760, %v375_v61  ;;  %v382_v8 = vand.u32 4294901760, %v381_v54  ;;  %v3804_v61 = vld [vmem:[#allocation44_spill] sm:$0xff] }
 0x18a   : > { %2212 = vmatprep.subr.mxu1 %v2648_v33  ;;  %v3805_v54 = vld [vmem:[#allocation72_spill] sm:$0xff] }
 0x18b   : > { %2213 = vmatpush3.msra.mxu1 %v2660_v37  ;;  %377 = vmatprep.mubr.f32.mxu0 %v376_v9  ;;  %v3806_v9 = vld [vmem:[#allocation48_spill] sm:$0xff] }
 0x18c   : > { %2214 = vmatprep.subr.mxu1 %v2757_v7  ;;  %383 = vmatmul.mubr.f32.vlgmr.msra.gmra.mxu0 %v382_v8  ;;  %v3807_v8 = vld [vmem:[#allocation75_spill] sm:$0xff] }
 0x18d   : > { %2172 = vmatpush3.msra.mxu0 %v2644_v31  ;;  %2215 = vmatpush3.msra.mxu1 %v2759_v10 }
 0x18e   : > { %2173 = vmatprep.subr.mxu0 %v2652_v34  ;;  %750 = vmatprep.mubr.f32.mxu0 %v373_v4  ;;  %v3802_v4 = vld [vmem:[#allocation43_spill] sm:$0xff] }
 0x18f   : > { %2216 = vmatprep.subr.mxu1 %v2767_v17  ;;  %2174 = vmatpush3.msra.mxu0 %v2655_v35 }
 0x190   : > { %2217 = vmatpush3.msra.mxu1 %v2769_v21  ;;  %2175 = vmatprep.subr.mxu0 %v2658_v36 }
 0x191   : > { %2218 = vmatprep.subr.mxu1 %v2771_v22  ;;  %2176 = vmatpush3.msra.mxu0 %v2670_v40 }
 0x192   : > { %2219 = vmatpush3.msra.mxu1 %v2780_v28  ;;  %2177 = vmatprep.subr.mxu0 %v2673_v41 }
 0x193   : > { %2220 = vmatprep.subr.mxu1 %v2782_v29  ;;  %2178 = vmatpush3.msra.mxu0 %v2689_v45 }
 0x194   : > { %2221 = vmatpush3.msra.mxu1 %v2795_v51  ;;  %2179 = vmatprep.subr.mxu0 %v2775_v23 }
 0x195   : > { %2222 = vmatprep.subr.mxu1 %v2893_v6  ;;  %2180 = vmatpush3.msra.mxu0 %v2778_v27 }
 0x196   : > { %2223 = vmatpush3.msra.mxu1 %v2895_v53  ;;  %2181 = vmatprep.subr.mxu0 %v2787_v46 }
 0x197   : > { %2224 = vmatprep.subr.mxu1 %v2903_v48  ;;  %2182 = vmatpush3.msra.mxu0 %v2790_v47 }
 0x198   : > { %2225 = vmatpush3.msra.mxu1 %v2905_v44  ;;  %2183 = vmatprep.subr.mxu0 %v2793_v50 }
 0x199   : > { %2226 = vmatprep.subr.mxu1 %v2907_v57  ;;  %2184 = vmatpush3.msra.mxu0 %v2806_v55 }
 0x19a   : > { %2227 = vmatpush3.msra.mxu1 %v2916_v43  ;;  %2185 = vmatprep.subr.mxu0 %v2809_v58 }
 0x19b   : > { %2228 = vmatprep.subr.mxu1 %v2918_v42  ;;  %2186 = vmatpush3.msra.mxu0 %v3796_v12 }
 0x19c   : > { %2229 = vmatpush3.msra.mxu1 %v2931_v3  ;;  %2187 = vmatprep.subr.mxu0 %v3797_v49 }
 0x19d   : > { %2230 = vmatprep.subr.mxu1 %v3013_v62  ;;  %2188 = vmatpush3.msra.mxu0 %v3798_v63 }
 0x19e   : > { %2231 = vmatpush3.msra.mxu1 %v3015_v11  ;;  %2189 = vmatprep.subr.mxu0 %v3799_v56  ;;  %v3850_v56 = vld [vmem:[#allocation15_spill] sm:$0xff] }
 0x19f   : > { %2232 = vmatprep.subr.mxu1 %v3020_v5  ;;  %2190 = vmatpush3.msra.mxu0 %v3800_v15  ;;  %v3809_v15 = vand.u32 4294901760, %v3189_v16 }
 0x1a0   : > { %2233 = vmatpush3.msra.mxu1 %v3071_v2  ;;  %2191 = vmatprep.subr.mxu0 %v3801_v39  ;;  %v3810_v39 = vld [vmem:[#allocation60_spill] sm:$0xff] }
 0x1a1   : > { %2234 = vmatprep.subr.mxu1 %v3076_v52  ;;  %2192 = vmatpush3.msra.mxu0 %v3802_v4  ;;  %v3848_v4 = vld [vmem:[#allocation14_spill] sm:$0xff] }
 0x1a2   : > { %2235 = vmatpush3.msra.mxu1 %v3803_v0  ;;  %2193 = vmatprep.subr.mxu0 %v3804_v61  ;;  %v3811_v61 = vld [vmem:[#allocation62_spill] sm:$0xff] }
 0x1a3   : > { %2236 = vmatprep.subr.mxu1 %v3805_v54  ;;  %2194 = vmatpush3.msra.mxu0 %v3806_v9  ;;  %v3812_v9 = vld [vmem:[#allocation69_spill] sm:$0xff] }
 0x1a4   : > { %2237 = vmatpush3.msra.mxu1 %v3807_v8  ;;  %2195 = vmatprep.subr.mxu0 %v3808_v14  ;;  %v3846_v14 = vld [vmem:[#allocation13_spill] sm:$0xff] }
 0x1a5   : > { %861 = vmatmul.mubr.f32.vlgmr.msra.gmra.mxu1 %v3809_v15  ;;  %2276 = vmatprep.subr.mxu1 %v2609_v19  ;;  %v3813_v15 = vld [vmem:[#allocation77_spill] sm:$0xff] }
 0x1a6   : > { %2196 = vmatpush3.msra.mxu0 %v3810_v39  ;;  %2277 = vmatpush3.msra.mxu1 %v2611_v20  ;;  %v3814_v39 = vld [vmem:[#allocation79_spill] sm:$0xff] }
 0x1a7   : > { %1131 = vmatprep.mubr.f32.mxu1 %v3179_v1  ;;  %2197 = vmatprep.subr.mxu0 %v3811_v61  ;;  %v3844_v61 = vld [vmem:[#allocation12_spill] sm:$0xff] }
 0x1a8   : > { %2278 = vmatprep.subr.mxu1 %v2625_v24  ;;  %2198 = vmatpush3.msra.mxu0 %v3812_v9  ;;  %v3815_v9 = vld [vmem:[#allocation3_spill] sm:$0xff] }
 0x1a9   : > { %2279 = vmatpush3.msra.mxu1 %v2627_v25  ;;  %2199 = vmatprep.subr.mxu0 %v3091_v18  ;;  %v3816_v18 = vld [vmem:[#allocation4_spill] sm:$0xff] }
 0x1aa   : > { %2280 = vmatprep.subr.mxu1 %v2629_v26  ;;  %2200 = vmatpush3.msra.mxu0 %v3103_v59  ;;  %v3817_v59 = vld [vmem:[#allocation5_spill] sm:$0xff] }
 0x1ab   : > { %2281 = vmatpush3.msra.mxu1 %v2646_v32  ;;  %2201 = vmatprep.subr.mxu0 %v3813_v15  ;;  %v3818_v15 = vld [vmem:[#allocation6_spill] sm:$0xff] }
 0x1ac   : > { %2282 = vmatprep.subr.mxu1 %v2648_v33  ;;  %2202 = vmatpush3.msra.mxu0 %v3814_v39  ;;  %v3819_v39 = vld [vmem:[#allocation7_spill] sm:$0xff] }
 0x1ad   : > { %2283 = vmatpush3.msra.mxu1 %v2660_v37  ;;  %753 = vmatmul.mubr.f32.vlgmr.msra.gmra.mxu0 %v3189_v16  ;;  %v3820_v16 = vld [vmem:[#allocation8_spill] sm:$0xff] }
 0x1ae   : > { %2241 = vmatprep.subr.mxu0 %v3815_v9  ;;  %2284 = vmatprep.subr.mxu1 %v2757_v7  ;;  %v3842_v9 = vld [vmem:[#allocation11_spill] sm:$0xff] }
 0x1af   : > { %2242 = vmatpush3.msra.mxu0 %v3816_v18  ;;  %1027 = vmatprep.mubr.f32.mxu0 %v3179_v1  ;;  %v3821_v18 = vld [vmem:[#allocation9_spill] sm:$0xff]  ;;  %v3822_v1 = vld [vmem:[#allocation10_spill] sm:$0xff] }
 0x1b0   : > { %2285 = vmatpush3.msra.mxu1 %v2759_v10  ;;  %2243 = vmatprep.subr.mxu0 %v3817_v59  ;;  %v3823_v59 = vld [vmem:[#allocation19_spill] sm:$0xff] }
 0x1b1   : > { %2286 = vmatprep.subr.mxu1 %v2767_v17  ;;  %2244 = vmatpush3.msra.mxu0 %v3818_v15  ;;  %v3824_v15 = vld [vmem:[#allocation20_spill] sm:$0xff] }
 0x1b2   : > { %2287 = vmatpush3.msra.mxu1 %v2769_v21  ;;  %2245 = vmatprep.subr.mxu0 %v3819_v39  ;;  %v3825_v39 = vld [vmem:[#allocation21_spill] sm:$0xff] }
 0x1b3   : > { %2288 = vmatprep.subr.mxu1 %v2771_v22  ;;  %2246 = vmatpush3.msra.mxu0 %v3820_v16  ;;  %v3826_v16 = vld [vmem:[#allocation22_spill] sm:$0xff] }
 0x1b4   : > { %2289 = vmatpush3.msra.mxu1 %v2780_v28  ;;  %2247 = vmatprep.subr.mxu0 %v3821_v18  ;;  %v3827_v18 = vld [vmem:[#allocation23_spill] sm:$0xff] }
 0x1b5   : > { %2290 = vmatprep.subr.mxu1 %v2782_v29  ;;  %2248 = vmatpush3.msra.mxu0 %v3822_v1  ;;  %v3828_v1 = vld [vmem:[#allocation25_spill] sm:$0xff] }
 0x1b6   : > { %2291 = vmatpush3.msra.mxu1 %v2795_v51  ;;  %2249 = vmatprep.subr.mxu0 %v3823_v59  ;;  %v3829_v59 = vld [vmem:[#allocation26_spill] sm:$0xff] }
 0x1b7   : > { %2292 = vmatprep.subr.mxu1 %v2893_v6  ;;  %2250 = vmatpush3.msra.mxu0 %v3824_v15  ;;  %v3830_v15 = vld [vmem:[#allocation27_spill] sm:$0xff] }
 0x1b8   : > { %2293 = vmatpush3.msra.mxu1 %v2895_v53  ;;  %2251 = vmatprep.subr.mxu0 %v3825_v39  ;;  %v3831_v39 = vld [vmem:[#allocation41_spill] sm:$0xff] }
 0x1b9   : > { %2294 = vmatprep.subr.mxu1 %v2903_v48  ;;  %2252 = vmatpush3.msra.mxu0 %v3826_v16  ;;  %v3832_v16 = vld [vmem:[#allocation42_spill] sm:$0xff] }
 0x1ba   : > { %2295 = vmatpush3.msra.mxu1 %v2905_v44  ;;  %2253 = vmatprep.subr.mxu0 %v3827_v18  ;;  %v3833_v18 = vld [vmem:[#allocation45_spill] sm:$0xff] }
 0x1bb   : > { %2296 = vmatprep.subr.mxu1 %v2907_v57  ;;  %2254 = vmatpush3.msra.mxu0 %v3828_v1  ;;  %v3834_v1 = vld [vmem:[#allocation46_spill] sm:$0xff] }
 0x1bc   : > { %2297 = vmatpush3.msra.mxu1 %v2916_v43  ;;  %2255 = vmatprep.subr.mxu0 %v3829_v59  ;;  %v3835_v59 = vld [vmem:[#allocation47_spill] sm:$0xff] }
 0x1bd   : > { %2298 = vmatprep.subr.mxu1 %v2918_v42  ;;  %2256 = vmatpush3.msra.mxu0 %v3830_v15  ;;  %v3836_v15 = vld [vmem:[#allocation49_spill] sm:$0xff] }
 0x1be   : > { %2299 = vmatpush3.msra.mxu1 %v2931_v3  ;;  %2257 = vmatprep.subr.mxu0 %v3831_v39  ;;  %v3837_v39 = vld [vmem:[#allocation50_spill] sm:$0xff] }
 0x1bf   : > { %2300 = vmatprep.subr.mxu1 %v3013_v62  ;;  %2258 = vmatpush3.msra.mxu0 %v3832_v16  ;;  %v3838_v16 = vld [vmem:[#allocation51_spill] sm:$0xff] }
 0x1c0   : > { %2301 = vmatpush3.msra.mxu1 %v3015_v11  ;;  %2259 = vmatprep.subr.mxu0 %v3833_v18  ;;  %v3839_v18 = vld [vmem:[#allocation63_spill] sm:$0xff] }
 0x1c1   : > { %2302 = vmatprep.subr.mxu1 %v3020_v5  ;;  %2260 = vmatpush3.msra.mxu0 %v3834_v1  ;;  %v3840_v1 = vld [vmem:[#allocation64_spill] sm:$0xff] }
 0x1c2   : > { %2303 = vmatpush3.msra.mxu1 %v3071_v2  ;;  %2261 = vmatprep.subr.mxu0 %v3835_v59  ;;  %v3841_v59 = vld [vmem:[#allocation65_spill] sm:$0xff] }
 0x1c3   : > { %2304 = vmatprep.subr.mxu1 %v3076_v52  ;;  %2262 = vmatpush3.msra.mxu0 %v3836_v15  ;;  %v3843_v15 = vld [vmem:[#allocation73_spill] sm:$0xff] }
 0x1c4   : > { %2305 = vmatpush3.msra.mxu1 %v3803_v0  ;;  %2263 = vmatprep.subr.mxu0 %v3837_v39  ;;  %v3845_v39 = vld [vmem:[#allocation76_spill] sm:$0xff] }
 0x1c5   : > { %2306 = vmatprep.subr.mxu1 %v3805_v54  ;;  %2264 = vmatpush3.msra.mxu0 %v3838_v16  ;;  %v3847_v16 = vld [vmem:[#allocation78_spill] sm:$0xff] }
 0x1c6   : > { %2307 = vmatpush3.msra.mxu1 %v3807_v8  ;;  %2265 = vmatprep.subr.mxu0 %v3839_v18  ;;  %v3849_v18 = vld [vmem:[#allocation80_spill] sm:$0xff] }
 0x1c7   : > { %1133 = vmatmul.mubr.f32.vlgmr.msra.gmra.mxu1 %v3181_v38  ;;  %2266 = vmatpush3.msra.mxu0 %v3840_v1  ;;  %v3851_v1 = vld [vmem:[#allocation82_spill] sm:$0xff] }
 0x1c8   : > { %2267 = vmatprep.subr.mxu0 %v3841_v59  ;;  %2346 = vmatprep.subr.mxu1 %v3842_v9  ;;  %v3852_v59 = vld [vmem:[#allocation16_spill] sm:$0xff]  ;;  %v3853_v9 = vld [vmem:[#allocation17_spill] sm:$0xff] }
 0x1c9   : > { %2268 = vmatpush3.msra.mxu0 %v3843_v15  ;;  %2347 = vmatpush3.msra.mxu1 %v3844_v61  ;;  %v3854_v61 = vld [vmem:[#allocation18_spill] sm:$0xff] }
 0x1ca   : > { %2269 = vmatprep.subr.mxu0 %v3845_v39  ;;  %2348 = vmatprep.subr.mxu1 %v3846_v14  ;;  %v3855_v14 = vld [vmem:[#allocation28_spill] sm:$0xff] }
 0x1cb   : > { %2270 = vmatpush3.msra.mxu0 %v3847_v16  ;;  %2349 = vmatpush3.msra.mxu1 %v3848_v4  ;;  %v3856_v4 = vld [vmem:[#allocation29_spill] sm:$0xff] }
 0x1cc   : > { %2271 = vmatprep.subr.mxu0 %v3849_v18  ;;  %2350 = vmatprep.subr.mxu1 %v3850_v56  ;;  %v3857_v56 = vld [vmem:[#allocation30_spill] sm:$0xff] }
 0x1cd   : > { %2272 = vmatpush3.msra.mxu0 %v3851_v1  ;;  %2351 = vmatpush3.msra.mxu1 %v3852_v59  ;;  %v3858_v59 = vld [vmem:[#allocation31_spill] sm:$0xff] }
 0x1ce   : > { %1029 = vmatmul.mubr.f32.vlgmr.msra.gmra.mxu0 %v3181_v38  ;;  %2352 = vmatprep.subr.mxu1 %v3853_v9  ;;  %v3859_v38 = vld [vmem:[#allocation32_spill] sm:$0xff]  ;;  %v3860_v9 = vld [vmem:[#allocation33_spill] sm:$0xff] }
 0x1cf   : > { %2353 = vmatpush3.msra.mxu1 %v3854_v61  ;;  %2311 = vmatprep.subr.mxu0 %v2609_v19  ;;  %v3861_v61 = vld [vmem:[#allocation34_spill] sm:$0xff] }
 0x1d0   : > { %2354 = vmatprep.subr.mxu1 %v3855_v14  ;;  %2312 = vmatpush3.msra.mxu0 %v2611_v20  ;;  %v3862_v14 = vld [vmem:[#allocation35_spill] sm:$0xff] }
 0x1d1   : > { %2355 = vmatpush3.msra.mxu1 %v3856_v4  ;;  %2313 = vmatprep.subr.mxu0 %v2625_v24  ;;  %v3863_v4 = vld [vmem:[#allocation52_spill] sm:$0xff] }
 0x1d2   : > { %2356 = vmatprep.subr.mxu1 %v3857_v56  ;;  %2314 = vmatpush3.msra.mxu0 %v2627_v25  ;;  %v3864_v56 = vld [vmem:[#allocation53_spill] sm:$0xff] }
 0x1d3   : > { %2357 = vmatpush3.msra.mxu1 %v3858_v59  ;;  %2315 = vmatprep.subr.mxu0 %v2629_v26  ;;  %v3865_v59 = vld [vmem:[#allocation54_spill] sm:$0xff] }
 0x1d4   : > { %2358 = vmatprep.subr.mxu1 %v3859_v38  ;;  %2316 = vmatpush3.msra.mxu0 %v2646_v32  ;;  %v3866_v38 = vld [vmem:[#allocation55_spill] sm:$0xff] }
 0x1d5   : > { %2359 = vmatpush3.msra.mxu1 %v3860_v9  ;;  %2317 = vmatprep.subr.mxu0 %v2648_v33  ;;  %v3867_v9 = vld [vmem:[#allocation56_spill] sm:$0xff] }
 0x1d6   : > { %2360 = vmatprep.subr.mxu1 %v3861_v61  ;;  %2318 = vmatpush3.msra.mxu0 %v2660_v37  ;;  %v3868_v61 = vld [vmem:[#allocation57_spill] sm:$0xff] }
 0x1d7   : > { %2361 = vmatpush3.msra.mxu1 %v3862_v14  ;;  %2319 = vmatprep.subr.mxu0 %v2757_v7  ;;  %v3869_v14 = vld [vmem:[#allocation58_spill] sm:$0xff] }
 0x1d8   : > { %2362 = vmatprep.subr.mxu1 %v3863_v4  ;;  %2320 = vmatpush3.msra.mxu0 %v2759_v10  ;;  %v3870_v4 = vld [vmem:[#allocation61_spill] sm:$0xff] }
 0x1d9   : > { %2363 = vmatpush3.msra.mxu1 %v3864_v56  ;;  %2321 = vmatprep.subr.mxu0 %v2767_v17  ;;  %v3871_v56 = vld [vmem:[#allocation66_spill] sm:$0xff] }
 0x1da   : > { %2364 = vmatprep.subr.mxu1 %v3865_v59  ;;  %2322 = vmatpush3.msra.mxu0 %v2769_v21  ;;  %v3872_v59 = vld [vmem:[#allocation67_spill] sm:$0xff] }
 0x1db   : > { %2365 = vmatpush3.msra.mxu1 %v3866_v38  ;;  %2323 = vmatprep.subr.mxu0 %v2771_v22  ;;  %v3873_v38 = vld [vmem:[#allocation68_spill] sm:$0xff] }
 0x1dc   : > { %2366 = vmatprep.subr.mxu1 %v3867_v9  ;;  %2324 = vmatpush3.msra.mxu0 %v2780_v28  ;;  %v3874_v9 = vld [vmem:[#allocation81_spill] sm:$0xff] }
 0x1dd   : > { %2367 = vmatpush3.msra.mxu1 %v3868_v61  ;;  %2325 = vmatprep.subr.mxu0 %v2782_v29  ;;  %v3875_v61 = vld [vmem:[#allocation83_spill] sm:$0xff] }
 0x1de   : > { %2368 = vmatprep.subr.mxu1 %v3869_v14  ;;  %2326 = vmatpush3.msra.mxu0 %v2795_v51  ;;  %v3876_v14 = vld [vmem:[#allocation84_spill] sm:$0xff] }
 0x1df   : > { %2369 = vmatpush3.msra.mxu1 %v3870_v4  ;;  %2327 = vmatprep.subr.mxu0 %v2893_v6  ;;  %v3877_v4 = vld [vmem:[#allocation85_spill] sm:$0xff] }
 0x1e0   : > { %2370 = vmatprep.subr.mxu1 %v3871_v56  ;;  %2328 = vmatpush3.msra.mxu0 %v2895_v53  ;;  %v3878_v56 = vld [vmem:[#allocation86_spill] sm:$0xff] }
 0x1e1   : > { %2371 = vmatpush3.msra.mxu1 %v3872_v59  ;;  %2329 = vmatprep.subr.mxu0 %v2903_v48  ;;  %v3879_v59 = vld [vmem:[#allocation2_spill] sm:$0xff] }
 0x1e2   : > { %2372 = vmatprep.subr.mxu1 %v3873_v38  ;;  %2330 = vmatpush3.msra.mxu0 %v2905_v44 }
 0x1e3   : > { %2373 = vmatpush3.msra.mxu1 %v3874_v9  ;;  %2331 = vmatprep.subr.mxu0 %v2907_v57 }
 0x1e4   : > { %2374 = vmatprep.subr.mxu1 %v3875_v61  ;;  %2332 = vmatpush3.msra.mxu0 %v2916_v43 }
 0x1e5   : > { %2375 = vmatpush3.msra.mxu1 %v3876_v14  ;;  %2333 = vmatprep.subr.mxu0 %v2918_v42 }
 0x1e6   : > { %2376 = vmatprep.subr.mxu1 %v3877_v4  ;;  %2334 = vmatpush3.msra.mxu0 %v2931_v3 }
 0x1e7   : > { %2377 = vmatpush3.msra.mxu1 %v3878_v56  ;;  %2335 = vmatprep.subr.mxu0 %v3013_v62 }
 0x1e8   : > { %2416 = vmatprep.subr.mxu1 %v2609_v19  ;;  %2336 = vmatpush3.msra.mxu0 %v3015_v11 }
 0x1e9   : > { %2337 = vmatprep.subr.mxu0 %v3020_v5 }
 0x1ea   : > { %2338 = vmatpush3.msra.mxu0 %v3071_v2 }
 0x1eb   : > { %2339 = vmatprep.subr.mxu0 %v3076_v52 }
 0x1ec   : > { %2340 = vmatpush3.msra.mxu0 %v3803_v0 }
 0x1ed   : > { %2341 = vmatprep.subr.mxu0 %v3805_v54 }
 0x1ee   : > { %2342 = vmatpush3.msra.mxu0 %v3807_v8 }
 0x1ef   : > { %2381 = vmatprep.subr.mxu0 %v3879_v59 }
 0x1f7   : > { %v1160_v38 = vpop.permute.xlu1 %1159 }
 0x1f8   : > { %v1158_v9 = vpop.permute.xlu0 %1157 }
 0x1f9   : > { %v1161_v61 = vsel %vm271_vm1, %v1158_v9, %v1160_v38  ;;  %v1162_v14 = vsel %vm271_vm1, %v1160_v38, %v1158_v9 }
 0x1fa   : > { %v1163_v4 = vmax.f32 %v3191_v13, %v1161_v61  ;;  %v1164_v56 = vmax.f32 %v3193_v30, %v1162_v14 }
 0x1fc   : > { %v3410_v1 = vand.u32 4294901760, %v1164_v56  ;;  %v3412_v18 = vand.u32 4294901760, %v1163_v4 }
 0x1fe   : > { %v1262_v16 = vsub.f32 %v1164_v56, %v3410_v1  ;;  %v3416_v59 = vsub.f32 %v1163_v4, %v3412_v18  ;;  %1502 = vmatprep.mubr.f32.mxu1 %v3410_v1 }
 0x1ff   : > { %1504 = vmatmul.mubr.f32.vlgmr.msra.gmra.mxu1 %v3412_v18 }
 0x200   : > { %v1269_v60 = vand.u32 4294901760, %v3416_v59  ;;  %2417 = vmatpush3.msra.mxu1 %v2611_v20  ;;  %v1263_v13 = vand.u32 4294901760, %v1262_v16 }
 0x201   : > { %2418 = vmatprep.subr.mxu1 %v2625_v24 }
 0x202   : > { %2419 = vmatpush3.msra.mxu1 %v2627_v25  ;;  %1746 = vmatprep.mubr.f32.mxu1 %v1263_v13  ;;  %v1264_v30 = vsub.f32 %v1262_v16, %v1263_v13  ;;  %v1270_v38 = vsub.f32 %v3416_v59, %v1269_v60 }
 0x203   : > { %2420 = vmatprep.subr.mxu1 %v2629_v26 }
 0x204   : > { %2421 = vmatpush3.msra.mxu1 %v2646_v32  ;;  %v1265_v9 = vand.u32 4294901760, %v1264_v30  ;;  %v1271_v61 = vand.u32 4294901760, %v1270_v38 }
 0x205   : > { %2422 = vmatprep.subr.mxu1 %v2648_v33 }
 0x206   : > { %2423 = vmatpush3.msra.mxu1 %v2660_v37  ;;  %1266 = vmatprep.mubr.f32.mxu0 %v1265_v9 }
 0x207   : > { %2424 = vmatprep.subr.mxu1 %v2757_v7  ;;  %1272 = vmatmul.mubr.f32.vlgmr.msra.gmra.mxu0 %v1271_v61 }
 0x208   : > { %2382 = vmatpush3.msra.mxu0 %v2644_v31  ;;  %2425 = vmatpush3.msra.mxu1 %v2759_v10  ;;  %v3880_v31 = vld [vmem:[#allocation38_spill] sm:$0xff] }
 0x209   : > { %2383 = vmatprep.subr.mxu0 %v2652_v34  ;;  %1639 = vmatprep.mubr.f32.mxu0 %v1262_v16  ;;  %v3881_v34 = vld [vmem:[#allocation39_spill] sm:$0xff] }
 0x20a   : > { %2426 = vmatprep.subr.mxu1 %v2767_v17  ;;  %2384 = vmatpush3.msra.mxu0 %v2655_v35  ;;  %v3882_v35 = vld [vmem:[#allocation40_spill] sm:$0xff] }
 0x20b   : > { %2427 = vmatpush3.msra.mxu1 %v2769_v21  ;;  %2385 = vmatprep.subr.mxu0 %v2658_v36  ;;  %v3883_v36 = vld [vmem:[#allocation43_spill] sm:$0xff] }
 0x20c   : > { %2428 = vmatprep.subr.mxu1 %v2771_v22  ;;  %2386 = vmatpush3.msra.mxu0 %v2670_v40  ;;  %v3884_v40 = vld [vmem:[#allocation44_spill] sm:$0xff] }
 0x20d   : > { %2429 = vmatpush3.msra.mxu1 %v2780_v28  ;;  %2387 = vmatprep.subr.mxu0 %v2673_v41  ;;  %v3885_v41 = vld [vmem:[#allocation48_spill] sm:$0xff] }
 0x20e   : > { %2430 = vmatprep.subr.mxu1 %v2782_v29  ;;  %2388 = vmatpush3.msra.mxu0 %v2689_v45  ;;  %v3886_v45 = vld [vmem:[#allocation59_spill] sm:$0xff] }
 0x20f   : > { %2431 = vmatpush3.msra.mxu1 %v2795_v51  ;;  %2389 = vmatprep.subr.mxu0 %v2775_v23  ;;  %v3887_v23 = vld [vmem:[#allocation60_spill] sm:$0xff] }
 0x210   : > { %2432 = vmatprep.subr.mxu1 %v2893_v6  ;;  %2390 = vmatpush3.msra.mxu0 %v2778_v27  ;;  %v3888_v27 = vld [vmem:[#allocation62_spill] sm:$0xff] }
 0x211   : > { %2433 = vmatpush3.msra.mxu1 %v2895_v53  ;;  %2391 = vmatprep.subr.mxu0 %v2787_v46  ;;  %v3889_v46 = vld [vmem:[#allocation69_spill] sm:$0xff] }
 0x212   : > { %2434 = vmatprep.subr.mxu1 %v2903_v48  ;;  %2392 = vmatpush3.msra.mxu0 %v2790_v47  ;;  %v3890_v47 = vld [vmem:[#allocation71_spill] sm:$0xff] }
 0x213   : > { %2435 = vmatpush3.msra.mxu1 %v2905_v44  ;;  %2393 = vmatprep.subr.mxu0 %v2793_v50  ;;  %v3891_v50 = vld [vmem:[#allocation74_spill] sm:$0xff] }
 0x214   : > { %2436 = vmatprep.subr.mxu1 %v2907_v57  ;;  %2394 = vmatpush3.msra.mxu0 %v2806_v55  ;;  %v3908_v55 = vld [vmem:[#allocation26_spill] sm:$0xff] }
 0x215   : > { %2437 = vmatpush3.msra.mxu1 %v2916_v43  ;;  %2395 = vmatprep.subr.mxu0 %v2809_v58  ;;  %v3912_v58 = vld [vmem:[#allocation45_spill] sm:$0xff] }
 0x216   : > { %2438 = vmatprep.subr.mxu1 %v2918_v42  ;;  %2396 = vmatpush3.msra.mxu0 %v3796_v12  ;;  %v3923_v12 = vld [vmem:[#allocation82_spill] sm:$0xff] }
 0x217   : > { %2439 = vmatpush3.msra.mxu1 %v2931_v3  ;;  %2397 = vmatprep.subr.mxu0 %v3797_v49 }
 0x218   : > { %2440 = vmatprep.subr.mxu1 %v3013_v62  ;;  %2398 = vmatpush3.msra.mxu0 %v3798_v63 }
 0x219   : > { %2441 = vmatpush3.msra.mxu1 %v3015_v11  ;;  %2399 = vmatprep.subr.mxu0 %v3880_v31 }
 0x21a   : > { %2442 = vmatprep.subr.mxu1 %v3020_v5  ;;  %2400 = vmatpush3.msra.mxu0 %v3881_v34 }
 0x21b   : > { %2443 = vmatpush3.msra.mxu1 %v3071_v2  ;;  %2401 = vmatprep.subr.mxu0 %v3882_v35 }
 0x21c   : > { %2444 = vmatprep.subr.mxu1 %v3076_v52  ;;  %2402 = vmatpush3.msra.mxu0 %v3883_v36 }
 0x21d   : > { %2445 = vmatpush3.msra.mxu1 %v3803_v0  ;;  %2403 = vmatprep.subr.mxu0 %v3884_v40 }
 0x21e   : > { %2446 = vmatprep.subr.mxu1 %v3805_v54  ;;  %2404 = vmatpush3.msra.mxu0 %v3885_v41 }
 0x21f   : > { %2447 = vmatpush3.msra.mxu1 %v3807_v8  ;;  %2405 = vmatprep.subr.mxu0 %v3886_v45 }
 0x220   : > { %1750 = vmatmul.mubr.f32.vlgmr.msra.gmra.mxu1 %v1269_v60  ;;  %2486 = vmatprep.subr.mxu1 %v2609_v19  ;;  %v3892_v19 = vld [vmem:[#allocation77_spill] sm:$0xff] }
 0x221   : > { %2406 = vmatpush3.msra.mxu0 %v3887_v23  ;;  %2487 = vmatpush3.msra.mxu1 %v2611_v20  ;;  %v3893_v20 = vld [vmem:[#allocation79_spill] sm:$0xff] }
 0x222   : > { %2020 = vmatprep.mubr.f32.mxu1 %v3410_v1  ;;  %2407 = vmatprep.subr.mxu0 %v3888_v27 }
 0x223   : > { %2488 = vmatprep.subr.mxu1 %v2625_v24  ;;  %2408 = vmatpush3.msra.mxu0 %v3889_v46  ;;  %v3894_v24 = vld [vmem:[#allocation3_spill] sm:$0xff] }
 0x224   : > { %2489 = vmatpush3.msra.mxu1 %v2627_v25  ;;  %2409 = vmatprep.subr.mxu0 %v3890_v47  ;;  %v3895_v25 = vld [vmem:[#allocation4_spill] sm:$0xff] }
 0x225   : > { %2490 = vmatprep.subr.mxu1 %v2629_v26  ;;  %2410 = vmatpush3.msra.mxu0 %v3891_v50  ;;  %v3896_v26 = vld [vmem:[#allocation5_spill] sm:$0xff] }
 0x226   : > { %2491 = vmatpush3.msra.mxu1 %v2646_v32  ;;  %2411 = vmatprep.subr.mxu0 %v3892_v19  ;;  %v3897_v32 = vld [vmem:[#allocation6_spill] sm:$0xff] }
 0x227   : > { %2492 = vmatprep.subr.mxu1 %v2648_v33  ;;  %2412 = vmatpush3.msra.mxu0 %v3893_v20  ;;  %v3898_v33 = vld [vmem:[#allocation7_spill] sm:$0xff] }
 0x228   : > { %2493 = vmatpush3.msra.mxu1 %v2660_v37  ;;  %1642 = vmatmul.mubr.f32.vlgmr.msra.gmra.mxu0 %v3416_v59  ;;  %v3899_v37 = vld [vmem:[#allocation8_spill] sm:$0xff] }
 0x229   : > { %2451 = vmatprep.subr.mxu0 %v3894_v24  ;;  %2494 = vmatprep.subr.mxu1 %v2757_v7  ;;  %v3900_v7 = vld [vmem:[#allocation9_spill] sm:$0xff] }
 0x22a   : > { %2452 = vmatpush3.msra.mxu0 %v3895_v25  ;;  %1916 = vmatprep.mubr.f32.mxu0 %v3410_v1 }
 0x22b   : > { %2495 = vmatpush3.msra.mxu1 %v2759_v10  ;;  %2453 = vmatprep.subr.mxu0 %v3896_v26  ;;  %v3901_v10 = vld [vmem:[#allocation10_spill] sm:$0xff] }
 0x22c   : > { %2496 = vmatprep.subr.mxu1 %v2767_v17  ;;  %2454 = vmatpush3.msra.mxu0 %v3897_v32  ;;  %v3902_v17 = vld [vmem:[#allocation19_spill] sm:$0xff] }
 0x22d   : > { %2497 = vmatpush3.msra.mxu1 %v2769_v21  ;;  %2455 = vmatprep.subr.mxu0 %v3898_v33  ;;  %v3903_v21 = vld [vmem:[#allocation20_spill] sm:$0xff] }
 0x22e   : > { %2498 = vmatprep.subr.mxu1 %v2771_v22  ;;  %2456 = vmatpush3.msra.mxu0 %v3899_v37  ;;  %v3904_v22 = vld [vmem:[#allocation21_spill] sm:$0xff] }
 0x22f   : > { %2499 = vmatpush3.msra.mxu1 %v2780_v28  ;;  %2457 = vmatprep.subr.mxu0 %v3900_v7  ;;  %v3905_v28 = vld [vmem:[#allocation22_spill] sm:$0xff] }
 0x230   : > { %2500 = vmatprep.subr.mxu1 %v2782_v29  ;;  %2458 = vmatpush3.msra.mxu0 %v3901_v10  ;;  %v3906_v29 = vld [vmem:[#allocation23_spill] sm:$0xff] }
 0x231   : > { %2501 = vmatpush3.msra.mxu1 %v2795_v51  ;;  %2459 = vmatprep.subr.mxu0 %v3902_v17  ;;  %v3907_v51 = vld [vmem:[#allocation25_spill] sm:$0xff] }
 0x232   : > { %2502 = vmatprep.subr.mxu1 %v2893_v6  ;;  %2460 = vmatpush3.msra.mxu0 %v3903_v21  ;;  %v3918_v6 = vld [vmem:[#allocation63_spill] sm:$0xff] }
 0x233   : > { %2503 = vmatpush3.msra.mxu1 %v2895_v53  ;;  %2461 = vmatprep.subr.mxu0 %v3904_v22  ;;  %v3909_v53 = vld [vmem:[#allocation27_spill] sm:$0xff] }
 0x234   : > { %2504 = vmatprep.subr.mxu1 %v2903_v48  ;;  %2462 = vmatpush3.msra.mxu0 %v3905_v28  ;;  %v3910_v48 = vld [vmem:[#allocation41_spill] sm:$0xff] }
 0x235   : > { %2505 = vmatpush3.msra.mxu1 %v2905_v44  ;;  %2463 = vmatprep.subr.mxu0 %v3906_v29  ;;  %v3911_v44 = vld [vmem:[#allocation42_spill] sm:$0xff] }
 0x236   : > { %2506 = vmatprep.subr.mxu1 %v2907_v57  ;;  %2464 = vmatpush3.msra.mxu0 %v3907_v51  ;;  %v3919_v57 = vld [vmem:[#allocation64_spill] sm:$0xff] }
 0x237   : > { %2507 = vmatpush3.msra.mxu1 %v2916_v43  ;;  %2465 = vmatprep.subr.mxu0 %v3908_v55  ;;  %v3913_v43 = vld [vmem:[#allocation46_spill] sm:$0xff] }
 0x238   : > { %2508 = vmatprep.subr.mxu1 %v2918_v42  ;;  %2466 = vmatpush3.msra.mxu0 %v3909_v53  ;;  %v3914_v42 = vld [vmem:[#allocation47_spill] sm:$0xff] }
 0x239   : > { %2509 = vmatpush3.msra.mxu1 %v2931_v3  ;;  %2467 = vmatprep.subr.mxu0 %v3910_v48  ;;  %v3915_v3 = vld [vmem:[#allocation49_spill] sm:$0xff] }
 0x23a   : > { %2510 = vmatprep.subr.mxu1 %v3013_v62  ;;  %2468 = vmatpush3.msra.mxu0 %v3911_v44  ;;  %v3916_v62 = vld [vmem:[#allocation50_spill] sm:$0xff] }
 0x23b   : > { %2511 = vmatpush3.msra.mxu1 %v3015_v11  ;;  %2469 = vmatprep.subr.mxu0 %v3912_v58  ;;  %v3917_v11 = vld [vmem:[#allocation51_spill] sm:$0xff] }
 0x23c   : > { %2512 = vmatprep.subr.mxu1 %v3020_v5  ;;  %2470 = vmatpush3.msra.mxu0 %v3913_v43  ;;  %v3921_v5 = vld [vmem:[#allocation78_spill] sm:$0xff] }
 0x23d   : > { %2513 = vmatpush3.msra.mxu1 %v3071_v2  ;;  %2471 = vmatprep.subr.mxu0 %v3914_v42  ;;  %v3920_v2 = vld [vmem:[#allocation65_spill] sm:$0xff] }
 0x23e   : > { %2514 = vmatprep.subr.mxu1 %v3076_v52  ;;  %2472 = vmatpush3.msra.mxu0 %v3915_v3  ;;  %v3922_v52 = vld [vmem:[#allocation80_spill] sm:$0xff] }
 0x23f   : > { %2515 = vmatpush3.msra.mxu1 %v3803_v0  ;;  %2473 = vmatprep.subr.mxu0 %v3916_v62 }
 0x240   : > { %2516 = vmatprep.subr.mxu1 %v3805_v54  ;;  %2474 = vmatpush3.msra.mxu0 %v3917_v11 }
 0x241   : > { %2517 = vmatpush3.msra.mxu1 %v3807_v8  ;;  %2475 = vmatprep.subr.mxu0 %v3918_v6 }
 0x242   : > { %2022 = vmatmul.mubr.f32.vlgmr.msra.gmra.mxu1 %v3412_v18  ;;  %2476 = vmatpush3.msra.mxu0 %v3919_v57 }
 0x243   : > { %2477 = vmatprep.subr.mxu0 %v3920_v2 }
 0x244   : > { %2478 = vmatpush3.msra.mxu0 %v3843_v15  ;;  %v2168_v63 = vpop.f32.mrf.mxu1 }
 0x245   : > { %2479 = vmatprep.subr.mxu0 %v3845_v39 }
 0x246   : > { %2480 = vmatpush3.msra.mxu0 %v3921_v5  ;;  %v2169_v8 = vpop.f32.mrf.mxu1 }
 0x247   : > { %2481 = vmatprep.subr.mxu0 %v3922_v52  ;;  %v2170_v15 = vadd.f32 %v2169_v8, %v2168_v63 }
 0x248   : > { %2482 = vmatpush3.msra.mxu0 %v3923_v12 }
 0x249   : > { %1918 = vmatmul.mubr.f32.vlgmr.msra.gmra.mxu0 %v3412_v18 }
 0x24c   : > { %v2133_v49 = vpop.f32.mrf.mxu0 }
 0x24e   : > { %v2134_v0 = vpop.f32.mrf.mxu0 }
 0x24f   : > { %v2135_v14 = vadd.f32 %v2134_v0, %v2133_v49 }
 0x251   : > { %v617_v56 = vadd.f32 %v2170_v15, %v2135_v14 }
 0x265   : > { %v2238_v16 = vpop.f32.mrf.mxu1 }
 0x267   : > { %v2239_v39 = vpop.f32.mrf.mxu1 }
 0x268   : > { %v2240_v30 = vadd.f32 %v2239_v39, %v2238_v16 }
 0x26d   : > { %v2203_v54 = vpop.f32.mrf.mxu0 }
 0x26f   : > { %v2204_v1 = vpop.f32.mrf.mxu0 }
 0x270   : > { %v2205_v4 = vadd.f32 %v2204_v1, %v2203_v54 }
 0x272   : > { %v755_v60 = vadd.f32 %v2205_v4, %v617_v56 }
 0x274   : > { %v863_v18 = vadd.f32 %v2240_v30, %v755_v60 }
 0x287   : > { %v2308_v59 = vpop.f32.mrf.mxu1 }
 0x289   : > { %v2309_v38 = vpop.f32.mrf.mxu1 }
 0x28a   : > { %v2310_v31 = vadd.f32 %v2309_v38, %v2308_v59 }
 0x28e   : > { %v2273_v13 = vpop.f32.mrf.mxu0 }
 0x290   : > { %v2274_v9 = vpop.f32.mrf.mxu0 }
 0x291   : > { %v2275_v61 = vadd.f32 %v2274_v9, %v2273_v13 }
 0x293   : > { %v1031_v34 = vadd.f32 %v2275_v61, %v863_v18 }
 0x295   : > { %v1135_v35 = vadd.f32 %v2310_v31, %v1031_v34 }
 0x297   : > { %1139 = vst.msk [vmem:[%s202_s24] sm:$0xff] %vm1138_vm2, %v1135_v35 }
 0x2bf   : > { %v2378_v40 = vpop.f32.mrf.mxu1 }
 0x2c1   : > { %v2379_v23 = vpop.f32.mrf.mxu1 }
 0x2c2   : > { %v2380_v50 = vadd.f32 %v2379_v23, %v2378_v40 }
 0x2c7   : > { %v2343_v36 = vpop.f32.mrf.mxu0 }
 0x2c9   : > { %v2344_v41 = vpop.f32.mrf.mxu0 }
 0x2ca   : > { %v2345_v47 = vadd.f32 %v2344_v41, %v2343_v36 }
 0x2cc   : > { %v1506_v24 = vadd.f32 %v2380_v50, %v2345_v47 }
 0x2e0   : > { %v2448_v27 = vpop.f32.mrf.mxu1 }
 0x2e2   : > { %v2449_v20 = vpop.f32.mrf.mxu1 }
 0x2e3   : > { %v2450_v33 = vadd.f32 %v2449_v20, %v2448_v27 }
 0x2e8   : > { %v2413_v45 = vpop.f32.mrf.mxu0 }
 0x2ea   : > { %v2414_v46 = vpop.f32.mrf.mxu0 }
 0x2eb   : > { %v2415_v19 = vadd.f32 %v2414_v46, %v2413_v45 }
 0x2ed   : > { %v1644_v26 = vadd.f32 %v2415_v19, %v1506_v24 }
 0x2ef   : > { %v1752_v10 = vadd.f32 %v2450_v33, %v1644_v26 }
 0x302   : > { %v2518_v25 = vpop.f32.mrf.mxu1 }
 0x304   : > { %v2519_v37 = vpop.f32.mrf.mxu1 }
 0x305   : > { %v2520_v21 = vadd.f32 %v2519_v37, %v2518_v25 }
 0x309   : > { %v2483_v32 = vpop.f32.mrf.mxu0 }
 0x30b   : > { %v2484_v7 = vpop.f32.mrf.mxu0 }
 0x30c   : > { %v2485_v17 = vadd.f32 %v2484_v7, %v2483_v32 }
 0x30e   : > { %v1920_v22 = vadd.f32 %v2485_v17, %v1752_v10 }
 0x310   : > { %v2024_v28 = vadd.f32 %v2520_v21, %v1920_v22 }
 0x312   : > { %2097 = vst.msk [vmem:[%s202_s24 + $0x8] sm:$0xff] %vm1138_vm2, %v2024_v28 }
 0x313 PF: > { %s14_s15 = sadd.s32 1, %s2539_s15  }
 0x314   : > { %p11_p4 = scmp.ge.s32.totalorder %s14_s15, 4  }
 0x316   :  { %13 = sbr.rel (!%p11_p4) target bundleno = 1 (0x1), region = 68 }

// kernel: conv_block_downsample_forward.3
= control target key start
LH: loop header
LB: loop body
LE: loop exit
PB: predicated region body
PF: predicated region fallthrough
CT: control target
= control target key end

     0   :  { %s1992_s15 = smov 0   ;;  %s2907_s0 = inlined_call_operand.vmem [shape: f32[4,8,256], index: 0, kind: input, shape index: {}]   ;;  %s2908_s1 = inlined_call_operand.vmem [shape: f32[8,72], index: 1, kind: input, shape index: {}]   ;;  %s2909_s2 = inlined_call_operand.vmem [shape: f32[8,1], index: 2, kind: input, shape index: {}]   ;;  %s2910_s3 = inlined_call_operand.vmem [shape: f32[4,8,256], index: 3, kind: output, shape index: {0}]   ;;  %s2911_s4 = inlined_call_operand.vmem [shape: f32[2,8,128], index: 4, kind: output, shape index: {1}]  }
   0x1 LB: > { %s1998_s16 = sadd.s32 4294967295, %s1955_s15   ;;  %p1914_p0 = scmp.ge.s32.totalorder %s1955_s15, 1  ;;  %s1955_s15 = sphi %s1992_s15, %s15_s15  }
   0x2   : > { %p167_p1 = scmp.lt.s32.totalorder %s1955_s15, 3 }
   0x4   : > { %p168_p2 = pnand %p1914_p0, %p167_p1 }
   0x6   : > { %171 = sbr.rel (%p168_p2) target bundleno = 619 (0x26b), region = 32 }
   0xb   : > { %s1915_s17 = sshll.u32 %s1998_s16, 1  ;;  %s1957_s22 = smov 112   ;;  %v2926_v2 = vmov 0.0   ;;  %v217_v5 = vlaneseq  ;;  %v1966_v7 = vmov 0   ;;  %v261_v8 = vld [vmem:[%s2909_s2] sm:$0xff]  ;;  %vm373_vm10 = vcmask 588800  }
   0xc   : > { %p200_p3 = scmp.lt.s32.totalorder %s1915_s17, 3  ;;  %s1958_s23 = smov 111   ;;  %459 = vmatprep.mubr.f32.mxu0 %v2926_v2  ;;  %625 = vmatprep.mubr.f32.mxu1 %v2926_v2  ;;  %v260_v32 = vld [vmem:[%s2908_s1] sm:$0xff] }
   0xd   : > { %s1959_s24 = smov 113   ;;  %s1960_s25 = smov 127   ;;  %v2053_v6 = vand.u32 127, %v217_v5  ;;  %1948 = vset.pattern.permute.xlu0 %v1966_v7  ;;  %v2155_v45 = vsel %vm373_vm10, %v260_v32, 0 }
   0xe   : > { %s2995_s17 = smov (!%p200_p3, %s1915_s17), 3  ;;  %s1961_s26 = smov 1   ;;  %v2192_v63 = vand.u32 4294901760, %v2155_v45 }
   0xf   : > { %s1928_s18 = sshll.u32 %s2995_s17, 4  ;;  %s1962_s27 = smov 15   ;;  %v2059_v9 = vadd.s32 128, %v2053_v6  ;;  %v224_v14 = vand.u32 15, %v2053_v6  ;;  %vm346_vm2 = vcmp.lt.s32.totalorder %v2053_v6, 112  ;;  %vm359_vm3 = vcmp.lt.s32.totalorder %v2053_v6, 111 }
  0x10   : > { %s2011_s21 = scalar_lea.vmem %s2907_s0, %s1928_s18  ;;  %s1964_s28 = smov 16   ;;  %vm333_vm7 = vcmp.lt.s32.totalorder %v2053_v6, 113  ;;  %vm320_vm8 = vcmp.lt.s32.totalorder %v2053_v6, 127  ;;  %vm2912_vm11 = vcmp.lt.s32.totalorder %v2053_v6, 1  ;;  %vm244_vm13 = vcmp.ge.s32.totalorder %v2053_v6, 16 }
  0x11   : > { %v2014_v0 = vld [vmem:[%s2011_s21] sm:$0xff]  ;;  %v263_v1 = vld [vmem:[%s2011_s21 + $0x8] sm:$0xff]  ;;  %s1965_s29 = smov 17   ;;  %v2030_v3 = vld [vmem:[%s2011_s21 + $0x18] sm:$0xff]  ;;  %v231_v11 = vand.u32 15, %v2059_v9  ;;  %vm247_vm0 = vcmp.lt.s32.totalorder %v2059_v9, 240  ;;  %s2891_s10 = scalar_lea.vmem %s2910_s3, %s1928_s18 }
  0x12   : > { %342 = vrot.lane.b32.xlu1 %v2014_v0, %s1957_s22  ;;  %355 = vrot.lane.b32.xlu0 %v2014_v0, %s1958_s23  ;;  %v2033_v4 = vld [vmem:[%s2011_s21 + $0x10] sm:$0xff]  ;;  %v2061_v10 = vand.u32 4294901760, %v263_v1  ;;  %v2065_v12 = vand.u32 4294901760, %v2014_v0  ;;  %vm2083_vm4 = vcmp.le.s32.totalorder %v224_v14, 14  ;;  %vm2095_vm6 = vcmp.ge.s32.totalorder %v224_v14, 1  ;;  %p213_p4 = scmp.lt.s32.totalorder %s1998_s16, 1 }
  0x13   : > { %vm2072_vm1 = vcmp.le.s32.totalorder %v231_v11, 14  ;;  %vm2101_vm9 = vcmp.ge.s32.totalorder %v231_v11, 1  ;;  %vm294_vm14 = vcmp.lt.s32.totalorder %v2053_v6, 15  ;;  %vm2918_vm15 = vcmp.lt.s32.totalorder %v2053_v6, 16  ;;  %vm2254_vm10 = vmand %vm244_vm13, %vm2083_vm4 }
  0x14   : > { %v2068_v13 = vsub.f32 %v263_v1, %v2061_v10  ;;  %v2079_v19 = vsub.f32 %v2014_v0, %v2065_v12  ;;  %vm2091_vm5 = vmand %vm247_vm0, %vm2072_vm1  ;;  %s2997_s16 = smov (!%p213_p4, %s1998_s16), 1 }
  0x15   : > { %vm2144_vm12 = vmand %vm247_vm0, %vm2101_vm9  ;;  %s1921_s11 = sshll.u32 %s2997_s16, 3 }
  0x16   : > { %344 = vrot.lane.b32.xlu1 %v263_v1, %s1957_s22  ;;  %357 = vrot.lane.b32.xlu0 %v263_v1, %s1958_s23  ;;  %v2914_v18 = vand.u32 4294901760, %v2068_v13  ;;  %v2913_v27 = vand.u32 4294901760, %v2079_v19  ;;  %s216_s14 = scalar_lea.vmem %s2911_s4, %s1921_s11 }
  0x18   : > { %v2108_v26 = vsub.f32 %v2068_v13, %v2914_v18  ;;  %v2152_v44 = vsub.f32 %v2079_v19, %v2913_v27 }
  0x1a   : > { %331 = vrot.lane.b32.xlu1 %v263_v1, %s1959_s24  ;;  %329 = vrot.lane.b32.xlu0 %v2014_v0, %s1959_s24  ;;  %v537_v53 = vand.u32 4294901760, %v2108_v26 }
  0x1e   : > { %318 = vrot.lane.b32.xlu1 %v263_v1, %s1960_s25  ;;  %316 = vrot.lane.b32.xlu0 %v2014_v0, %s1960_s25 }
  0x22   : > { %305 = vrot.lane.b32.xlu1 %v263_v1, %s1961_s26  ;;  %303 = vrot.lane.b32.xlu0 %v2014_v0, %s1961_s26 }
  0x26   : > { %292 = vrot.lane.b32.xlu1 %v263_v1, %s1962_s27  ;;  %290 = vrot.lane.b32.xlu0 %v2014_v0, %s1962_s27 }
  0x2a   : > { %279 = vrot.lane.b32.xlu1 %v263_v1, %s1964_s28  ;;  %277 = vrot.lane.b32.xlu0 %v2014_v0, %s1964_s28 }
  0x2e   : > { %266 = vrot.lane.b32.xlu1 %v263_v1, %s1965_s29  ;;  %264 = vrot.lane.b32.xlu0 %v2014_v0, %s1965_s29 }
  0x32   : > { %1123 = vrot.lane.b32.xlu1 %v2030_v3, %s1958_s23  ;;  %1121 = vrot.lane.b32.xlu0 %v2033_v4, %s1958_s23 }
  0x36   : > { %1115 = vrot.lane.b32.xlu1 %v2030_v3, %s1957_s22  ;;  %1113 = vrot.lane.b32.xlu0 %v2033_v4, %s1957_s22 }
  0x3a   : > { %1107 = vrot.lane.b32.xlu1 %v2030_v3, %s1959_s24  ;;  %1105 = vrot.lane.b32.xlu0 %v2033_v4, %s1959_s24 }
  0x3e   : > { %1099 = vrot.lane.b32.xlu1 %v2030_v3, %s1960_s25  ;;  %1097 = vrot.lane.b32.xlu0 %v2033_v4, %s1960_s25 }
  0x42   : > { %1091 = vrot.lane.b32.xlu1 %v2030_v3, %s1961_s26  ;;  %1089 = vrot.lane.b32.xlu0 %v2033_v4, %s1961_s26 }
  0x46   : > { %1083 = vrot.lane.b32.xlu1 %v2030_v3, %s1962_s27  ;;  %1081 = vrot.lane.b32.xlu0 %v2033_v4, %s1962_s27 }
  0x4a   : > { %1075 = vrot.lane.b32.xlu1 %v2030_v3, %s1964_s28  ;;  %1073 = vrot.lane.b32.xlu0 %v2033_v4, %s1964_s28 }
  0x4e   : > { %1067 = vrot.lane.b32.xlu1 %v2030_v3, %s1965_s29  ;;  %1065 = vrot.lane.b32.xlu0 %v2033_v4, %s1965_s29 }
  0x52   : > { %370 = vperm.xlu0 %1948, %v261_v8  }
  0x84   : > { %v343_v15 = vpop.permute.xlu1 %342  ;;  %v356_v16 = vpop.permute.xlu0 %355 }
  0x88   : > { %v345_v23 = vpop.permute.xlu1 %344  ;;  %v358_v24 = vpop.permute.xlu0 %357 }
  0x89   : > { %v347_v28 = vsel %vm346_vm2, %v343_v15, %v345_v23  ;;  %v348_v29 = vsel %vm346_vm2, %v345_v23, %v343_v15  ;;  %v360_v30 = vsel %vm359_vm3, %v356_v16, %v358_v24  ;;  %v361_v31 = vsel %vm359_vm3, %v358_v24, %v356_v16 }
  0x8a   : > { %v354_v33 = vsel %vm247_vm0, %v348_v29, 0.0  ;;  %v2124_v34 = vand.u32 4294901760, %v347_v28  ;;  %v366_v35 = vsel %vm2083_vm4, %v360_v30, 0.0  ;;  %v367_v36 = vsel %vm2091_vm5, %v361_v31, 0.0 }
  0x8b   : > { %v2130_v37 = vand.u32 4294901760, %v354_v33  ;;  %v2132_v38 = vand.u32 4294901760, %v367_v36  ;;  %v2134_v39 = vand.u32 4294901760, %v366_v35 }
  0x8c   : > { %v2138_v40 = vsub.f32 %v347_v28, %v2124_v34  ;;  %v332_v41 = vpop.permute.xlu1 %331  ;;  %v330_v43 = vpop.permute.xlu0 %329 }
  0x8d   : > { %v2158_v46 = vsub.f32 %v354_v33, %v2130_v37  ;;  %v2161_v47 = vsub.f32 %v367_v36, %v2132_v38  ;;  %v2164_v48 = vsub.f32 %v366_v35, %v2134_v39  ;;  %v334_v49 = vsel %vm333_vm7, %v330_v43, %v332_v41  ;;  %392 = vmatprep.subr.mxu0 %v2132_v38 }
  0x8e   : > { %v335_v50 = vsel %vm333_vm7, %v332_v41, %v330_v43  ;;  %v340_v51 = vsel %vm2095_vm6, %v334_v49, 0.0  ;;  %394 = vmatpush1.msra.mxu0 %v2134_v39  ;;  %v2921_v52 = vand.u32 4294901760, %v2138_v40 }
  0x8f   : > { %v341_v54 = vsel %vm2144_vm12, %v335_v50, 0.0  ;;  %v2179_v55 = vand.u32 4294901760, %v340_v51  ;;  %396 = vmatprep.subr.mxu0 %v2130_v37  ;;  %v2925_v56 = vand.u32 4294901760, %v2161_v47  ;;  %v2923_v57 = vand.u32 4294901760, %v2164_v48 }
  0x90   : > { %v2184_v58 = vand.u32 4294901760, %v341_v54  ;;  %v319_v59 = vpop.permute.xlu1 %318  ;;  %398 = vmatpush1.msra.mxu0 %v2124_v34  ;;  %v317_v60 = vpop.permute.xlu0 %316  ;;  %v2922_v61 = vand.u32 4294901760, %v2158_v46  ;;  %v506_v62 = vsub.f32 %v2138_v40, %v2921_v52 }
  0x91   : > { %v2195_v0 = vsub.f32 %v340_v51, %v2179_v55  ;;  %v321_v1 = vsel %vm320_vm8, %v317_v60, %v319_v59  ;;  %v322_v5 = vsel %vm320_vm8, %v319_v59, %v317_v60  ;;  %v488_v7 = vsub.f32 %v2161_v47, %v2925_v56 }
  0x92   : > { %v2205_v8 = vsub.f32 %v341_v54, %v2184_v58  ;;  %v327_v11 = vsel %vm2083_vm4, %v321_v1, 0.0  ;;  %v328_v14 = vsel %vm2072_vm1, %v322_v5, 0.0  ;;  %400 = vmatprep.subr.mxu0 %v2184_v58  ;;  %v494_v15 = vsub.f32 %v2164_v48, %v2923_v57 }
  0x93   : > { %v2216_v16 = vand.u32 4294901760, %v328_v14  ;;  %v2218_v23 = vand.u32 4294901760, %v327_v11  ;;  %402 = vmatpush1.msra.mxu0 %v2179_v55  ;;  %v489_v24 = vand.u32 4294901760, %v488_v7  ;;  %v500_v28 = vsub.f32 %v2158_v46, %v2922_v61 }
  0x94   : > { %v306_v29 = vpop.permute.xlu1 %305  ;;  %v304_v30 = vpop.permute.xlu0 %303  ;;  %v495_v31 = vand.u32 4294901760, %v494_v15  ;;  %v507_v32 = vand.u32 4294901760, %v506_v62  ;;  %v2920_v33 = vand.u32 4294901760, %v2205_v8  ;;  %v2917_v35 = vand.u32 4294901760, %v2195_v0 }
  0x95   : > { %v2227_v36 = vsub.f32 %v328_v14, %v2216_v16  ;;  %v2230_v41 = vsub.f32 %v327_v11, %v2218_v23  ;;  %v308_v43 = vsel %vm2912_vm11, %v304_v30, %v306_v29  ;;  %v309_v49 = vsel %vm2912_vm11, %v306_v29, %v304_v30  ;;  %404 = vmatprep.subr.mxu0 %v2216_v16 }
  0x96   : > { %v314_v50 = vsel %vm2095_vm6, %v309_v49, 0.0  ;;  %v315_v51 = vsel %vm2101_vm9, %v308_v43, 0.0  ;;  %490 = vmatprep.subr.mxu1 %v489_v24  ;;  %406 = vmatpush1.msra.mxu0 %v2218_v23  ;;  %v501_v54 = vand.u32 4294901760, %v500_v28  ;;  %v512_v59 = vsub.f32 %v2205_v8, %v2920_v33 }
  0x97   : > { %v2245_v60 = vand.u32 4294901760, %v315_v51  ;;  %v2247_v62 = vand.u32 4294901760, %v314_v50  ;;  %496 = vmatpush1.msra.mxu1 %v495_v31  ;;  %408 = vmatprep.subr.mxu0 %v2061_v10  ;;  %v518_v5 = vsub.f32 %v2195_v0, %v2917_v35  ;;  %v2915_v7 = vand.u32 4294901760, %v2227_v36 }
  0x98   : > { %502 = vmatprep.subr.mxu1 %v501_v54  ;;  %v293_v11 = vpop.permute.xlu1 %292  ;;  %v291_v14 = vpop.permute.xlu0 %290  ;;  %410 = vmatpush1.msra.mxu0 %v2065_v12  ;;  %v513_v15 = vand.u32 4294901760, %v512_v59  ;;  %v2916_v24 = vand.u32 4294901760, %v2230_v41  ;;  %vm268_vm11 = vcmp.lt.s32.totalorder %v2053_v6, 17  ;;  %v2267_v28 = vsub.f32 %v2155_v45, %v2192_v63 }
  0x99   : > { %v2270_v29 = vsub.f32 %v315_v51, %v2245_v60  ;;  %v2273_v30 = vsub.f32 %v314_v50, %v2247_v62  ;;  %508 = vmatpush1.msra.mxu1 %v507_v32  ;;  %v295_v31 = vsel %vm294_vm14, %v291_v14, %v293_v11  ;;  %v296_v43 = vsel %vm294_vm14, %v293_v11, %v291_v14 }
  0x9a   : > { %2957 = vst [vmem:[#allocation2_spill] sm:$0xff] %v2267_v28  ;;  %v301_v49 = vsel %vm2254_vm10, %v296_v43, 0.0  ;;  %v302_v45 = vsel %vm2072_vm1, %v295_v31, 0.0  ;;  %412 = vmatprep.subr.mxu0 %v2245_v60  ;;  %514 = vmatprep.subr.mxu1 %v513_v15  ;;  %v519_v51 = vand.u32 4294901760, %v518_v5  ;;  %v524_v32 = vsub.f32 %v2227_v36, %v2915_v7 }
  0x9b   : > { %v2287_v50 = vand.u32 4294901760, %v302_v45  ;;  %v2289_v54 = vand.u32 4294901760, %v301_v49  ;;  %414 = vmatpush1.msra.mxu0 %v2247_v62  ;;  %v530_v59 = vsub.f32 %v2230_v41, %v2916_v24  ;;  %v2919_v11 = vand.u32 4294901760, %v2270_v29 }
  0x9c   : > { %520 = vmatpush1.msra.mxu1 %v519_v51  ;;  %v280_v14 = vpop.permute.xlu1 %279  ;;  %v278_v15 = vpop.permute.xlu0 %277  ;;  %v525_v5 = vand.u32 4294901760, %v524_v32  ;;  %v543_v31 = vand.u32 4294901760, %v2152_v44  ;;  %v2924_v43 = vand.u32 4294901760, %v2273_v30  ;;  %v2299_v27 = vand.u32 4294901760, %v2267_v28 }
  0x9d   : > { %v2302_v18 = vsub.f32 %v302_v45, %v2287_v50  ;;  %v2305_v7 = vsub.f32 %v301_v49, %v2289_v54  ;;  %v282_v24 = vsel %vm2918_vm15, %v278_v15, %v280_v14  ;;  %v283_v51 = vsel %vm2918_vm15, %v280_v14, %v278_v15  ;;  %416 = vmatprep.subr.mxu0 %v2287_v50  ;;  %vm2326_vm15 = vmand %vm244_vm13, %vm2095_vm6 }
  0x9e   : > { %v288_v44 = vsel %vm244_vm13, %v283_v51, 0.0  ;;  %v2314_v32 = vand.u32 4294901760, %v282_v24  ;;  %526 = vmatprep.subr.mxu1 %v525_v5  ;;  %418 = vmatpush1.msra.mxu0 %v2289_v54  ;;  %v531_v45 = vand.u32 4294901760, %v530_v59  ;;  %v548_v49 = vsub.f32 %v2270_v29, %v2919_v11 }
  0x9f   : > { %v2320_v35 = vand.u32 4294901760, %v288_v44  ;;  %v2958_v14 = vmov 0  ;;  %v554_v15 = vsub.f32 %v2273_v30, %v2924_v43  ;;  %v2928_v59 = vand.u32 4294901760, %v2302_v18 }
  0xa0   : > { %v2959_v14 = vsel %vm2326_vm15, 4294967295, %v2958_v14  ;;  %v2929_v5 = vand.u32 4294901760, %v2305_v7  ;;  %v2336_v51 = vsub.f32 %v282_v24, %v2314_v32  ;;  %532 = vmatpush1.msra.mxu1 %v531_v45  ;;  %v267_v11 = vpop.permute.xlu1 %266  ;;  %v265_v33 = vpop.permute.xlu0 %264  ;;  %420 = vmatprep.subr.mxu0 %v2314_v32  ;;  %v549_v52 = vand.u32 4294901760, %v548_v49 }
  0xa1   : > { %2960 = vst [vmem:[#allocation3_spill] sm:$0xff] %v2959_v14  ;;  %v463_v61 = vsub.f32 %v2267_v28, %v2299_v27  ;;  %v2342_v57 = vsub.f32 %v288_v44, %v2320_v35  ;;  %538 = vmatprep.subr.mxu1 %v537_v53  ;;  %v269_v43 = vsel %vm268_vm11, %v265_v33, %v267_v11  ;;  %v555_v45 = vand.u32 4294901760, %v554_v15 }
  0xa2   : > { %v270_v24 = vsel %vm268_vm11, %v267_v11, %v265_v33  ;;  %422 = vmatpush1.msra.mxu0 %v2320_v35  ;;  %v276_v56 = vsel %vm2101_vm9, %v269_v43, 0.0  ;;  %544 = vmatpush1.msra.mxu1 %v543_v31  ;;  %v560_v26 = vsub.f32 %v2302_v18, %v2928_v59  ;;  %v566_v53 = vsub.f32 %v2305_v7, %v2929_v5 }
  0xa3   : > { %v275_v49 = vsel %vm2326_vm15, %v270_v24, 0.0  ;;  %v2361_v44 = vand.u32 4294901760, %v276_v56  ;;  %550 = vmatprep.subr.mxu1 %v549_v52  ;;  %v2932_v11 = vand.u32 4294901760, %v2336_v51  ;;  %v2931_v15 = vand.u32 4294901760, %v2342_v57 }
  0xa4   : > { %v2363_v33 = vand.u32 4294901760, %v275_v49  ;;  %556 = vmatpush1.msra.mxu1 %v555_v45  ;;  %v561_v43 = vand.u32 4294901760, %v560_v26  ;;  %v567_v31 = vand.u32 4294901760, %v566_v53  ;;  %v2367_v24 = vand.u32 4294901760, %v463_v61  ;;  %v2369_v2 = vpop.permute.xlu1 %1123  ;;  %v2371_v59 = vpop.permute.xlu0 %1121 }
  0xa5   : > { %v2374_v5 = vsub.f32 %v276_v56, %v2361_v44  ;;  %424 = vmatprep.subr.mxu0 %v2361_v44  ;;  %v572_v52 = vsub.f32 %v2336_v51, %v2932_v11  ;;  %v578_v61 = vsub.f32 %v2342_v57, %v2931_v15  ;;  %v1126_v56 = vsel %vm359_vm3, %v2369_v2, %v2371_v59 }
  0xa6   : > { %2961 = vst [vmem:[#allocation4_spill] sm:$0xff] %v2367_v24  ;;  %v2377_v14 = vsub.f32 %v275_v49, %v2363_v33  ;;  %562 = vmatprep.subr.mxu1 %v561_v43  ;;  %426 = vmatpush1.msra.mxu0 %v2363_v33  ;;  %v2397_v43 = vsel %vm2091_vm5, %v1126_v56, 0.0  ;;  %v2962_v56 = vmov 0.0   ;;  %vm1817_vm5 = vcmp.eq.s32.totalorder %v2053_v6, 1 }
  0xa7   : > { %568 = vmatpush1.msra.mxu1 %v567_v31  ;;  %649 = vmatprep.subr.mxu0 %v2161_v47  ;;  %v573_v45 = vand.u32 4294901760, %v572_v52  ;;  %v579_v49 = vand.u32 4294901760, %v578_v61  ;;  %v2935_v26 = vand.u32 4294901760, %v2374_v5 }
  0xa8   : > { %v2934_v53 = vand.u32 4294901760, %v2377_v14  ;;  %465 = vmatmul.mubr.f32.vlgmr.msra.gmra.mxu0 %v2367_v24  ;;  %v2399_v15 = vpop.permute.xlu1 %1115  ;;  %v2401_v11 = vpop.permute.xlu0 %1113 }
  0xa9   : > { %574 = vmatprep.subr.mxu1 %v573_v45  ;;  %652 = vmatpush1.msra.mxu0 %v2164_v48  ;;  %v584_v31 = vsub.f32 %v2374_v5, %v2935_v26  ;;  %v2964_v26 = vand.u32 4294901760, %v2164_v48  ;;  %v2968_v48 = vand.u32 4294901760, %v2195_v0 }
  0xaa   : > { %v590_v52 = vsub.f32 %v2377_v14, %v2934_v53  ;;  %580 = vmatpush1.msra.mxu1 %v579_v49  ;;  %655 = vmatprep.subr.mxu0 %v2158_v46 }
  0xab   : > { %658 = vmatpush1.msra.mxu0 %v2138_v40  ;;  %v585_v21 = vand.u32 4294901760, %v584_v31  ;;  %733 = vmatprep.mubr.f32.mxu0 %v2962_v56 }
  0xac   : > { %v591_v61 = vand.u32 4294901760, %v590_v52  ;;  %661 = vmatprep.subr.mxu0 %v2205_v8  ;;  %v2414_v45 = vpop.permute.xlu1 %1107  ;;  %v2416_v24 = vpop.permute.xlu0 %1105 }
  0xad   : > { %664 = vmatpush1.msra.mxu0 %v2195_v0  ;;  %586 = vmatprep.subr.mxu1 %v585_v21  ;;  %v1110_v49 = vsel %vm333_vm7, %v2414_v45, %v2416_v24  ;;  %v1125_v21 = vsel %vm359_vm3, %v2371_v59, %v2369_v2  ;;  %v2967_v59 = vand.u32 4294901760, %v2205_v8  ;;  %v1118_v8 = vsel %vm346_vm2, %v2399_v15, %v2401_v11 }
  0xae   : > { %667 = vmatprep.subr.mxu0 %v2227_v36  ;;  %592 = vmatpush1.msra.mxu1 %v591_v61  ;;  %v2426_v31 = vsel %vm2144_vm12, %v1110_v49, 0.0  ;;  %v2963_v61 = vand.u32 4294901760, %v2161_v47  ;;  %v1127_v2 = vsel %vm2083_vm4, %v1125_v21, 0.0  ;;  %v2966_v47 = vand.u32 4294901760, %v2138_v40 }
  0xaf   : > { %670 = vmatpush1.msra.mxu0 %v2230_v41  ;;  %627 = vmatmul.mubr.f32.vlgmr.msra.gmra.mxu1 %v2192_v63  ;;  %v2486_v40 = vand.u32 4294901760, %v1127_v2  ;;  %v1109_v9 = vsel %vm333_vm7, %v2416_v24, %v2414_v45  ;;  %vm2983_vm3 = vcmp.lt.s32.totalorder %v2053_v6, 16 }
  0xb0   : > { %673 = vmatprep.subr.mxu0 %v2068_v13  ;;  %757 = vmatprep.subr.mxu1 %v2132_v38  ;;  %v1100_v42 = vpop.permute.xlu1 %1099  ;;  %v1098_v52 = vpop.permute.xlu0 %1097 }
  0xb1   : > { %676 = vmatpush1.msra.mxu0 %v2079_v19  ;;  %759 = vmatpush1.msra.mxu1 %v2134_v39  ;;  %v1101_v24 = vsel %vm320_vm8, %v1098_v52, %v1100_v42 }
  0xb2   : > { %679 = vmatprep.subr.mxu0 %v2270_v29  ;;  %761 = vmatprep.subr.mxu1 %v2130_v37 }
  0xb3   : > { %682 = vmatpush1.msra.mxu0 %v2273_v30  ;;  %763 = vmatpush1.msra.mxu1 %v2124_v34 }
  0xb4   : > { %685 = vmatprep.subr.mxu0 %v2302_v18  ;;  %765 = vmatprep.subr.mxu1 %v2184_v58  ;;  %v2459_v49 = vpop.permute.xlu1 %1091  ;;  %v2461_v53 = vpop.permute.xlu0 %1089 }
  0xb5   : > { %688 = vmatpush1.msra.mxu0 %v2305_v7  ;;  %767 = vmatpush1.msra.mxu1 %v2179_v55 }
  0xb6   : > { %691 = vmatprep.subr.mxu0 %v2336_v51  ;;  %769 = vmatprep.subr.mxu1 %v2216_v16 }
  0xb7   : > { %694 = vmatpush1.msra.mxu0 %v2342_v57  ;;  %771 = vmatpush1.msra.mxu1 %v2218_v23 }
  0xb8   : > { %697 = vmatprep.subr.mxu0 %v2374_v5  ;;  %773 = vmatprep.subr.mxu1 %v2061_v10  ;;  %v1084_v0 = vpop.permute.xlu1 %1083  ;;  %v1082_v21 = vpop.permute.xlu0 %1081 }
  0xb9   : > { %700 = vmatpush1.msra.mxu0 %v2377_v14  ;;  %775 = vmatpush1.msra.mxu1 %v2065_v12 }
  0xba   : > { %736 = vmatmul.mubr.f32.vlgmr.msra.gmra.mxu0 %v2267_v28  ;;  %777 = vmatprep.subr.mxu1 %v2245_v60  ;;  %v2965_v28 = vand.u32 4294901760, %v2158_v46  ;;  %v2481_v46 = vand.u32 4294901760, %v2030_v3 }
  0xbb   : > { %851 = vmatprep.subr.mxu0 %v2963_v61  ;;  %779 = vmatpush1.msra.mxu1 %v2247_v62  ;;  %v2970_v61 = vand.u32 4294901760, %v2230_v41 }
  0xbc   : > { %855 = vmatpush1.msra.mxu0 %v2964_v26  ;;  %781 = vmatprep.subr.mxu1 %v2287_v50  ;;  %v2969_v26 = vand.u32 4294901760, %v2227_v36  ;;  %v1120_v36 = vsel %vm247_vm0, %v1118_v8, 0.0  ;;  %v2512_v41 = vsub.f32 %v2030_v3, %v2481_v46  ;;  %v2973_v3 = vand.u32 4294901760, %v2270_v29  ;;  %v1076_v29 = vpop.permute.xlu1 %1075  ;;  %v1074_v45 = vpop.permute.xlu0 %1073 }
  0xbd   : > { %859 = vmatprep.subr.mxu0 %v2965_v28  ;;  %783 = vmatpush1.msra.mxu1 %v2289_v54  ;;  %v2484_v28 = vand.u32 4294901760, %v2033_v4  ;;  %v1111_v8 = vsel %vm2095_vm6, %v1109_v9, 0.0  ;;  %vm2978_vm0 = vcmp.lt.s32.totalorder %v2053_v6, 1  ;;  %v1078_v22 = vsel %vm2983_vm3, %v1076_v29, %v1074_v45 }
  0xbe   : > { %863 = vmatpush1.msra.mxu0 %v2966_v47  ;;  %785 = vmatprep.subr.mxu1 %v2314_v32  ;;  %v1117_v47 = vsel %vm346_vm2, %v2401_v11, %v2399_v15  ;;  %v2519_v15 = vand.u32 4294901760, %v2397_v43  ;;  %vm2980_vm2 = vmmov %vm2978_vm0 }
  0xbf   : > { %867 = vmatprep.subr.mxu0 %v2967_v59  ;;  %787 = vmatpush1.msra.mxu1 %v2320_v35  ;;  %v2971_v59 = vand.u32 4294901760, %v2068_v13  ;;  %v2516_v11 = vsub.f32 %v2033_v4, %v2484_v28  ;;  %v2522_v13 = vsub.f32 %v1127_v2, %v2486_v40  ;;  %v1102_v4 = vsel %vm320_vm8, %v1100_v42, %v1098_v52 }
  0xc0   : > { %871 = vmatpush1.msra.mxu0 %v2968_v48  ;;  %789 = vmatprep.subr.mxu1 %v2361_v44  ;;  %v2972_v48 = vand.u32 4294901760, %v2079_v19  ;;  %v2531_v19 = vand.u32 4294901760, %v1117_v47  ;;  %v2538_v2 = vand.u32 4294901760, %v1120_v36  ;;  %v1104_v42 = vsel %vm2072_vm1, %v1102_v4, 0.0 }
  0xc1   : > { %875 = vmatprep.subr.mxu0 %v2969_v26  ;;  %791 = vmatpush1.msra.mxu1 %v2363_v33  ;;  %v2937_v26 = vand.u32 4294901760, %v2516_v11  ;;  %v2566_v52 = vand.u32 4294901760, %v2426_v31  ;;  %v1094_v20 = vsel %vm2980_vm2, %v2459_v49, %v2461_v53 }
  0xc2   : > { %824 = vmatprep.mubr.f32.mxu1 %v2962_v56  ;;  %879 = vmatpush1.msra.mxu0 %v2970_v61  ;;  %v1093_v61 = vsel %vm2978_vm0, %v2461_v53, %v2459_v49  ;;  %v1086_v53 = vsel %vm294_vm14, %v1084_v0, %v1082_v21  ;;  %v1066_v49 = vpop.permute.xlu0 %1065 }
  0xc3   : > { %828 = vmatmul.mubr.f32.vlgmr.msra.gmra.mxu1 %v2299_v27  ;;  %883 = vmatprep.subr.mxu0 %v2971_v59  ;;  %v2981_v59 = vand.u32 4294901760, %v2374_v5  ;;  %v2618_v4 = vsub.f32 %v2426_v31, %v2566_v52 }
  0xc4   : > { %975 = vmatprep.subr.mxu1 %v2132_v38  ;;  %887 = vmatpush1.msra.mxu0 %v2972_v48  ;;  %v2974_v38 = vand.u32 4294901760, %v2273_v30  ;;  %v2938_v30 = vand.u32 4294901760, %v2512_v41  ;;  %v2589_v48 = vand.u32 4294901760, %v1104_v42 }
  0xc5   : > { %977 = vmatpush1.msra.mxu1 %v2134_v39  ;;  %891 = vmatprep.subr.mxu0 %v2973_v3  ;;  %v2975_v39 = vand.u32 4294901760, %v2302_v18  ;;  %v1245_v18 = vand.u32 4294901760, %v2522_v13 }
  0xc6   : > { %979 = vmatprep.subr.mxu1 %v2130_v37  ;;  %895 = vmatpush1.msra.mxu0 %v2974_v38  ;;  %v2976_v37 = vand.u32 4294901760, %v2305_v7  ;;  %v2563_v7 = vsub.f32 %v1117_v47, %v2531_v19  ;;  %v2580_v47 = vand.u32 4294901760, %v1111_v8  ;;  %v1095_v38 = vsel %vm2095_vm6, %v1094_v20, 0.0 }
  0xc7   : > { %981 = vmatpush1.msra.mxu1 %v2124_v34  ;;  %899 = vmatprep.subr.mxu0 %v2975_v39  ;;  %v2554_v34 = vsub.f32 %v2397_v43, %v2519_v15  ;;  %v1103_v43 = vsel %vm2083_vm4, %v1101_v24, 0.0  ;;  %v2640_v31 = vsub.f32 %v1104_v42, %v2589_v48  ;;  %v1087_v39 = vsel %vm2254_vm10, %v1086_v53, 0.0 }
  0xc8   : > { %983 = vmatprep.subr.mxu1 %v2184_v58  ;;  %903 = vmatpush1.msra.mxu0 %v2976_v37  ;;  %v2977_v58 = vand.u32 4294901760, %v2336_v51  ;;  %v2578_v51 = vsub.f32 %v1120_v36, %v2538_v2  ;;  %v2599_v36 = vsub.f32 %v2512_v41, %v2938_v30  ;;  %v2606_v5 = vand.u32 4294901760, %v1103_v43 }
  0xc9   : > { %985 = vmatpush1.msra.mxu1 %v2179_v55  ;;  %v2979_v55 = vand.u32 4294901760, %v2342_v57  ;;  %v1085_v57 = vsel %vm294_vm14, %v1082_v21, %v1084_v0  ;;  %952 = vmatprep.mubr.f32.mxu0 %v2962_v56  ;;  %v1239_v9 = vand.u32 4294901760, %v2554_v34  ;;  %v1257_v3 = vand.u32 4294901760, %v2563_v7 }
  0xca   : > { %907 = vmatprep.subr.mxu0 %v2977_v58  ;;  %987 = vmatprep.subr.mxu1 %v2216_v16  ;;  %v2982_v16 = vand.u32 4294901760, %v2377_v14  ;;  %v1068_v14 = vpop.permute.xlu1 %1067  ;;  %v2630_v0 = vsub.f32 %v1111_v8, %v2580_v47  ;;  %v1088_v21 = vsel %vm2072_vm1, %v1085_v57, 0.0  ;;  %v2653_v8 = vand.u32 4294901760, %v1095_v38  ;;  %vm2984_vm1 = vmmov %vm2983_vm3 }
  0xcb   : > { %911 = vmatpush1.msra.mxu0 %v2979_v55  ;;  %989 = vmatpush1.msra.mxu1 %v2218_v23  ;;  %v2604_v23 = vsub.f32 %v2516_v11, %v2937_v26  ;;  %v1069_v17 = vsel %vm268_vm11, %v1066_v49, %v1068_v14  ;;  %v1077_v37 = vsel %vm2984_vm1, %v1074_v45, %v1076_v29  ;;  %v2661_v42 = vand.u32 4294901760, %v1088_v21 }
  0xcc   : > { %915 = vmatprep.subr.mxu0 %v2981_v59  ;;  %991 = vmatprep.subr.mxu1 %v2061_v10  ;;  %v1096_v10 = vsel %vm2101_vm9, %v1093_v61, 0.0  ;;  %v1070_v1 = vsel %vm268_vm11, %v1068_v14, %v1066_v49  ;;  %v1240_v58 = vsub.f32 %v2554_v34, %v1239_v9  ;;  %v1263_v29 = vand.u32 4294901760, %v2618_v4 }
  0xcd   : > { %919 = vmatpush1.msra.mxu0 %v2982_v16  ;;  %993 = vmatpush1.msra.mxu1 %v2065_v12  ;;  %v2627_v12 = vsub.f32 %v2522_v13, %v1245_v18  ;;  %v2642_v24 = vand.u32 4294901760, %v1096_v10  ;;  %v2672_v45 = vand.u32 4294901760, %v1087_v39  ;;  %v2684_v55 = vand.u32 4294901760, %v1077_v37 }
  0xce   : > { %954 = vmatmul.mubr.f32.vlgmr.msra.gmra.mxu0 %v2192_v63  ;;  %995 = vmatprep.subr.mxu1 %v2245_v60  ;;  %v1251_v60 = vand.u32 4294901760, %v2578_v51  ;;  %v1071_v59 = vsel %vm2326_vm15, %v1070_v1, 0.0  ;;  %v1258_v25 = vsub.f32 %v2563_v7, %v1257_v3  ;;  %v2696_v16 = vsub.f32 %v1095_v38, %v2653_v8 }
  0xcf   : > { %1144 = vmatprep.subr.mxu0 %v2519_v15  ;;  %997 = vmatpush1.msra.mxu1 %v2247_v62  ;;  %v2651_v62 = vsub.f32 %v1103_v43, %v2606_v5  ;;  %v1072_v43 = vsel %vm2101_vm9, %v1069_v17, 0.0  ;;  %v2682_v61 = vsub.f32 %v1096_v10, %v2642_v24  ;;  %v1241_v14 = vand.u32 4294901760, %v1240_v58 }
  0xd0   : > { %1146 = vmatpush1.msra.mxu0 %v2486_v40  ;;  %999 = vmatprep.subr.mxu1 %v2287_v50  ;;  %v1079_v50 = vsel %vm244_vm13, %v1078_v22, 0.0  ;;  %v2705_v53 = vand.u32 4294901760, %v1072_v43  ;;  %v1264_v49 = vsub.f32 %v2618_v4, %v1263_v29  ;;  %v2713_v38 = vsub.f32 %v1087_v39, %v2672_v45 }
  0xd1   : > { %1148 = vmatprep.subr.mxu0 %v2538_v2  ;;  %1001 = vmatpush1.msra.mxu1 %v2289_v54  ;;  %v1269_v54 = vand.u32 4294901760, %v2630_v0  ;;  %v2939_v57 = vand.u32 4294901760, %v2651_v62  ;;  %v2698_v10 = vand.u32 4294901760, %v1079_v50  ;;  %v2715_v22 = vand.u32 4294901760, %v1071_v59 }
  0xd2   : > { %1150 = vmatpush1.msra.mxu0 %v2531_v19  ;;  %1003 = vmatprep.subr.mxu1 %v2314_v32  ;;  %v1252_v32 = vsub.f32 %v2578_v51, %v1251_v60  ;;  %v2724_v17 = vsub.f32 %v1077_v37, %v2684_v55  ;;  %v1299_v58 = vand.u32 4294901760, %v2682_v61  ;;  %v1305_v20 = vand.u32 4294901760, %v2696_v16 }
  0xd3   : > { %1152 = vmatprep.subr.mxu0 %v2566_v52  ;;  %1005 = vmatpush1.msra.mxu1 %v2320_v35  ;;  %v2940_v35 = vand.u32 4294901760, %v2640_v31  ;;  %v1259_v37 = vand.u32 4294901760, %v1258_v25  ;;  %v1265_v26 = vand.u32 4294901760, %v1264_v49  ;;  %vm1815_vm4 = vcmp.eq.s32.totalorder %v2053_v6, 0 }
  0xd4   : > { %1154 = vmatpush1.msra.mxu0 %v2580_v47  ;;  %1007 = vmatprep.subr.mxu1 %v2361_v44  ;;  %v2703_v44 = vsub.f32 %v1088_v21, %v2661_v42  ;;  %v1270_v21 = vsub.f32 %v2630_v0, %v1269_v54  ;;  %v1253_v39 = vand.u32 4294901760, %v1252_v32  ;;  %v2740_v32 = vsub.f32 %v1072_v43, %v2705_v53 }
  0xd5   : > { %1156 = vmatprep.subr.mxu0 %v2589_v48  ;;  %1009 = vmatpush1.msra.mxu1 %v2363_v33  ;;  %v1247_v33 = vand.u32 4294901760, %v2627_v12  ;;  %v1276_v1 = vsub.f32 %v2640_v31, %v2940_v35  ;;  %v2733_v12 = vsub.f32 %v1079_v50, %v2698_v10  ;;  %v2941_v50 = vand.u32 4294901760, %v2713_v38 }
  0xd6   : > { %1042 = vmatprep.mubr.f32.mxu1 %v2962_v56  ;;  %1158 = vmatpush1.msra.mxu0 %v2606_v5  ;;  %v1311_v30 = vand.u32 4294901760, %v2703_v44  ;;  %v1271_v25 = vand.u32 4294901760, %v1270_v21  ;;  %v1300_v49 = vsub.f32 %v2682_v61, %v1299_v58  ;;  %v1295_v21 = vand.u32 4294901760, %v2604_v23 }
  0xd7   : > { %1044 = vmatmul.mubr.f32.vlgmr.msra.gmra.mxu1 %v2192_v63  ;;  %1160 = vmatprep.subr.mxu0 %v2481_v46  ;;  %v1277_v43 = vand.u32 4294901760, %v1276_v1  ;;  %v1329_v35 = vand.u32 4294901760, %v2733_v12  ;;  %v1335_v1 = vand.u32 4294901760, %v2740_v32  ;;  %v1318_v23 = vsub.f32 %v2713_v38, %v2941_v50 }
  0xd8   : > { %1242 = vmatprep.subr.mxu1 %v1241_v14  ;;  %1162 = vmatpush1.msra.mxu0 %v2484_v28  ;;  %v1282_v14 = vsub.f32 %v2651_v62, %v2939_v57  ;;  %v2942_v57 = vand.u32 4294901760, %v2724_v17 }
  0xd9   : > { %1248 = vmatpush1.msra.mxu1 %v1247_v33  ;;  %1164 = vmatprep.subr.mxu0 %v2642_v24  ;;  %v2746_v33 = vsub.f32 %v1071_v59, %v2715_v22 }
  0xda   : > { %1254 = vmatprep.subr.mxu1 %v1253_v39  ;;  %1166 = vmatpush1.msra.mxu0 %v2653_v8  ;;  %v1289_v39 = vand.u32 4294901760, %v2599_v36  ;;  %v1283_v59 = vand.u32 4294901760, %v1282_v14  ;;  %v1312_v36 = vsub.f32 %v2703_v44, %v1311_v30  ;;  %v1301_v14 = vand.u32 4294901760, %v1300_v49  ;;  %v2986_v49 = vld [vmem:[#allocation4_spill] sm:$0xff] }
  0xdb   : > { %1260 = vmatpush1.msra.mxu1 %v1259_v37  ;;  %1168 = vmatprep.subr.mxu0 %v2661_v42  ;;  %v1341_v37 = vand.u32 4294901760, %v2746_v33 }
  0xdc   : > { %1266 = vmatprep.subr.mxu1 %v1265_v26  ;;  %1170 = vmatpush1.msra.mxu0 %v2672_v45  ;;  %v1306_v26 = vsub.f32 %v2696_v16, %v1305_v20  ;;  %v1313_v50 = vand.u32 4294901760, %v1312_v36 }
  0xdd   : > { %1272 = vmatpush1.msra.mxu1 %v1271_v25  ;;  %1172 = vmatprep.subr.mxu0 %v2684_v55  ;;  %v1324_v25 = vsub.f32 %v2724_v17, %v2942_v57  ;;  %v1319_v57 = vand.u32 4294901760, %v1318_v23 }
  0xde   : > { %1278 = vmatprep.subr.mxu1 %v1277_v43  ;;  %1174 = vmatpush1.msra.mxu0 %v2698_v10  ;;  %v1307_v43 = vand.u32 4294901760, %v1306_v26 }
  0xdf   : > { %1284 = vmatpush1.msra.mxu1 %v1283_v59  ;;  %1176 = vmatprep.subr.mxu0 %v2705_v53  ;;  %v1330_v59 = vsub.f32 %v2733_v12, %v1329_v35  ;;  %v1325_v26 = vand.u32 4294901760, %v1324_v25 }
  0xe0   : > { %1290 = vmatprep.subr.mxu1 %v1289_v39  ;;  %1178 = vmatpush1.msra.mxu0 %v2715_v22  ;;  %v1336_v39 = vsub.f32 %v2740_v32, %v1335_v1 }
  0xe1   : > { %1296 = vmatpush1.msra.mxu1 %v1295_v21  ;;  %1211 = vmatprep.mubr.f32.mxu0 %v2962_v56  ;;  %v1342_v21 = vsub.f32 %v2746_v33, %v1341_v37  ;;  %v1331_v36 = vand.u32 4294901760, %v1330_v59 }
  0xe2   : > { %1302 = vmatprep.subr.mxu1 %v1301_v14  ;;  %1401 = vmatprep.subr.mxu0 %v2554_v34  ;;  %v1337_v14 = vand.u32 4294901760, %v1336_v39  ;;  %v2989_v34 = vand.u32 4294901760, %v2651_v62 }
  0xe3   : > { %1217 = vmatmul.mubr.f32.vlgmr.msra.gmra.mxu0 %v2986_v49  ;;  %1308 = vmatpush1.msra.mxu1 %v1307_v43  ;;  %v1343_v23 = vand.u32 4294901760, %v1342_v21 }
  0xe4   : > { %1404 = vmatpush1.msra.mxu0 %v2522_v13  ;;  %1314 = vmatprep.subr.mxu1 %v1313_v50  ;;  %v2988_v13 = vand.u32 4294901760, %v2640_v31 }
  0xe5   : > { %1407 = vmatprep.subr.mxu0 %v2578_v51  ;;  %1320 = vmatpush1.msra.mxu1 %v1319_v57  ;;  %v2987_v57 = vld [vmem:[#allocation2_spill] sm:$0xff] }
  0xe6   : > { %1410 = vmatpush1.msra.mxu0 %v2563_v7  ;;  %1326 = vmatprep.subr.mxu1 %v1325_v26  ;;  %v2991_v7 = vand.u32 4294901760, %v2516_v11 }
  0xe7   : > { %1413 = vmatprep.subr.mxu0 %v2618_v4  ;;  %1332 = vmatpush1.msra.mxu1 %v1331_v36 }
  0xe8   : > { %1416 = vmatpush1.msra.mxu0 %v2630_v0  ;;  %1338 = vmatprep.subr.mxu1 %v1337_v14 }
  0xe9   : > { %1419 = vmatprep.subr.mxu0 %v2640_v31  ;;  %1344 = vmatpush1.msra.mxu1 %v1343_v23 }
  0xea   : > { %1377 = vmatprep.mubr.f32.mxu1 %v2962_v56  ;;  %1422 = vmatpush1.msra.mxu0 %v2651_v62 }
  0xeb   : > { %1379 = vmatmul.mubr.f32.vlgmr.msra.gmra.mxu1 %v2192_v63  ;;  %1425 = vmatprep.subr.mxu0 %v2512_v41 }
  0xec   : > { %1509 = vmatprep.subr.mxu1 %v2519_v15  ;;  %1428 = vmatpush1.msra.mxu0 %v2516_v11 }
  0xed   : > { %1511 = vmatpush1.msra.mxu1 %v2486_v40  ;;  %1431 = vmatprep.subr.mxu0 %v2682_v61 }
  0xee   : > { %1513 = vmatprep.subr.mxu1 %v2538_v2  ;;  %1434 = vmatpush1.msra.mxu0 %v2696_v16 }
  0xef   : > { %1515 = vmatpush1.msra.mxu1 %v2531_v19  ;;  %1437 = vmatprep.subr.mxu0 %v2703_v44 }
  0xf0   : > { %1517 = vmatprep.subr.mxu1 %v2566_v52  ;;  %1440 = vmatpush1.msra.mxu0 %v2713_v38 }
  0xf1   : > { %1519 = vmatpush1.msra.mxu1 %v2580_v47  ;;  %1443 = vmatprep.subr.mxu0 %v2724_v17 }
  0xf2   : > { %1521 = vmatprep.subr.mxu1 %v2589_v48  ;;  %1446 = vmatpush1.msra.mxu0 %v2733_v12 }
  0xf3   : > { %1523 = vmatpush1.msra.mxu1 %v2606_v5  ;;  %1449 = vmatprep.subr.mxu0 %v2740_v32 }
  0xf4   : > { %1525 = vmatprep.subr.mxu1 %v2481_v46  ;;  %1452 = vmatpush1.msra.mxu0 %v2746_v33 }
  0xf5   : > { %1485 = vmatprep.mubr.f32.mxu0 %v2962_v56  ;;  %1527 = vmatpush1.msra.mxu1 %v2484_v28 }
  0xf6   : > { %1488 = vmatmul.mubr.f32.vlgmr.msra.gmra.mxu0 %v2987_v57  ;;  %1529 = vmatprep.subr.mxu1 %v2642_v24 }
  0xf7   : > { %1603 = vmatprep.subr.mxu0 %v1239_v9  ;;  %1531 = vmatpush1.msra.mxu1 %v2653_v8 }
  0xf8   : > { %1607 = vmatpush1.msra.mxu0 %v1245_v18  ;;  %1533 = vmatprep.subr.mxu1 %v2661_v42  ;;  %v2990_v18 = vand.u32 4294901760, %v2512_v41 }
  0xf9   : > { %1611 = vmatprep.subr.mxu0 %v1251_v60  ;;  %1535 = vmatpush1.msra.mxu1 %v2672_v45 }
  0xfa   : > { %1615 = vmatpush1.msra.mxu0 %v1257_v3  ;;  %1537 = vmatprep.subr.mxu1 %v2684_v55 }
  0xfb   : > { %1619 = vmatprep.subr.mxu0 %v1263_v29  ;;  %1539 = vmatpush1.msra.mxu1 %v2698_v10 }
  0xfc   : > { %1623 = vmatpush1.msra.mxu0 %v1269_v54  ;;  %1541 = vmatprep.subr.mxu1 %v2705_v53 }
  0xfd   : > { %1627 = vmatprep.subr.mxu0 %v2988_v13  ;;  %1543 = vmatpush1.msra.mxu1 %v2715_v22 }
  0xfe   : > { %1576 = vmatprep.mubr.f32.mxu1 %v2962_v56  ;;  %1631 = vmatpush1.msra.mxu0 %v2989_v34 }
  0xff   : > { %1580 = vmatmul.mubr.f32.vlgmr.msra.gmra.mxu1 %v2299_v27  ;;  %1635 = vmatprep.subr.mxu0 %v2990_v18  ;;  %v2992_v27 = vand.u32 4294901760, %v2713_v38 }
 0x100   : > { %1727 = vmatprep.subr.mxu1 %v2519_v15  ;;  %1639 = vmatpush1.msra.mxu0 %v2991_v7 }
 0x101   : > { %1729 = vmatpush1.msra.mxu1 %v2486_v40  ;;  %1643 = vmatprep.subr.mxu0 %v1299_v58  ;;  %v2993_v40 = vand.u32 4294901760, %v2724_v17 }
 0x102   : > { %1731 = vmatprep.subr.mxu1 %v2538_v2  ;;  %1647 = vmatpush1.msra.mxu0 %v1305_v20 }
 0x103   : > { %1733 = vmatpush1.msra.mxu1 %v2531_v19  ;;  %1651 = vmatprep.subr.mxu0 %v1311_v30 }
 0x104   : > { %1735 = vmatprep.subr.mxu1 %v2566_v52  ;;  %1655 = vmatpush1.msra.mxu0 %v2992_v27 }
 0x105   : > { %1737 = vmatpush1.msra.mxu1 %v2580_v47  ;;  %1659 = vmatprep.subr.mxu0 %v2993_v40 }
 0x106   : > { %1739 = vmatprep.subr.mxu1 %v2589_v48  ;;  %1663 = vmatpush1.msra.mxu0 %v1329_v35 }
 0x107   : > { %1741 = vmatpush1.msra.mxu1 %v2606_v5  ;;  %1667 = vmatprep.subr.mxu0 %v1335_v1 }
 0x108   : > { %1743 = vmatprep.subr.mxu1 %v2481_v46  ;;  %1671 = vmatpush1.msra.mxu0 %v1341_v37 }
 0x109   : > { %1704 = vmatprep.mubr.f32.mxu0 %v2962_v56  ;;  %1745 = vmatpush1.msra.mxu1 %v2484_v28  ;;  %v371_v28 = vpop.permute.xlu0 %370 }
 0x10a   : > { %1706 = vmatmul.mubr.f32.vlgmr.msra.gmra.mxu0 %v2192_v63  ;;  %1747 = vmatprep.subr.mxu1 %v2642_v24 }
 0x10b   : > { %1749 = vmatpush1.msra.mxu1 %v2653_v8  ;;  %1794 = vmatprep.mubr.f32.mxu1 %v2962_v56 }
 0x10c   : > { %1751 = vmatprep.subr.mxu1 %v2661_v42 }
 0x10d   : > { %1753 = vmatpush1.msra.mxu1 %v2672_v45 }
 0x10e   : > { %1755 = vmatprep.subr.mxu1 %v2684_v55 }
 0x10f   : > { %1757 = vmatpush1.msra.mxu1 %v2698_v10 }
 0x110   : > { %1759 = vmatprep.subr.mxu1 %v2705_v53 }
 0x111   : > { %1761 = vmatpush1.msra.mxu1 %v2715_v22 }
 0x112   : > { %1796 = vmatmul.mubr.f32.vlgmr.msra.gmra.mxu1 %v2192_v63 }
 0x168   : > { %v466_v46 = vpop.f32.mrf.mxu0 }
 0x169   : > { %v467_v56 = vadd.f32 %v466_v46, %v371_v28 }
 0x16a   : > { %v468_v41 = vpop.f32.mrf.mxu0 }
 0x16b   : > { %v469_v2 = vadd.f32 %v468_v41, %v371_v28 }
 0x16f   : > { %v628_v11 = vpop.f32.mrf.mxu1 }
 0x170   : > { %v629_v51 = vadd.f32 %v628_v11, %v467_v56 }
 0x171   : > { %v630_v19 = vpop.f32.mrf.mxu1 }
 0x172   : > { %v631_v48 = vadd.f32 %v630_v19, %v469_v2 }
 0x17a   : > { %v737_v15 = vpop.f32.mrf.mxu0 }
 0x17b   : > { %v738_v5 = vadd.f32 %v737_v15, %v629_v51 }
 0x17c   : > { %v739_v30 = vpop.f32.mrf.mxu0 }
 0x17d   : > { %v740_v3 = vadd.f32 %v739_v30, %v631_v48 }
 0x183   : > { %v829_v52 = vpop.f32.mrf.mxu1 }
 0x184   : > { %v830_v4 = vadd.f32 %v829_v52, %v738_v5 }
 0x185   : > { %v831_v9 = vpop.f32.mrf.mxu1 }
 0x186   : > { %v832_v63 = vadd.f32 %v831_v9, %v740_v3 }
 0x18e   : > { %v955_v47 = vpop.f32.mrf.mxu0 }
 0x18f   : > { %v956_v60 = vadd.f32 %v955_v47, %v830_v4 }
 0x190   : > { %v957_v0 = vpop.f32.mrf.mxu0 }
 0x191   : > { %v958_v24 = vadd.f32 %v957_v0, %v832_v63 }
 0x197   : > { %v1045_v31 = vpop.f32.mrf.mxu1 }
 0x198   : > { %v1046_v62 = vadd.f32 %v1045_v31, %v956_v60 }
 0x199   : > { %v1047_v8 = vpop.f32.mrf.mxu1 }
 0x19a   : > { %1050 = vst [vmem:[%s2891_s10] sm:$0xff] %v1046_v62  ;;  %v1048_v42 = vadd.f32 %v1047_v8, %v958_v24  ;;  %v1056_v54 = vmul.f32 %v1046_v62, %v1046_v62 }
 0x19c   : > { %1051 = vst [vmem:[%s2891_s10 + $0x8] sm:$0xff] %v1048_v42  ;;  %v1052_v29 = vadd.f32 %v1048_v42, %v1046_v62  ;;  %v1057_v45 = vmul.f32 %v1048_v42, %v1048_v42 }
 0x19e   : > { %1053 = vadd.xlane.f32.xlu1 %v1052_v29  ;;  %v1058_v61 = vadd.f32 %v1057_v45, %v1056_v54 }
 0x1a0   : > { %1059 = vadd.xlane.f32.xlu0 %v1058_v61 }
 0x1a3   : > { %v1218_v55 = vpop.f32.mrf.mxu0 }
 0x1a4   : > { %v1219_v44 = vadd.f32 %v1218_v55, %v371_v28 }
 0x1a5   : > { %v1220_v35 = vpop.f32.mrf.mxu0 }
 0x1a6   : > { %v1221_v38 = vadd.f32 %v1220_v35, %v371_v28 }
 0x1ab   : > { %v1380_v16 = vpop.f32.mrf.mxu1 }
 0x1ac   : > { %v1381_v58 = vadd.f32 %v1380_v16, %v1219_v44 }
 0x1ad   : > { %v1382_v53 = vpop.f32.mrf.mxu1 }
 0x1ae   : > { %v1383_v12 = vadd.f32 %v1382_v53, %v1221_v38 }
 0x1b6   : > { %v1489_v10 = vpop.f32.mrf.mxu0 }
 0x1b7   : > { %v1490_v32 = vadd.f32 %v1489_v10, %v1381_v58 }
 0x1b8   : > { %v1491_v22 = vpop.f32.mrf.mxu0 }
 0x1b9   : > { %v1492_v33 = vadd.f32 %v1491_v22, %v1383_v12 }
 0x1bf   : > { %v1581_v17 = vpop.f32.mrf.mxu1 }
 0x1c0   : > { %v1582_v1 = vadd.f32 %v1581_v17, %v1490_v32 }
 0x1c1   : > { %v1583_v50 = vpop.f32.mrf.mxu1 }
 0x1c2   : > { %v1584_v25 = vadd.f32 %v1583_v50, %v1492_v33 }
 0x1ca   : > { %v1707_v20 = vpop.f32.mrf.mxu0 }
 0x1cb   : > { %v1708_v43 = vadd.f32 %v1707_v20, %v1582_v1 }
 0x1cc   : > { %v1709_v37 = vpop.f32.mrf.mxu0 }
 0x1cd   : > { %v1710_v39 = vadd.f32 %v1709_v37, %v1584_v25 }
 0x1d2   : > { %v1797_v59 = vpop.f32.mrf.mxu1 }
 0x1d3   : > { %v1798_v49 = vadd.f32 %v1797_v59, %v1708_v43 }
 0x1d4   : > { %v1799_v21 = vpop.f32.mrf.mxu1 }
 0x1d5   : > { %1924 = vst [vmem:[%s2891_s10 + $0x10] sm:$0xff] %v1798_v49  ;;  %v1800_v26 = vadd.f32 %v1799_v21, %v1710_v39  ;;  %v1809_v14 = vmul.f32 %v1798_v49, %v1798_v49 }
 0x1d7   : > { %1925 = vst [vmem:[%s2891_s10 + $0x18] sm:$0xff] %v1800_v26  ;;  %v1805_v36 = vadd.f32 %v1800_v26, %v1798_v49  ;;  %v1810_v23 = vmul.f32 %v1800_v26, %v1800_v26 }
 0x1d9   : > { %1806 = vadd.xlane.f32.xlu1 %v1805_v36  ;;  %v1811_v57 = vadd.f32 %v1810_v23, %v1809_v14 }
 0x1db   : > { %1812 = vadd.xlane.f32.xlu0 %v1811_v57 }
 0x227   : > { %v1054_v13 = vpop.xlane.xlu1 %1053 }
 0x229   : > { %v1060_v34 = vpop.xlane.xlu0 %1059 }
 0x262   : > { %v1807_v18 = vpop.xlane.xlu1 %1806 }
 0x263   : > { %v1808_v7 = vadd.f32 %v1807_v18, %v1054_v13 }
 0x264   : > { %v1813_v27 = vpop.xlane.xlu0 %1812 }
 0x265   : > { %v1814_v40 = vadd.f32 %v1813_v27, %v1060_v34  ;;  %v1816_v46 = vsel %vm1815_vm4, %v1808_v7, 0.0 }
 0x267   : > { %v1818_v28 = vsel %vm1817_vm5, %v1814_v40, 0.0 }
 0x268   : > { %v1819_v41 = vadd.f32 %v1818_v28, %v1816_v46 }
 0x26a   : > { %1820 = vst [vmem:[%s216_s14] sm:$0xff] %v1819_v41 }
 0x26b PF: > { %s15_s15 = sadd.s32 1, %s1955_s15  }
 0x26c   : > { %p12_p5 = scmp.ge.s32.totalorder %s15_s15, 4  }
 0x26e   :  { %14 = sbr.rel (!%p12_p5) target bundleno = 1 (0x1), region = 76 }

// kernel: conv_block_downsample_forward.4
= control target key start
LH: loop header
LB: loop body
LE: loop exit
PB: predicated region body
PF: predicated region fallthrough
CT: control target
= control target key end

     0   :  { %s2093_s21 = smov 0   ;;  %s3023_s0 = inlined_call_operand.vmem [shape: f32[4,8,256], index: 0, kind: input, shape index: {}]   ;;  %s3024_s1 = inlined_call_operand.vmem [shape: f32[8,72], index: 1, kind: input, shape index: {}]   ;;  %s3025_s2 = inlined_call_operand.vmem [shape: f32[8,1], index: 2, kind: input, shape index: {}]   ;;  %s3026_s3 = inlined_call_operand.vmem [shape: f32[8,1], index: 3, kind: input, shape index: {}]   ;;  %s3027_s4 = inlined_call_operand.vmem [shape: f32[8,1], index: 4, kind: input, shape index: {}]   ;;  %s3028_s5 = inlined_call_operand.vmem [shape: f32[4,8,256], index: 5, kind: output, shape index: {0}]   ;;  %s3029_s6 = inlined_call_operand.vmem [shape: f32[2,8,128], index: 6, kind: output, shape index: {1}]  }
   0x1 LB: > { %s2099_s22 = sadd.s32 4294967295, %s2046_s21   ;;  %p2004_p0 = scmp.ge.s32.totalorder %s2046_s21, 1  ;;  %s2046_s21 = sphi %s2093_s21, %s17_s21  }
   0x2   : > { %p217_p1 = scmp.lt.s32.totalorder %s2046_s21, 3 }
   0x4   : > { %p218_p2 = pnand %p2004_p0, %p217_p1 }
   0x6   : > { %221 = sbr.rel (%p218_p2) target bundleno = 746 (0x2ea), region = 40 }
   0xb   : > { %v318_v0 = vld [vmem:[%s3026_s3] sm:$0xff]  ;;  %v2048_v1 = vmov 0   ;;  %s2005_s27 = sshll.u32 %s2099_s22, 1  ;;  %s2049_s8 = smov 111   ;;  %v3046_v19 = vmov 0.0   ;;  %v271_v25 = vlaneseq  ;;  %vm445_vm8 = vcmask 588800  }
   0xc   : > { %2038 = vset.pattern.permute.xlu0 %v2048_v1  ;;  %2039 = vset.pattern.permute.xlu1 %v2048_v1  ;;  %v326_v2 = vld [vmem:[%s3027_s4] sm:$0xff]  ;;  %p254_p3 = scmp.lt.s32.totalorder %s2005_s27, 3  ;;  %s2050_s9 = smov 112  }
   0xd   : > { %321 = vperm.xlu0 %2038, %v318_v0   ;;  %1140 = vperm.xlu1 %2039, %v318_v0   ;;  %s2051_s10 = smov 113   ;;  %s2052_s11 = smov 127   ;;  %v315_v24 = vld [vmem:[%s3025_s2] sm:$0xff]  ;;  %v2183_v26 = vand.u32 127, %v271_v25 }
   0xe   : > { %s3113_s27 = smov (!%p254_p3, %s2005_s27), 3  ;;  %s2053_s12 = smov 1   ;;  %531 = vmatprep.mubr.f32.mxu0 %v3046_v19  ;;  %697 = vmatprep.mubr.f32.mxu1 %v3046_v19  ;;  %v314_v54 = vld [vmem:[%s3024_s1] sm:$0xff] }
   0xf   : > { %s2018_s28 = sshll.u32 %s3113_s27, 4  ;;  %s2054_s13 = smov 15   ;;  %v2186_v27 = vadd.s32 128, %v2183_v26  ;;  %v278_v29 = vand.u32 15, %v2183_v26  ;;  %vm431_vm2 = vcmp.lt.s32.totalorder %v2183_v26, 111  ;;  %vm418_vm5 = vcmp.lt.s32.totalorder %v2183_v26, 112 }
  0x10   : > { %s258_s7 = scalar_lea.vmem %s3023_s0, %s2018_s28  ;;  %s2056_s14 = smov 16   ;;  %vm405_vm7 = vcmp.lt.s32.totalorder %v2183_v26, 113  ;;  %vm392_vm10 = vcmp.lt.s32.totalorder %v2183_v26, 127  ;;  %vm379_vm12 = vcmp.lt.s32.totalorder %v2183_v26, 1  ;;  %vm298_vm13 = vcmp.ge.s32.totalorder %v2183_v26, 16 }
  0x11   : > { %329 = vperm.xlu0 %2038, %v326_v2   ;;  %1148 = vperm.xlu1 %2039, %v326_v2   ;;  %v316_v4 = vld [vmem:[%s258_s7] sm:$0xff]  ;;  %v317_v5 = vld [vmem:[%s258_s7 + $0x8] sm:$0xff]  ;;  %v2012_v14 = vld [vmem:[%s258_s7 + $0x10] sm:$0xff]  ;;  %s2057_s15 = smov 17   ;;  %v285_v28 = vand.u32 15, %v2186_v27  ;;  %vm301_vm0 = vcmp.lt.s32.totalorder %v2186_v27, 240  ;;  %s3007_s24 = scalar_lea.vmem %s3028_s5, %s2018_s28 }
  0x12   : > { %v2013_v15 = vld [vmem:[%s258_s7 + $0x18] sm:$0xff]  ;;  %vm2202_vm3 = vcmp.le.s32.totalorder %v278_v29, 14  ;;  %vm2261_vm9 = vcmp.ge.s32.totalorder %v278_v29, 1  ;;  %vm3031_vm14 = vcmp.lt.s32.totalorder %v2183_v26, 15  ;;  %p267_p4 = scmp.lt.s32.totalorder %s2099_s22, 1 }
  0x13   : > { %vm2191_vm1 = vcmp.le.s32.totalorder %v285_v28, 14  ;;  %vm2235_vm6 = vcmp.ge.s32.totalorder %v285_v28, 1  ;;  %vm2385_vm15 = vmand %vm298_vm13, %vm2202_vm3 }
  0x14   : > { %vm2210_vm4 = vmand %vm301_vm0, %vm2191_vm1  ;;  %s3115_s22 = smov (!%p267_p4, %s2099_s22), 1 }
  0x15   : > { %vm2272_vm11 = vmand %vm301_vm0, %vm2235_vm6  ;;  %s2011_s25 = sshll.u32 %s3115_s22, 3 }
  0x16   : > { %s270_s28 = scalar_lea.vmem %s3029_s6, %s2011_s25 }
  0x88   : > { %v322_v3 = vpop.permute.xlu0 %321  ;;  %v1141_v13 = vpop.permute.xlu1 %1140 }
  0x89   : > { %v324_v6 = vmul.f32 %v322_v3, %v316_v4  ;;  %v325_v7 = vmul.f32 %v322_v3, %v317_v5  ;;  %v1143_v16 = vmul.f32 %v2012_v14, %v1141_v13  ;;  %v1144_v17 = vmul.f32 %v2013_v15, %v1141_v13 }
  0x8a   : > { %v447_v3 = vsel %vm445_vm8, %v314_v54, 0  ;;  %vm3037_vm8 = vcmp.lt.s32.totalorder %v2183_v26, 16 }
  0x8c   : > { %v330_v8 = vpop.permute.xlu0 %329  ;;  %v1149_v18 = vpop.permute.xlu1 %1148 }
  0x8d   : > { %v332_v9 = vadd.f32 %v330_v8, %v324_v6  ;;  %v333_v10 = vadd.f32 %v330_v8, %v325_v7  ;;  %v1151_v20 = vadd.f32 %v1149_v18, %v1143_v16  ;;  %v1152_v21 = vadd.f32 %v1149_v18, %v1144_v17 }
  0x8f   : > { %v2118_v11 = vmax.f32 %v332_v9, 0.0  ;;  %v2120_v12 = vmax.f32 %v333_v10, 0.0  ;;  %v2148_v22 = vmax.f32 %v1151_v20, 0.0  ;;  %v2150_v23 = vmax.f32 %v1152_v21, 0.0 }
  0x90   : > { %v2322_v21 = vand.u32 4294901760, %v447_v3 }
  0x91   : > { %429 = vrot.lane.b32.xlu1 %v2120_v12, %s2049_s8  ;;  %427 = vrot.lane.b32.xlu0 %v2118_v11, %s2049_s8  ;;  %v2196_v31 = vand.u32 4294901760, %v2120_v12  ;;  %v2199_v32 = vand.u32 4294901760, %v2118_v11 }
  0x93   : > { %v2216_v37 = vsub.f32 %v2120_v12, %v2196_v31  ;;  %v2220_v38 = vsub.f32 %v2118_v11, %v2199_v32 }
  0x95   : > { %416 = vrot.lane.b32.xlu1 %v2120_v12, %s2050_s9  ;;  %414 = vrot.lane.b32.xlu0 %v2118_v11, %s2050_s9  ;;  %v3032_v48 = vand.u32 4294901760, %v2216_v37  ;;  %v3030_v49 = vand.u32 4294901760, %v2220_v38 }
  0x97   : > { %v2285_v1 = vsub.f32 %v2216_v37, %v3032_v48  ;;  %v2290_v2 = vsub.f32 %v2220_v38, %v3030_v49 }
  0x99   : > { %403 = vrot.lane.b32.xlu1 %v2120_v12, %s2051_s10  ;;  %401 = vrot.lane.b32.xlu0 %v2118_v11, %s2051_s10 }
  0x9d   : > { %390 = vrot.lane.b32.xlu1 %v2120_v12, %s2052_s11  ;;  %388 = vrot.lane.b32.xlu0 %v2118_v11, %s2052_s11 }
  0xa1   : > { %377 = vrot.lane.b32.xlu1 %v2120_v12, %s2053_s12  ;;  %375 = vrot.lane.b32.xlu0 %v2118_v11, %s2053_s12 }
  0xa5   : > { %364 = vrot.lane.b32.xlu1 %v2120_v12, %s2054_s13  ;;  %362 = vrot.lane.b32.xlu0 %v2118_v11, %s2054_s13 }
  0xa9   : > { %351 = vrot.lane.b32.xlu1 %v2120_v12, %s2056_s14  ;;  %349 = vrot.lane.b32.xlu0 %v2118_v11, %s2056_s14 }
  0xad   : > { %338 = vrot.lane.b32.xlu1 %v2120_v12, %s2057_s15  ;;  %336 = vrot.lane.b32.xlu0 %v2118_v11, %s2057_s15 }
  0xb1   : > { %1213 = vrot.lane.b32.xlu1 %v2150_v23, %s2049_s8  ;;  %1211 = vrot.lane.b32.xlu0 %v2148_v22, %s2049_s8 }
  0xb5   : > { %1205 = vrot.lane.b32.xlu1 %v2150_v23, %s2050_s9  ;;  %1203 = vrot.lane.b32.xlu0 %v2148_v22, %s2050_s9 }
  0xb9   : > { %1197 = vrot.lane.b32.xlu1 %v2150_v23, %s2051_s10  ;;  %1195 = vrot.lane.b32.xlu0 %v2148_v22, %s2051_s10 }
  0xbd   : > { %1189 = vrot.lane.b32.xlu1 %v2150_v23, %s2052_s11  ;;  %1187 = vrot.lane.b32.xlu0 %v2148_v22, %s2052_s11 }
  0xc1   : > { %1181 = vrot.lane.b32.xlu1 %v2150_v23, %s2053_s12  ;;  %1179 = vrot.lane.b32.xlu0 %v2148_v22, %s2053_s12 }
  0xc5   : > { %1173 = vrot.lane.b32.xlu1 %v2150_v23, %s2054_s13  ;;  %1171 = vrot.lane.b32.xlu0 %v2148_v22, %s2054_s13 }
  0xc9   : > { %1165 = vrot.lane.b32.xlu1 %v2150_v23, %s2056_s14  ;;  %1163 = vrot.lane.b32.xlu0 %v2148_v22, %s2056_s14 }
  0xcd   : > { %1157 = vrot.lane.b32.xlu1 %v2150_v23, %s2057_s15  ;;  %1155 = vrot.lane.b32.xlu0 %v2148_v22, %s2057_s15 }
  0xd1   : > { %442 = vperm.xlu0 %2038, %v315_v24  }
 0x103   : > { %v430_v35 = vpop.permute.xlu1 %429  ;;  %v428_v36 = vpop.permute.xlu0 %427 }
 0x104   : > { %v432_v39 = vsel %vm431_vm2, %v428_v36, %v430_v35  ;;  %v433_v40 = vsel %vm431_vm2, %v430_v35, %v428_v36 }
 0x105   : > { %v438_v41 = vsel %vm2202_vm3, %v432_v39, 0.0  ;;  %v439_v42 = vsel %vm2210_vm4, %v433_v40, 0.0 }
 0x106   : > { %v2231_v43 = vand.u32 4294901760, %v439_v42  ;;  %v2233_v44 = vand.u32 4294901760, %v438_v41 }
 0x107   : > { %v417_v46 = vpop.permute.xlu1 %416  ;;  %v415_v47 = vpop.permute.xlu0 %414 }
 0x108   : > { %v2243_v50 = vsub.f32 %v439_v42, %v2231_v43  ;;  %v2246_v51 = vsub.f32 %v438_v41, %v2233_v44  ;;  %v419_v52 = vsel %vm418_vm5, %v415_v47, %v417_v46  ;;  %v420_v53 = vsel %vm418_vm5, %v417_v46, %v415_v47  ;;  %464 = vmatprep.subr.mxu0 %v2231_v43 }
 0x109   : > { %v426_v55 = vsel %vm301_vm0, %v420_v53, 0.0  ;;  %v2258_v56 = vand.u32 4294901760, %v419_v52  ;;  %466 = vmatpush1.msra.mxu0 %v2233_v44 }
 0x10a   : > { %v2266_v58 = vand.u32 4294901760, %v426_v55  ;;  %v3043_v60 = vand.u32 4294901760, %v2243_v50  ;;  %v3042_v61 = vand.u32 4294901760, %v2246_v51 }
 0x10b   : > { %v2280_v62 = vsub.f32 %v419_v52, %v2258_v56  ;;  %v404_v63 = vpop.permute.xlu1 %403  ;;  %v402_v0 = vpop.permute.xlu0 %401 }
 0x10c   : > { %v2294_v4 = vsub.f32 %v426_v55, %v2266_v58  ;;  %v406_v5 = vsel %vm405_vm7, %v402_v0, %v404_v63  ;;  %v407_v6 = vsel %vm405_vm7, %v404_v63, %v402_v0  ;;  %468 = vmatprep.subr.mxu0 %v2266_v58  ;;  %v560_v7 = vsub.f32 %v2243_v50, %v3043_v60 }
 0x10d   : > { %v412_v8 = vsel %vm2261_vm9, %v406_v5, 0.0  ;;  %v413_v9 = vsel %vm2272_vm11, %v407_v6, 0.0  ;;  %470 = vmatpush1.msra.mxu0 %v2258_v56  ;;  %v566_v10 = vsub.f32 %v2246_v51, %v3042_v61  ;;  %v3040_v11 = vand.u32 4294901760, %v2280_v62 }
 0x10e   : > { %v2313_v12 = vand.u32 4294901760, %v413_v9  ;;  %v2315_v13 = vand.u32 4294901760, %v412_v8  ;;  %v561_v14 = vand.u32 4294901760, %v560_v7  ;;  %v3041_v15 = vand.u32 4294901760, %v2294_v4 }
 0x10f   : > { %v391_v16 = vpop.permute.xlu1 %390  ;;  %v389_v17 = vpop.permute.xlu0 %388  ;;  %v567_v18 = vand.u32 4294901760, %v566_v10  ;;  %v578_v20 = vsub.f32 %v2280_v62, %v3040_v11  ;;  %v609_v55 = vand.u32 4294901760, %v2285_v1  ;;  %v2352_v63 = vsub.f32 %v447_v3, %v2322_v21 }
 0x110   : > { %v2325_v24 = vsub.f32 %v413_v9, %v2313_v12  ;;  %v2328_v25 = vsub.f32 %v412_v8, %v2315_v13  ;;  %v393_v28 = vsel %vm392_vm10, %v389_v17, %v391_v16  ;;  %v394_v29 = vsel %vm392_vm10, %v391_v16, %v389_v17  ;;  %472 = vmatprep.subr.mxu0 %v2313_v12 }
 0x111   : > { %v399_v35 = vsel %vm2202_vm3, %v393_v28, 0.0  ;;  %v400_v36 = vsel %vm2191_vm1, %v394_v29, 0.0  ;;  %562 = vmatprep.subr.mxu1 %v561_v14  ;;  %474 = vmatpush1.msra.mxu0 %v2315_v13  ;;  %v572_v39 = vsub.f32 %v2294_v4, %v3041_v15  ;;  %v579_v54 = vand.u32 4294901760, %v578_v20  ;;  %3073 = vst [vmem:[#allocation2_spill] sm:$0xff] %v2352_v63 }
 0x112   : > { %v2344_v40 = vand.u32 4294901760, %v400_v36  ;;  %v2346_v41 = vand.u32 4294901760, %v399_v35  ;;  %568 = vmatpush1.msra.mxu1 %v567_v18  ;;  %v3036_v42 = vand.u32 4294901760, %v2325_v24  ;;  %v3035_v46 = vand.u32 4294901760, %v2328_v25 }
 0x113   : > { %v378_v47 = vpop.permute.xlu1 %377  ;;  %v376_v52 = vpop.permute.xlu0 %375  ;;  %v573_v53 = vand.u32 4294901760, %v572_v39  ;;  %v2394_v39 = vand.u32 4294901760, %v2352_v63 }
 0x114   : > { %v2355_v0 = vsub.f32 %v400_v36, %v2344_v40  ;;  %v2358_v5 = vsub.f32 %v399_v35, %v2346_v41  ;;  %v380_v6 = vsel %vm379_vm12, %v376_v52, %v378_v47  ;;  %v381_v7 = vsel %vm379_vm12, %v378_v47, %v376_v52  ;;  %476 = vmatprep.subr.mxu0 %v2344_v40 }
 0x115   : > { %v386_v8 = vsel %vm2261_vm9, %v381_v7, 0.0  ;;  %v387_v3 = vsel %vm2235_vm6, %v380_v6, 0.0  ;;  %574 = vmatprep.subr.mxu1 %v573_v53  ;;  %478 = vmatpush1.msra.mxu0 %v2346_v41  ;;  %v584_v9 = vsub.f32 %v2325_v24, %v3036_v42  ;;  %v590_v10 = vsub.f32 %v2328_v25, %v3035_v46 }
 0x116   : > { %v2376_v14 = vand.u32 4294901760, %v387_v3  ;;  %v2378_v16 = vand.u32 4294901760, %v386_v8  ;;  %580 = vmatpush1.msra.mxu1 %v579_v54  ;;  %480 = vmatprep.subr.mxu0 %v2196_v31  ;;  %v3034_v18 = vand.u32 4294901760, %v2355_v0  ;;  %v3033_v20 = vand.u32 4294901760, %v2358_v5 }
 0x117   : > { %v365_v28 = vpop.permute.xlu1 %364  ;;  %v363_v29 = vpop.permute.xlu0 %362  ;;  %482 = vmatpush1.msra.mxu0 %v2199_v32  ;;  %v585_v35 = vand.u32 4294901760, %v584_v9  ;;  %v591_v36 = vand.u32 4294901760, %v590_v10  ;;  %v535_v48 = vsub.f32 %v2352_v63, %v2394_v39 }
 0x118   : > { %v2397_v47 = vsub.f32 %v387_v3, %v2376_v14  ;;  %v2400_v52 = vsub.f32 %v386_v8, %v2378_v16  ;;  %v367_v53 = vsel %vm3031_vm14, %v363_v29, %v365_v28  ;;  %v368_v54 = vsel %vm3031_vm14, %v365_v28, %v363_v29  ;;  %484 = vmatprep.subr.mxu0 %v2376_v14 }
 0x119   : > { %v373_v6 = vsel %vm2385_vm15, %v368_v54, 0.0  ;;  %v374_v7 = vsel %vm2191_vm1, %v367_v53, 0.0  ;;  %586 = vmatprep.subr.mxu1 %v585_v35  ;;  %486 = vmatpush1.msra.mxu0 %v2378_v16  ;;  %v596_v8 = vsub.f32 %v2355_v0, %v3034_v18  ;;  %v602_v3 = vsub.f32 %v2358_v5, %v3033_v20 }
 0x11a   : > { %v2418_v9 = vand.u32 4294901760, %v374_v7  ;;  %v2420_v10 = vand.u32 4294901760, %v373_v6  ;;  %592 = vmatpush1.msra.mxu1 %v591_v36  ;;  %v3038_v28 = vand.u32 4294901760, %v2397_v47  ;;  %v3039_v29 = vand.u32 4294901760, %v2400_v52 }
 0x11b   : > { %v352_v35 = vpop.permute.xlu1 %351  ;;  %v350_v53 = vpop.permute.xlu0 %349  ;;  %v597_v54 = vand.u32 4294901760, %v596_v8  ;;  %v603_v49 = vand.u32 4294901760, %v602_v3  ;;  %vm340_vm14 = vcmp.lt.s32.totalorder %v2183_v26, 17  ;;  %v2476_v1 = vand.u32 4294901760, %v535_v48 }
 0x11c   : > { %v2428_v20 = vsub.f32 %v374_v7, %v2418_v9  ;;  %v2431_v18 = vsub.f32 %v373_v6, %v2420_v10  ;;  %v354_v36 = vsel %vm3037_vm8, %v350_v53, %v352_v35  ;;  %v355_v46 = vsel %vm3037_vm8, %v352_v35, %v350_v53  ;;  %488 = vmatprep.subr.mxu0 %v2418_v9  ;;  %vm2455_vm8 = vmand %vm298_vm13, %vm2261_vm9 }
 0x11d   : > { %v360_v8 = vsel %vm298_vm13, %v355_v46, 0.0  ;;  %v2440_v3 = vand.u32 4294901760, %v354_v36  ;;  %598 = vmatprep.subr.mxu1 %v597_v54  ;;  %490 = vmatpush1.msra.mxu0 %v2420_v10  ;;  %v620_v6 = vsub.f32 %v2397_v47, %v3038_v28  ;;  %v626_v7 = vsub.f32 %v2400_v52, %v3039_v29  ;;  %3079 = vst [vmem:[#allocation4_spill] sm:$0xff] %v2476_v1 }
 0x11e   : > { %v2449_v42 = vand.u32 4294901760, %v360_v8  ;;  %604 = vmatpush1.msra.mxu1 %v603_v49  ;;  %v3076_v46 = vmov 0  ;;  %v615_v35 = vand.u32 4294901760, %v2290_v2  ;;  %v3044_v53 = vand.u32 4294901760, %v2428_v20 }
 0x11f   : > { %v3077_v46 = vsel %vm2455_vm8, 4294967295, %v3076_v46  ;;  %v3045_v54 = vand.u32 4294901760, %v2431_v18  ;;  %v2463_v28 = vsub.f32 %v354_v36, %v2440_v3  ;;  %610 = vmatprep.subr.mxu1 %v609_v55  ;;  %v339_v49 = vpop.permute.xlu1 %338  ;;  %v337_v29 = vpop.permute.xlu0 %336  ;;  %492 = vmatprep.subr.mxu0 %v2440_v3  ;;  %v621_v11 = vand.u32 4294901760, %v620_v6 }
 0x120   : > { %3078 = vst [vmem:[#allocation3_spill] sm:$0xff] %v3077_v46  ;;  %v627_v15 = vand.u32 4294901760, %v626_v7  ;;  %v2469_v61 = vsub.f32 %v360_v8, %v2449_v42  ;;  %v341_v2 = vsel %vm340_vm14, %v337_v29, %v339_v49  ;;  %v342_v60 = vsel %vm340_vm14, %v339_v49, %v337_v29  ;;  %616 = vmatpush1.msra.mxu1 %v615_v35 }
 0x121   : > { %494 = vmatpush1.msra.mxu0 %v2449_v42  ;;  %v347_v55 = vsel %vm2455_vm8, %v342_v60, 0.0  ;;  %v348_v36 = vsel %vm2235_vm6, %v341_v2, 0.0  ;;  %622 = vmatprep.subr.mxu1 %v621_v11  ;;  %v632_v8 = vsub.f32 %v2428_v20, %v3044_v53  ;;  %v638_v29 = vsub.f32 %v2431_v18, %v3045_v54 }
 0x122   : > { %v2488_v6 = vand.u32 4294901760, %v348_v36  ;;  %v2490_v7 = vand.u32 4294901760, %v347_v55  ;;  %628 = vmatpush1.msra.mxu1 %v627_v15  ;;  %v3049_v48 = vand.u32 4294901760, %v2463_v28  ;;  %v3050_v60 = vand.u32 4294901760, %v2469_v61 }
 0x123   : > { %v2494_v35 = vpop.permute.xlu1 %1213  ;;  %v2496_v11 = vpop.permute.xlu0 %1211  ;;  %v633_v49 = vand.u32 4294901760, %v632_v8  ;;  %v639_v2 = vand.u32 4294901760, %v638_v29 }
 0x124   : > { %v2499_v53 = vsub.f32 %v348_v36, %v2488_v6  ;;  %v2502_v54 = vsub.f32 %v347_v55, %v2490_v7  ;;  %v1216_v15 = vsel %vm431_vm2, %v2494_v35, %v2496_v11  ;;  %496 = vmatprep.subr.mxu0 %v2488_v6  ;;  %v644_v36 = vsub.f32 %v2463_v28, %v3049_v48 }
 0x125   : > { %v2511_v19 = vsel %vm2210_vm4, %v1216_v15, 0.0  ;;  %634 = vmatprep.subr.mxu1 %v633_v49  ;;  %498 = vmatpush1.msra.mxu0 %v2490_v7  ;;  %v650_v55 = vsub.f32 %v2469_v61, %v3050_v60  ;;  %v3080_v48 = vmov 0.0   ;;  %vm1905_vm4 = vcmp.eq.s32.totalorder %v2183_v26, 0 }
 0x126   : > { %640 = vmatpush1.msra.mxu1 %v639_v2  ;;  %537 = vmatmul.mubr.f32.vlgmr.msra.gmra.mxu0 %v2476_v1  ;;  %v3052_v8 = vand.u32 4294901760, %v2499_v53  ;;  %v3053_v34 = vand.u32 4294901760, %v2502_v54  ;;  %v645_v15 = vand.u32 4294901760, %v644_v36 }
 0x127   : > { %721 = vmatprep.subr.mxu0 %v2243_v50  ;;  %v2524_v29 = vpop.permute.xlu1 %1205  ;;  %v2526_v49 = vpop.permute.xlu0 %1203  ;;  %v651_v46 = vand.u32 4294901760, %v650_v55  ;;  %805 = vmatprep.mubr.f32.mxu0 %v3080_v48 }
 0x128   : > { %724 = vmatpush1.msra.mxu0 %v2246_v51  ;;  %646 = vmatprep.subr.mxu1 %v645_v15  ;;  %v656_v2 = vsub.f32 %v2499_v53, %v3052_v8  ;;  %v662_v60 = vsub.f32 %v2502_v54, %v3053_v34  ;;  %v3083_v34 = vand.u32 4294901760, %v2294_v4 }
 0x129   : > { %727 = vmatprep.subr.mxu0 %v2294_v4  ;;  %652 = vmatpush1.msra.mxu1 %v651_v46  ;;  %v3086_v4 = vand.u32 4294901760, %v2328_v25 }
 0x12a   : > { %730 = vmatpush1.msra.mxu0 %v2280_v62  ;;  %v657_v15 = vand.u32 4294901760, %v656_v2  ;;  %v663_v1 = vand.u32 4294901760, %v662_v60  ;;  %v3081_v2 = vand.u32 4294901760, %v2243_v50  ;;  %v1215_v50 = vsel %vm431_vm2, %v2496_v11, %v2494_v35 }
 0x12b   : > { %733 = vmatprep.subr.mxu0 %v2325_v24  ;;  %v2539_v36 = vpop.permute.xlu1 %1197  ;;  %v2541_v55 = vpop.permute.xlu0 %1195  ;;  %v3088_v11 = vand.u32 4294901760, %v2358_v5 }
 0x12c   : > { %v1200_v8 = vsel %vm405_vm7, %v2539_v36, %v2541_v55  ;;  %736 = vmatpush1.msra.mxu0 %v2328_v25  ;;  %658 = vmatprep.subr.mxu1 %v657_v15  ;;  %v3082_v15 = vand.u32 4294901760, %v2246_v51  ;;  %v3085_v51 = vand.u32 4294901760, %v2325_v24  ;;  %v3087_v24 = vand.u32 4294901760, %v2355_v0 }
 0x12d   : > { %v2550_v46 = vsel %vm2272_vm11, %v1200_v8, 0.0  ;;  %739 = vmatprep.subr.mxu0 %v2355_v0  ;;  %664 = vmatpush1.msra.mxu1 %v663_v1  ;;  %v1217_v25 = vsel %vm2202_vm3, %v1215_v50, 0.0  ;;  %v3089_v0 = vand.u32 4294901760, %v2216_v37  ;;  %v3090_v50 = vand.u32 4294901760, %v2220_v38 }
 0x12e   : > { %742 = vmatpush1.msra.mxu0 %v2358_v5  ;;  %699 = vmatmul.mubr.f32.vlgmr.msra.gmra.mxu1 %v2322_v21  ;;  %v2631_v5 = vand.u32 4294901760, %v2150_v23  ;;  %v1199_v27 = vsel %vm405_vm7, %v2541_v55, %v2539_v36 }
 0x12f   : > { %745 = vmatprep.subr.mxu0 %v2216_v37  ;;  %829 = vmatprep.subr.mxu1 %v2231_v43  ;;  %v1190_v59 = vpop.permute.xlu1 %1189  ;;  %v1188_v1 = vpop.permute.xlu0 %1187 }
 0x130   : > { %748 = vmatpush1.msra.mxu0 %v2220_v38  ;;  %831 = vmatpush1.msra.mxu1 %v2233_v44  ;;  %v3091_v38 = vand.u32 4294901760, %v2397_v47  ;;  %v1191_v36 = vsel %vm392_vm10, %v1188_v1, %v1190_v59 }
 0x131   : > { %751 = vmatprep.subr.mxu0 %v2397_v47  ;;  %833 = vmatprep.subr.mxu1 %v2266_v58  ;;  %v3093_v47 = vand.u32 4294901760, %v2428_v20 }
 0x132   : > { %754 = vmatpush1.msra.mxu0 %v2400_v52  ;;  %835 = vmatpush1.msra.mxu1 %v2258_v56 }
 0x133   : > { %757 = vmatprep.subr.mxu0 %v2428_v20  ;;  %837 = vmatprep.subr.mxu1 %v2313_v12  ;;  %v2577_v60 = vpop.permute.xlu1 %1181  ;;  %v2579_v8 = vpop.permute.xlu0 %1179 }
 0x134   : > { %760 = vmatpush1.msra.mxu0 %v2431_v18  ;;  %839 = vmatpush1.msra.mxu1 %v2315_v13  ;;  %v1184_v33 = vsel %vm379_vm12, %v2577_v60, %v2579_v8 }
 0x135   : > { %763 = vmatprep.subr.mxu0 %v2463_v28  ;;  %841 = vmatprep.subr.mxu1 %v2344_v40 }
 0x136   : > { %766 = vmatpush1.msra.mxu0 %v2469_v61  ;;  %843 = vmatpush1.msra.mxu1 %v2346_v41 }
 0x137   : > { %769 = vmatprep.subr.mxu0 %v2499_v53  ;;  %845 = vmatprep.subr.mxu1 %v2196_v31  ;;  %v1172_v35 = vpop.permute.xlu0 %1171 }
 0x138   : > { %772 = vmatpush1.msra.mxu0 %v2502_v54  ;;  %847 = vmatpush1.msra.mxu1 %v2199_v32 }
 0x139   : > { %808 = vmatmul.mubr.f32.vlgmr.msra.gmra.mxu0 %v2352_v63  ;;  %849 = vmatprep.subr.mxu1 %v2376_v14  ;;  %v3084_v63 = vand.u32 4294901760, %v2280_v62  ;;  %v2604_v62 = vand.u32 4294901760, %v2511_v19 }
 0x13a   : > { %923 = vmatprep.subr.mxu0 %v3081_v2  ;;  %851 = vmatpush1.msra.mxu1 %v2378_v16  ;;  %v1207_v2 = vsel %vm418_vm5, %v2526_v49, %v2524_v29 }
 0x13b   : > { %927 = vmatpush1.msra.mxu0 %v3082_v15  ;;  %853 = vmatprep.subr.mxu1 %v2418_v9  ;;  %v2640_v37 = vsub.f32 %v2511_v19, %v2604_v62  ;;  %v3092_v19 = vand.u32 4294901760, %v2400_v52  ;;  %v2670_v52 = vsub.f32 %v2150_v23, %v2631_v5 }
 0x13c   : > { %931 = vmatprep.subr.mxu0 %v3083_v34  ;;  %855 = vmatpush1.msra.mxu1 %v2420_v10  ;;  %v1174_v34 = vpop.permute.xlu1 %1173 }
 0x13d   : > { %935 = vmatpush1.msra.mxu0 %v3084_v63  ;;  %857 = vmatprep.subr.mxu1 %v2440_v3  ;;  %v1208_v63 = vsel %vm418_vm5, %v2524_v29, %v2526_v49  ;;  %v2636_v29 = vand.u32 4294901760, %v1217_v25  ;;  %v1192_v49 = vsel %vm392_vm10, %v1190_v59, %v1188_v1  ;;  %v2689_v1 = vand.u32 4294901760, %v2550_v46 }
 0x13e   : > { %939 = vmatprep.subr.mxu0 %v3085_v51  ;;  %859 = vmatpush1.msra.mxu1 %v2449_v42  ;;  %v1210_v15 = vsel %vm301_vm0, %v1208_v63, 0.0  ;;  %v2634_v51 = vand.u32 4294901760, %v2148_v22  ;;  %v1201_v63 = vsel %vm2261_vm9, %v1199_v27, 0.0  ;;  %v1194_v20 = vsel %vm2191_vm1, %v1192_v49, 0.0 }
 0x13f   : > { %943 = vmatpush1.msra.mxu0 %v3086_v4  ;;  %861 = vmatprep.subr.mxu1 %v2488_v6  ;;  %v2656_v4 = vand.u32 4294901760, %v1210_v15  ;;  %vm3098_vm0 = vcmp.lt.s32.totalorder %v2183_v26, 15  ;;  %vm1907_vm5 = vcmp.eq.s32.totalorder %v2183_v26, 1 }
 0x140   : > { %947 = vmatprep.subr.mxu0 %v3087_v24  ;;  %863 = vmatpush1.msra.mxu1 %v2490_v7  ;;  %v1166_v55 = vpop.permute.xlu1 %1165  ;;  %v2674_v59 = vsub.f32 %v2148_v22, %v2634_v51  ;;  %v1193_v22 = vsel %vm2202_vm3, %v1191_v36, 0.0  ;;  %v1183_v24 = vsel %vm379_vm12, %v2579_v8, %v2577_v60  ;;  %vm3100_vm2 = vmmov %vm3098_vm0  ;;  %vm3101_vm3 = vcmp.lt.s32.totalorder %v2183_v26, 16 }
 0x141   : > { %896 = vmatprep.mubr.f32.mxu1 %v3080_v48  ;;  %951 = vmatpush1.msra.mxu0 %v3088_v11  ;;  %v3097_v11 = vand.u32 4294901760, %v2499_v53  ;;  %v1186_v53 = vsel %vm2235_vm6, %v1183_v24, 0.0  ;;  %v1176_v8 = vsel %vm3100_vm2, %v1174_v34, %v1172_v35 }
 0x142   : > { %900 = vmatmul.mubr.f32.vlgmr.msra.gmra.mxu1 %v2394_v39  ;;  %955 = vmatprep.subr.mxu0 %v3089_v0  ;;  %v3055_v0 = vand.u32 4294901760, %v2670_v52  ;;  %v2755_v49 = vand.u32 4294901760, %v1186_v53 }
 0x143   : > { %1047 = vmatprep.subr.mxu1 %v2231_v43  ;;  %959 = vmatpush1.msra.mxu0 %v3090_v50  ;;  %v2649_v43 = vand.u32 4294901760, %v1207_v2 }
 0x144   : > { %1049 = vmatpush1.msra.mxu1 %v2233_v44  ;;  %963 = vmatprep.subr.mxu0 %v3091_v38  ;;  %v1164_v44 = vpop.permute.xlu0 %1163  ;;  %v1158_v50 = vpop.permute.xlu1 %1157  ;;  %v1185_v38 = vsel %vm2261_vm9, %v1184_v33, 0.0 }
 0x145   : > { %1051 = vmatprep.subr.mxu1 %v2266_v58  ;;  %967 = vmatpush1.msra.mxu0 %v3092_v19  ;;  %v3094_v58 = vand.u32 4294901760, %v2431_v18  ;;  %v1329_v18 = vand.u32 4294901760, %v2640_v37  ;;  %v2686_v23 = vsub.f32 %v1207_v2, %v2649_v43  ;;  %v2712_v2 = vand.u32 4294901760, %v1194_v20 }
 0x146   : > { %1053 = vmatpush1.msra.mxu1 %v2258_v56  ;;  %971 = vmatprep.subr.mxu0 %v3093_v47  ;;  %v2677_v56 = vsub.f32 %v1217_v25, %v2636_v29  ;;  %v2703_v25 = vand.u32 4294901760, %v1201_v63  ;;  %v1177_v19 = vsel %vm2385_vm15, %v1176_v8, 0.0 }
 0x147   : > { %1055 = vmatprep.subr.mxu1 %v2313_v12  ;;  %975 = vmatpush1.msra.mxu0 %v3094_v58  ;;  %v3095_v12 = vand.u32 4294901760, %v2463_v28  ;;  %v2701_v28 = vsub.f32 %v1210_v15, %v2656_v4  ;;  %v3058_v15 = vand.u32 4294901760, %v2674_v59 }
 0x148   : > { %1057 = vmatpush1.msra.mxu1 %v2315_v13  ;;  %v3096_v13 = vand.u32 4294901760, %v2469_v61  ;;  %v1175_v61 = vsel %vm3098_vm0, %v1172_v35, %v1174_v34  ;;  %v1335_v60 = vand.u32 4294901760, %v2677_v56  ;;  %v1156_v27 = vpop.permute.xlu0 %1155  ;;  %1024 = vmatprep.mubr.f32.mxu0 %v3080_v48  ;;  %v1330_v34 = vsub.f32 %v2640_v37, %v1329_v18 }
 0x149   : > { %979 = vmatprep.subr.mxu0 %v3095_v12  ;;  %1059 = vmatprep.subr.mxu1 %v2344_v40  ;;  %v3099_v40 = vand.u32 4294901760, %v2502_v54  ;;  %v2733_v54 = vsub.f32 %v2550_v46, %v2689_v1  ;;  %v2743_v35 = vsub.f32 %v1201_v63, %v2703_v25  ;;  %v1168_v46 = vsel %vm3101_vm3, %v1166_v55, %v1164_v44 }
 0x14a   : > { %983 = vmatpush1.msra.mxu0 %v3096_v13  ;;  %1061 = vmatpush1.msra.mxu1 %v2346_v41  ;;  %v2722_v41 = vand.u32 4294901760, %v1193_v22  ;;  %v1341_v57 = vand.u32 4294901760, %v2701_v28  ;;  %v1159_v30 = vsel %vm340_vm14, %v1156_v27, %v1158_v50  ;;  %v1160_v63 = vsel %vm340_vm14, %v1158_v50, %v1156_v27 }
 0x14b   : > { %987 = vmatprep.subr.mxu0 %v3097_v11  ;;  %1063 = vmatprep.subr.mxu1 %v2196_v31  ;;  %v1347_v31 = vand.u32 4294901760, %v2686_v23  ;;  %v1359_v58 = vand.u32 4294901760, %v2743_v35  ;;  %v2795_v12 = vsub.f32 %v1186_v53, %v2755_v49  ;;  %v1161_v13 = vsel %vm2455_vm8, %v1160_v63, 0.0 }
 0x14c   : > { %991 = vmatpush1.msra.mxu0 %v3099_v40  ;;  %1065 = vmatpush1.msra.mxu1 %v2199_v32  ;;  %v1178_v32 = vsel %vm2191_vm1, %v1175_v61, 0.0  ;;  %v2764_v36 = vsub.f32 %v1193_v22, %v2722_v41  ;;  %vm3102_vm1 = vmmov %vm3101_vm3  ;;  %v1331_v53 = vand.u32 4294901760, %v1330_v34  ;;  %v2828_v27 = vand.u32 4294901760, %v1161_v13 }
 0x14d   : > { %1026 = vmatmul.mubr.f32.vlgmr.msra.gmra.mxu0 %v2322_v21  ;;  %1067 = vmatprep.subr.mxu1 %v2376_v14  ;;  %v2753_v14 = vsub.f32 %v1194_v20, %v2712_v2  ;;  %v1167_v47 = vsel %vm3102_vm1, %v1164_v44, %v1166_v55  ;;  %v2774_v17 = vand.u32 4294901760, %v1178_v32  ;;  %v1336_v55 = vsub.f32 %v2677_v56, %v1335_v60 }
 0x14e   : > { %1234 = vmatprep.subr.mxu0 %v2604_v62  ;;  %1069 = vmatpush1.msra.mxu1 %v2378_v16  ;;  %v2766_v16 = vand.u32 4294901760, %v1185_v38  ;;  %v1353_v44 = vand.u32 4294901760, %v2733_v54  ;;  %v2785_v20 = vand.u32 4294901760, %v1177_v19  ;;  %v2797_v22 = vand.u32 4294901760, %v1167_v47 }
 0x14f   : > { %1236 = vmatpush1.msra.mxu0 %v2636_v29  ;;  %1071 = vmatprep.subr.mxu1 %v2418_v9  ;;  %v1169_v9 = vsel %vm298_vm13, %v1168_v46, 0.0  ;;  %v1365_v45 = vand.u32 4294901760, %v2753_v14  ;;  %v3056_v33 = vand.u32 4294901760, %v2764_v36  ;;  %v2816_v40 = vsub.f32 %v1178_v32, %v2774_v17 }
 0x150   : > { %1238 = vmatprep.subr.mxu0 %v2656_v4  ;;  %1073 = vmatpush1.msra.mxu1 %v2420_v10  ;;  %v1162_v10 = vsel %vm2235_vm6, %v1159_v30, 0.0  ;;  %v2809_v11 = vsub.f32 %v1185_v38, %v2766_v16  ;;  %v2811_v61 = vand.u32 4294901760, %v1169_v9  ;;  %v1354_v8 = vsub.f32 %v2733_v54, %v1353_v44 }
 0x151   : > { %1240 = vmatpush1.msra.mxu0 %v2649_v43  ;;  %1075 = vmatprep.subr.mxu1 %v2440_v3  ;;  %v1342_v3 = vsub.f32 %v2701_v28, %v1341_v57  ;;  %v2826_v50 = vsub.f32 %v1177_v19, %v2785_v20  ;;  %v1360_v38 = vsub.f32 %v2743_v35, %v1359_v58  ;;  %v3057_v19 = vand.u32 4294901760, %v2795_v12 }
 0x152   : > { %1242 = vmatprep.subr.mxu0 %v2689_v1  ;;  %1077 = vmatpush1.msra.mxu1 %v2449_v42  ;;  %v1348_v42 = vsub.f32 %v2686_v23, %v1347_v31  ;;  %v2836_v34 = vsub.f32 %v1167_v47, %v2797_v22  ;;  %v1366_v46 = vsub.f32 %v2753_v14, %v1365_v45  ;;  %v1395_v30 = vand.u32 4294901760, %v2809_v11 }
 0x153   : > { %1244 = vmatpush1.msra.mxu0 %v2703_v25  ;;  %1079 = vmatprep.subr.mxu1 %v2488_v6  ;;  %v2818_v6 = vand.u32 4294901760, %v1162_v10  ;;  %v1343_v32 = vand.u32 4294901760, %v1342_v3  ;;  %v2845_v63 = vsub.f32 %v1169_v9, %v2811_v61  ;;  %v1355_v24 = vand.u32 4294901760, %v1354_v8 }
 0x154   : > { %1246 = vmatprep.subr.mxu0 %v2712_v2  ;;  %1081 = vmatpush1.msra.mxu1 %v2490_v7  ;;  %v1337_v7 = vand.u32 4294901760, %v1336_v55  ;;  %v1349_v47 = vand.u32 4294901760, %v1348_v42  ;;  %v1372_v55 = vsub.f32 %v2764_v36, %v3056_v33  ;;  %v1378_v9 = vsub.f32 %v2670_v52, %v3055_v0 }
 0x155   : > { %1114 = vmatprep.mubr.f32.mxu1 %v3080_v48  ;;  %1248 = vmatpush1.msra.mxu0 %v2722_v41  ;;  %v2852_v3 = vsub.f32 %v1162_v10, %v2818_v6  ;;  %v2861_v42 = vsub.f32 %v1161_v13, %v2828_v27  ;;  %v1361_v10 = vand.u32 4294901760, %v1360_v38  ;;  %v1367_v8 = vand.u32 4294901760, %v1366_v46 }
 0x156   : > { %1116 = vmatmul.mubr.f32.vlgmr.msra.gmra.mxu1 %v2322_v21  ;;  %1250 = vmatprep.subr.mxu0 %v2631_v5  ;;  %v1390_v0 = vsub.f32 %v2795_v12, %v3057_v19  ;;  %v1413_v33 = vand.u32 4294901760, %v2836_v34  ;;  %v1419_v13 = vand.u32 4294901760, %v2845_v63  ;;  %v1373_v38 = vand.u32 4294901760, %v1372_v55 }
 0x157   : > { %1332 = vmatprep.subr.mxu1 %v1331_v53  ;;  %1252 = vmatpush1.msra.mxu0 %v2634_v51  ;;  %v3059_v53 = vand.u32 4294901760, %v2816_v40  ;;  %v1379_v46 = vand.u32 4294901760, %v1378_v9  ;;  %v1425_v19 = vand.u32 4294901760, %v2852_v3 }
 0x158   : > { %1338 = vmatpush1.msra.mxu1 %v1337_v7  ;;  %1254 = vmatprep.subr.mxu0 %v2755_v49  ;;  %v3060_v7 = vand.u32 4294901760, %v2826_v50  ;;  %v1391_v9 = vand.u32 4294901760, %v1390_v0 }
 0x159   : > { %1344 = vmatprep.subr.mxu1 %v1343_v32  ;;  %1256 = vmatpush1.msra.mxu0 %v2766_v16  ;;  %v1384_v32 = vsub.f32 %v2674_v59, %v3058_v15  ;;  %v1431_v15 = vand.u32 4294901760, %v2861_v42  ;;  %v1426_v0 = vsub.f32 %v2852_v3, %v1425_v19 }
 0x15a   : > { %1350 = vmatpush1.msra.mxu1 %v1349_v47  ;;  %1258 = vmatprep.subr.mxu0 %v2774_v17  ;;  %v1396_v47 = vsub.f32 %v2809_v11, %v1395_v30 }
 0x15b   : > { %1356 = vmatprep.subr.mxu1 %v1355_v24  ;;  %1260 = vmatpush1.msra.mxu0 %v2785_v20  ;;  %v1402_v24 = vsub.f32 %v2816_v40, %v3059_v53  ;;  %v1385_v55 = vand.u32 4294901760, %v1384_v32  ;;  %v1420_v32 = vsub.f32 %v2845_v63, %v1419_v13 }
 0x15c   : > { %1362 = vmatpush1.msra.mxu1 %v1361_v10  ;;  %1262 = vmatprep.subr.mxu0 %v2797_v22  ;;  %v1408_v10 = vsub.f32 %v2826_v50, %v3060_v7  ;;  %v1397_v53 = vand.u32 4294901760, %v1396_v47  ;;  %v1432_v47 = vsub.f32 %v2861_v42, %v1431_v15 }
 0x15d   : > { %1368 = vmatprep.subr.mxu1 %v1367_v8  ;;  %1264 = vmatpush1.msra.mxu0 %v2811_v61  ;;  %v1414_v8 = vsub.f32 %v2836_v34, %v1413_v33  ;;  %v1403_v7 = vand.u32 4294901760, %v1402_v24  ;;  %v1421_v24 = vand.u32 4294901760, %v1420_v32 }
 0x15e   : > { %1374 = vmatpush1.msra.mxu1 %v1373_v38  ;;  %1266 = vmatprep.subr.mxu0 %v2818_v6  ;;  %v3104_v38 = vld [vmem:[#allocation4_spill] sm:$0xff] }
 0x15f   : > { %1380 = vmatprep.subr.mxu1 %v1379_v46  ;;  %1268 = vmatpush1.msra.mxu0 %v2828_v27  ;;  %v1409_v46 = vand.u32 4294901760, %v1408_v10 }
 0x160   : > { %1301 = vmatprep.mubr.f32.mxu0 %v3080_v48  ;;  %1386 = vmatpush1.msra.mxu1 %v1385_v55  ;;  %v1415_v55 = vand.u32 4294901760, %v1414_v8 }
 0x161   : > { %1307 = vmatmul.mubr.f32.vlgmr.msra.gmra.mxu0 %v3104_v38  ;;  %1392 = vmatprep.subr.mxu1 %v1391_v9  ;;  %v1427_v9 = vand.u32 4294901760, %v1426_v0 }
 0x162   : > { %1491 = vmatprep.subr.mxu0 %v2640_v37  ;;  %1398 = vmatpush1.msra.mxu1 %v1397_v53  ;;  %v1433_v53 = vand.u32 4294901760, %v1432_v47  ;;  %v3106_v37 = vand.u32 4294901760, %v2764_v36 }
 0x163   : > { %1494 = vmatpush1.msra.mxu0 %v2677_v56  ;;  %1404 = vmatprep.subr.mxu1 %v1403_v7  ;;  %v3105_v7 = vld [vmem:[#allocation2_spill] sm:$0xff]  ;;  %v3107_v56 = vand.u32 4294901760, %v2670_v52 }
 0x164   : > { %1497 = vmatprep.subr.mxu0 %v2701_v28  ;;  %1410 = vmatpush1.msra.mxu1 %v1409_v46 }
 0x165   : > { %1500 = vmatpush1.msra.mxu0 %v2686_v23  ;;  %1416 = vmatprep.subr.mxu1 %v1415_v55  ;;  %v3109_v23 = vand.u32 4294901760, %v2795_v12 }
 0x166   : > { %1503 = vmatprep.subr.mxu0 %v2733_v54  ;;  %1422 = vmatpush1.msra.mxu1 %v1421_v24 }
 0x167   : > { %1506 = vmatpush1.msra.mxu0 %v2743_v35  ;;  %1428 = vmatprep.subr.mxu1 %v1427_v9 }
 0x168   : > { %1509 = vmatprep.subr.mxu0 %v2753_v14  ;;  %1434 = vmatpush1.msra.mxu1 %v1433_v53 }
 0x169   : > { %1467 = vmatprep.mubr.f32.mxu1 %v3080_v48  ;;  %1512 = vmatpush1.msra.mxu0 %v2764_v36 }
 0x16a   : > { %1469 = vmatmul.mubr.f32.vlgmr.msra.gmra.mxu1 %v2322_v21  ;;  %1515 = vmatprep.subr.mxu0 %v2670_v52 }
 0x16b   : > { %1599 = vmatprep.subr.mxu1 %v2604_v62  ;;  %1518 = vmatpush1.msra.mxu0 %v2674_v59 }
 0x16c   : > { %1601 = vmatpush1.msra.mxu1 %v2636_v29  ;;  %1521 = vmatprep.subr.mxu0 %v2795_v12 }
 0x16d   : > { %1603 = vmatprep.subr.mxu1 %v2656_v4  ;;  %1524 = vmatpush1.msra.mxu0 %v2809_v11 }
 0x16e   : > { %1605 = vmatpush1.msra.mxu1 %v2649_v43  ;;  %1527 = vmatprep.subr.mxu0 %v2816_v40 }
 0x16f   : > { %1607 = vmatprep.subr.mxu1 %v2689_v1  ;;  %1530 = vmatpush1.msra.mxu0 %v2826_v50 }
 0x170   : > { %1609 = vmatpush1.msra.mxu1 %v2703_v25  ;;  %1533 = vmatprep.subr.mxu0 %v2836_v34 }
 0x171   : > { %1611 = vmatprep.subr.mxu1 %v2712_v2  ;;  %1536 = vmatpush1.msra.mxu0 %v2845_v63 }
 0x172   : > { %1613 = vmatpush1.msra.mxu1 %v2722_v41  ;;  %1539 = vmatprep.subr.mxu0 %v2852_v3 }
 0x173   : > { %1615 = vmatprep.subr.mxu1 %v2631_v5  ;;  %1542 = vmatpush1.msra.mxu0 %v2861_v42 }
 0x174   : > { %1575 = vmatprep.mubr.f32.mxu0 %v3080_v48  ;;  %1617 = vmatpush1.msra.mxu1 %v2634_v51 }
 0x175   : > { %1578 = vmatmul.mubr.f32.vlgmr.msra.gmra.mxu0 %v3105_v7  ;;  %1619 = vmatprep.subr.mxu1 %v2755_v49 }
 0x176   : > { %1693 = vmatprep.subr.mxu0 %v1329_v18  ;;  %1621 = vmatpush1.msra.mxu1 %v2766_v16  ;;  %v3108_v18 = vand.u32 4294901760, %v2674_v59 }
 0x177   : > { %1697 = vmatpush1.msra.mxu0 %v1335_v60  ;;  %1623 = vmatprep.subr.mxu1 %v2774_v17 }
 0x178   : > { %1701 = vmatprep.subr.mxu0 %v1341_v57  ;;  %1625 = vmatpush1.msra.mxu1 %v2785_v20 }
 0x179   : > { %1705 = vmatpush1.msra.mxu0 %v1347_v31  ;;  %1627 = vmatprep.subr.mxu1 %v2797_v22 }
 0x17a   : > { %1709 = vmatprep.subr.mxu0 %v1353_v44  ;;  %1629 = vmatpush1.msra.mxu1 %v2811_v61 }
 0x17b   : > { %1713 = vmatpush1.msra.mxu0 %v1359_v58  ;;  %1631 = vmatprep.subr.mxu1 %v2818_v6 }
 0x17c   : > { %1717 = vmatprep.subr.mxu0 %v1365_v45  ;;  %1633 = vmatpush1.msra.mxu1 %v2828_v27 }
 0x17d   : > { %1666 = vmatprep.mubr.f32.mxu1 %v3080_v48  ;;  %1721 = vmatpush1.msra.mxu0 %v3106_v37 }
 0x17e   : > { %1670 = vmatmul.mubr.f32.vlgmr.msra.gmra.mxu1 %v2394_v39  ;;  %1725 = vmatprep.subr.mxu0 %v3107_v56  ;;  %v3110_v39 = vand.u32 4294901760, %v2816_v40 }
 0x17f   : > { %1817 = vmatprep.subr.mxu1 %v2604_v62  ;;  %1729 = vmatpush1.msra.mxu0 %v3108_v18  ;;  %v3111_v62 = vand.u32 4294901760, %v2826_v50 }
 0x180   : > { %1819 = vmatpush1.msra.mxu1 %v2636_v29  ;;  %1733 = vmatprep.subr.mxu0 %v3109_v23 }
 0x181   : > { %1821 = vmatprep.subr.mxu1 %v2656_v4  ;;  %1737 = vmatpush1.msra.mxu0 %v1395_v30  ;;  %v443_v4 = vpop.permute.xlu0 %442 }
 0x182   : > { %1823 = vmatpush1.msra.mxu1 %v2649_v43  ;;  %1741 = vmatprep.subr.mxu0 %v3110_v39 }
 0x183   : > { %1825 = vmatprep.subr.mxu1 %v2689_v1  ;;  %1745 = vmatpush1.msra.mxu0 %v3111_v62 }
 0x184   : > { %1827 = vmatpush1.msra.mxu1 %v2703_v25  ;;  %1749 = vmatprep.subr.mxu0 %v1413_v33 }
 0x185   : > { %1829 = vmatprep.subr.mxu1 %v2712_v2  ;;  %1753 = vmatpush1.msra.mxu0 %v1419_v13 }
 0x186   : > { %1831 = vmatpush1.msra.mxu1 %v2722_v41  ;;  %1757 = vmatprep.subr.mxu0 %v1425_v19 }
 0x187   : > { %1833 = vmatprep.subr.mxu1 %v2631_v5  ;;  %1761 = vmatpush1.msra.mxu0 %v1431_v15 }
 0x188   : > { %1794 = vmatprep.mubr.f32.mxu0 %v3080_v48  ;;  %1835 = vmatpush1.msra.mxu1 %v2634_v51 }
 0x189   : > { %1796 = vmatmul.mubr.f32.vlgmr.msra.gmra.mxu0 %v2322_v21  ;;  %1837 = vmatprep.subr.mxu1 %v2755_v49 }
 0x18a   : > { %1839 = vmatpush1.msra.mxu1 %v2766_v16  ;;  %1884 = vmatprep.mubr.f32.mxu1 %v3080_v48 }
 0x18b   : > { %1841 = vmatprep.subr.mxu1 %v2774_v17 }
 0x18c   : > { %1843 = vmatpush1.msra.mxu1 %v2785_v20 }
 0x18d   : > { %1845 = vmatprep.subr.mxu1 %v2797_v22 }
 0x18e   : > { %1847 = vmatpush1.msra.mxu1 %v2811_v61 }
 0x18f   : > { %1849 = vmatprep.subr.mxu1 %v2818_v6 }
 0x190   : > { %1851 = vmatpush1.msra.mxu1 %v2828_v27 }
 0x191   : > { %1886 = vmatmul.mubr.f32.vlgmr.msra.gmra.mxu1 %v2322_v21 }
 0x1e6   : > { %v538_v5 = vpop.f32.mrf.mxu0 }
 0x1e7   : > { %v539_v52 = vadd.f32 %v538_v5, %v443_v4 }
 0x1e8   : > { %v540_v51 = vpop.f32.mrf.mxu0 }
 0x1e9   : > { %v541_v28 = vadd.f32 %v540_v51, %v443_v4 }
 0x1ee   : > { %v700_v29 = vpop.f32.mrf.mxu1 }
 0x1ef   : > { %v701_v25 = vadd.f32 %v700_v29, %v539_v52 }
 0x1f0   : > { %v702_v48 = vpop.f32.mrf.mxu1 }
 0x1f1   : > { %v703_v15 = vadd.f32 %v702_v48, %v541_v28 }
 0x1f9   : > { %v809_v43 = vpop.f32.mrf.mxu0 }
 0x1fa   : > { %v810_v60 = vadd.f32 %v809_v43, %v701_v25 }
 0x1fb   : > { %v811_v59 = vpop.f32.mrf.mxu0 }
 0x1fc   : > { %v812_v31 = vadd.f32 %v811_v59, %v703_v15 }
 0x202   : > { %v901_v1 = vpop.f32.mrf.mxu1 }
 0x203   : > { %v902_v54 = vadd.f32 %v901_v1, %v810_v60 }
 0x204   : > { %v903_v41 = vpop.f32.mrf.mxu1 }
 0x205   : > { %v904_v21 = vadd.f32 %v903_v41, %v812_v31 }
 0x20d   : > { %v1027_v2 = vpop.f32.mrf.mxu0 }
 0x20e   : > { %v1028_v57 = vadd.f32 %v1027_v2, %v902_v54 }
 0x20f   : > { %v1029_v35 = vpop.f32.mrf.mxu0 }
 0x210   : > { %v1030_v49 = vadd.f32 %v1029_v35, %v904_v21 }
 0x216   : > { %v1117_v14 = vpop.f32.mrf.mxu1 }
 0x217   : > { %v1118_v36 = vadd.f32 %v1117_v14, %v1028_v57 }
 0x218   : > { %v1119_v16 = vpop.f32.mrf.mxu1 }
 0x219   : > { %1122 = vst [vmem:[%s3007_s24] sm:$0xff] %v1118_v36  ;;  %v1120_v17 = vadd.f32 %v1119_v16, %v1030_v49  ;;  %v1128_v58 = vmul.f32 %v1118_v36, %v1118_v36 }
 0x21b   : > { %1123 = vst [vmem:[%s3007_s24 + $0x8] sm:$0xff] %v1120_v17  ;;  %v1124_v44 = vadd.f32 %v1120_v17, %v1118_v36  ;;  %v1129_v20 = vmul.f32 %v1120_v17, %v1120_v17 }
 0x21d   : > { %1125 = vadd.xlane.f32.xlu1 %v1124_v44  ;;  %v1130_v12 = vadd.f32 %v1129_v20, %v1128_v58 }
 0x21f   : > { %1131 = vadd.xlane.f32.xlu0 %v1130_v12 }
 0x221   : > { %v1308_v22 = vpop.f32.mrf.mxu0 }
 0x222   : > { %v1309_v40 = vadd.f32 %v1308_v22, %v443_v4 }
 0x223   : > { %v1310_v45 = vpop.f32.mrf.mxu0 }
 0x224   : > { %v1311_v27 = vadd.f32 %v1310_v45, %v443_v4 }
 0x22a   : > { %v1470_v33 = vpop.f32.mrf.mxu1 }
 0x22b   : > { %v1471_v34 = vadd.f32 %v1470_v33, %v1309_v40 }
 0x22c   : > { %v1472_v61 = vpop.f32.mrf.mxu1 }
 0x22d   : > { %v1473_v30 = vadd.f32 %v1472_v61, %v1311_v27 }
 0x235   : > { %v1579_v11 = vpop.f32.mrf.mxu0 }
 0x236   : > { %v1580_v63 = vadd.f32 %v1579_v11, %v1471_v34 }
 0x237   : > { %v1581_v6 = vpop.f32.mrf.mxu0 }
 0x238   : > { %v1582_v42 = vadd.f32 %v1581_v6, %v1473_v30 }
 0x23e   : > { %v1671_v50 = vpop.f32.mrf.mxu1 }
 0x23f   : > { %v1672_v13 = vadd.f32 %v1671_v50, %v1580_v63 }
 0x240   : > { %v1673_v3 = vpop.f32.mrf.mxu1 }
 0x241   : > { %v1674_v8 = vadd.f32 %v1673_v3, %v1582_v42 }
 0x249   : > { %v1797_v19 = vpop.f32.mrf.mxu0 }
 0x24a   : > { %v1798_v32 = vadd.f32 %v1797_v19, %v1672_v13 }
 0x24b   : > { %v1799_v10 = vpop.f32.mrf.mxu0 }
 0x24c   : > { %v1800_v0 = vadd.f32 %v1799_v10, %v1674_v8 }
 0x251   : > { %v1887_v38 = vpop.f32.mrf.mxu1 }
 0x252   : > { %v1888_v46 = vadd.f32 %v1887_v38, %v1798_v32 }
 0x253   : > { %v1889_v47 = vpop.f32.mrf.mxu1 }
 0x254   : > { %2014 = vst [vmem:[%s3007_s24 + $0x10] sm:$0xff] %v1888_v46  ;;  %v1890_v55 = vadd.f32 %v1889_v47, %v1800_v0  ;;  %v1899_v9 = vmul.f32 %v1888_v46, %v1888_v46 }
 0x256   : > { %2015 = vst [vmem:[%s3007_s24 + $0x18] sm:$0xff] %v1890_v55  ;;  %v1895_v24 = vadd.f32 %v1890_v55, %v1888_v46  ;;  %v1900_v53 = vmul.f32 %v1890_v55, %v1890_v55 }
 0x258   : > { %1896 = vadd.xlane.f32.xlu0 %v1895_v24  ;;  %v1901_v7 = vadd.f32 %v1900_v53, %v1899_v9 }
 0x25a   : > { %1902 = vadd.xlane.f32.xlu1 %v1901_v7 }
 0x2a6   : > { %v1126_v56 = vpop.xlane.xlu1 %1125 }
 0x2a8   : > { %v1132_v37 = vpop.xlane.xlu0 %1131 }
 0x2e1   : > { %v1897_v18 = vpop.xlane.xlu0 %1896 }
 0x2e2   : > { %v1898_v23 = vadd.f32 %v1897_v18, %v1126_v56 }
 0x2e3   : > { %v1903_v39 = vpop.xlane.xlu1 %1902 }
 0x2e4   : > { %v1904_v62 = vadd.f32 %v1903_v39, %v1132_v37  ;;  %v1906_v5 = vsel %vm1905_vm4, %v1898_v23, 0.0 }
 0x2e6   : > { %v1908_v51 = vsel %vm1907_vm5, %v1904_v62, 0.0 }
 0x2e7   : > { %v1909_v29 = vadd.f32 %v1908_v51, %v1906_v5 }
 0x2e9   : > { %1910 = vst [vmem:[%s270_s28] sm:$0xff] %v1909_v29 }
 0x2ea PF: > { %s17_s21 = sadd.s32 1, %s2046_s21  }
 0x2eb   : > { %p14_p5 = scmp.ge.s32.totalorder %s17_s21, 4  }
 0x2ed   :  { %16 = sbr.rel (!%p14_p5) target bundleno = 1 (0x1), region = 84 }

</bundles_post_ra>
